<compile_context>
chip_gen: v7x
topology: tpu7x:2x2x1
jax: 0.10.0
libtpu: 0.0.40
codegen_flags: <defaults>
</compile_context>

<pallas_src>
import functools

import numpy as np
import jax
import jax.numpy as jnp
from jax.experimental import pallas as pl
from jax.experimental.pallas import tpu as pltpu

# ----- hyperparameters (mirror EigenmechanicsExtractor.__init__) -----
INPUT_DIM = 64
LATENT_DIM = 16            # chosen == TEMP_DIM so temperature conditioning broadcasts
N_EIGENMODES = 100
H1, H2 = 1024, 512         # encoder_layer_sizes[:2]
EIG_H = 256
CLS_H1, CLS_H2 = 128, 64
CATH_H, CATH_OUT = 64, 4
TEMP_VOCAB, TEMP_DIM = 500, 16
EPS = 1e-5                 # nn.LayerNorm default eps

# ----- lane-dense padded widths (outputs / small contraction dims -> 128) -----
LANE = 128
LATENT_PAD = LANE          # latent   16 -> 128
EIG_PAD = LANE             # eigen   100 -> 128
CATH_PAD = LANE            # cath      4 -> 128
TEMP_PAD = LANE            # temp mult 16 -> 128


def _ln(x, g, b):
    mu = jnp.mean(x, axis=-1, keepdims=True)
    var = jnp.mean(jnp.square(x - mu), axis=-1, keepdims=True)
    return (x - mu) * jax.lax.rsqrt(var + EPS) * g + b


def _silu(x):
    return x * jax.nn.sigmoid(x)


def eigen_kernel(x_ref, tm_ref,
                 w1, b1, g1, be1, w2, b2, g2, be2, w3, b3,
                 w4, b4, g4, be4, w5, b5,
                 w6, b6, g6, be6, w7, b7, g7, be7, w8, b8,
                 w9, b9, g9, be9, w10, b10,
                 latent_ref, eig_ref, cls_ref, cath_ref):
    # bf16 operands on the MXU, f32 accumulation; biases / LN params stay f32.
    def lin(h, w, b):
        return jnp.dot(h.astype(jnp.bfloat16), w[...],
                       preferred_element_type=jnp.float32) + b[...]

    h = x_ref[...].astype(jnp.float32)

    # ---- encoder: Linear/LN/SiLU x2 + Linear ----
    h = _silu(_ln(lin(h, w1, b1), g1[...], be1[...]))          # [R, 1024]
    h = _silu(_ln(lin(h, w2, b2), g2[...], be2[...]))          # [R, 512]
    latent = lin(h, w3, b3)                                     # [R, 128] (cols >=16 are 0)

    # ---- temperature conditioning: latent * (1 + 0.1*tanh(temp_embed)) ----
    # multiplier precomputed in the wrapper; padded lanes of latent are zero,
    # so the (zero-padded) multiplier lanes cannot change the result.
    latent = latent * tm_ref[...]
    latent_ref[...] = latent

    # ---- eigenmode head ----
    e = _silu(_ln(lin(latent, w4, b4), g4[...], be4[...]))      # [R, 256]
    e = lin(e, w5, b5)                                          # [R, 128] (cols >=100 are 0)
    eig_ref[...] = e

    # ---- classifier head (on eigenmodes) ----
    m = _silu(_ln(lin(e, w6, b6), g6[...], be6[...]))           # [R, 128]
    m = _silu(_ln(lin(m, w7, b7), g7[...], be7[...]))           # [R, 64]
    m = lin(m, w8, b8)                                          # [R, 128]
    cls_ref[...] = m

    # ---- cath head (on latent) ----
    c = _silu(_ln(lin(latent, w9, b9), g9[...], be9[...]))      # [R, 64]
    c = lin(c, w10, b10)                                        # [R, 128]
    cath_ref[...] = c


def init_params(seed=0):
    """Canonical (unpadded, f32) parameters matching the PyTorch module."""
    key = jax.random.PRNGKey(seed)
    keys = list(jax.random.split(key, 16))
    kit = iter(keys)

    def linear(din, dout):
        kw, kb = jax.random.split(next(kit))
        lim = 1.0 / np.sqrt(din)
        w = jax.random.uniform(kw, (din, dout), jnp.float32, minval=-lim, maxval=lim)
        b = jax.random.uniform(kb, (1, dout), jnp.float32, minval=-lim, maxval=lim)
        return w, b

    def lnp(d):
        return jnp.ones((1, d), jnp.float32), jnp.zeros((1, d), jnp.float32)

    flat = []
    # encoder
    w, b = linear(INPUT_DIM, H1); g, be = lnp(H1); flat += [w, b, g, be]
    w, b = linear(H1, H2);        g, be = lnp(H2); flat += [w, b, g, be]
    w, b = linear(H2, LATENT_DIM);                 flat += [w, b]
    # eigenmode head
    w, b = linear(LATENT_DIM, EIG_H); g, be = lnp(EIG_H); flat += [w, b, g, be]
    w, b = linear(EIG_H, N_EIGENMODES);                   flat += [w, b]
    # classifier head
    w, b = linear(N_EIGENMODES, CLS_H1); g, be = lnp(CLS_H1); flat += [w, b, g, be]
    w, b = linear(CLS_H1, CLS_H2);       g, be = lnp(CLS_H2); flat += [w, b, g, be]
    w, b = linear(CLS_H2, N_EIGENMODES);                      flat += [w, b]
    # cath head
    w, b = linear(LATENT_DIM, CATH_H); g, be = lnp(CATH_H); flat += [w, b, g, be]
    w, b = linear(CATH_H, CATH_OUT);                        flat += [w, b]

    temp_table = jax.random.normal(next(kit), (TEMP_VOCAB, TEMP_DIM), jnp.float32)
    return {"flat": flat, "temp_table": temp_table}


def _pad2(a, rows, cols):
    return jnp.pad(a, ((0, rows - a.shape[0]), (0, cols - a.shape[1])))


def prepare_kernel_params(params):
    """Zero-pad odd dims to 128 lanes and cast matmul weights to bf16."""
    (w1, b1, g1, be1, w2, b2, g2, be2, w3, b3,
     w4, b4, g4, be4, w5, b5,
     w6, b6, g6, be6, w7, b7, g7, be7, w8, b8,
     w9, b9, g9, be9, w10, b10) = params["flat"]
    bf = lambda w: w.astype(jnp.bfloat16)

    w3p = _pad2(w3, H2, LATENT_PAD);   b3p = _pad2(b3, 1, LATENT_PAD)
    w4p = _pad2(w4, LATENT_PAD, EIG_H)
    w5p = _pad2(w5, EIG_H, EIG_PAD);   b5p = _pad2(b5, 1, EIG_PAD)
    w6p = _pad2(w6, EIG_PAD, CLS_H1)
    w8p = _pad2(w8, CLS_H2, EIG_PAD);  b8p = _pad2(b8, 1, EIG_PAD)
    w9p = _pad2(w9, LATENT_PAD, CATH_H)
    w10p = _pad2(w10, CATH_H, CATH_PAD); b10p = _pad2(b10, 1, CATH_PAD)

    return [bf(w1), b1, g1, be1, bf(w2), b2, g2, be2, bf(w3p), b3p,
            bf(w4p), b4, g4, be4, bf(w5p), b5p,
            bf(w6p), b6, g6, be6, bf(w7), b7, g7, be7, bf(w8p), b8p,
            bf(w9p), b9, g9, be9, bf(w10p), b10p]


def _choose_row_block(bt, requested):
    """Largest useful multiple-of-8 tile (MXU wants 256, tiny inputs want less)."""
    return max(8, min(requested, 8 * pl.cdiv(bt, 8)))


@functools.partial(jax.jit, static_argnames=("row_block",))
def _forward_impl(x, temperature, params, row_block):
    B, T, D = x.shape
    BT = B * T
    BT_pad = row_block * pl.cdiv(BT, row_block)

    x_flat = x.reshape(BT, D).astype(jnp.float32)
    x_flat = jnp.pad(x_flat, ((0, BT_pad - BT), (0, 0)))

    # temperature multiplier 1 + 0.1*tanh(embed) computed once on [B,16]
    # (gather + tanh in plain JAX), broadcast over T and zero-padded to 128 lanes.
    clipped = jnp.clip(temperature, 0, TEMP_VOCAB - 1)
    te = params["temp_table"][clipped]                                   # [B, 16]
    tmult = 1.0 + 0.1 * jnp.tanh(te)                                     # [B, 16]
    tmult = jnp.broadcast_to(tmult[:, None, :], (B, T, TEMP_DIM)).reshape(BT, TEMP_DIM)
    tmult = jnp.pad(tmult, ((0, BT_pad - BT), (0, TEMP_PAD - TEMP_DIM)))
    tmult = tmult.astype(jnp.float32)

    flat = prepare_kernel_params(params)

    def row_spec(n):
        return pl.BlockSpec((row_block, n), lambda i: (i, 0))

    def full_spec(shape):
        return pl.BlockSpec(shape, lambda i: (0,) * len(shape))

    in_specs = [row_spec(D), row_spec(TEMP_PAD)] + [full_spec(p.shape) for p in flat]
    out_specs = [row_spec(LATENT_PAD), row_spec(EIG_PAD),
                 row_spec(EIG_PAD), row_spec(CATH_PAD)]
    out_shape = [jax.ShapeDtypeStruct((BT_pad, LATENT_PAD), jnp.float32),
                 jax.ShapeDtypeStruct((BT_pad, EIG_PAD), jnp.float32),
                 jax.ShapeDtypeStruct((BT_pad, EIG_PAD), jnp.float32),
                 jax.ShapeDtypeStruct((BT_pad, CATH_PAD), jnp.float32)]

    latent, eig, cls, cath = pl.pallas_call(
        eigen_kernel,
        out_shape=out_shape,
        grid_spec=pltpu.PrefetchScalarGridSpec(
            num_scalar_prefetch=0,
            grid=(BT_pad // row_block,),
            in_specs=in_specs,
            out_specs=out_specs,
        ),
        compiler_params=pltpu.CompilerParams(
            dimension_semantics=("parallel",),   # rows independent -> v7x 2-TC split
            vmem_limit_bytes=40 << 20,           # headroom on v7x (64 MiB physical)
        ),
    )(x_flat, tmult, *flat)

    return {
        "latent": latent[:BT, :LATENT_DIM].reshape(B, T, LATENT_DIM),
        "eigenmodes": eig[:BT, :N_EIGENMODES].reshape(B, T, N_EIGENMODES),
        "mode_classes": cls[:BT, :N_EIGENMODES].reshape(B, T, N_EIGENMODES),
        "cath_pred": cath[:BT, :CATH_OUT].reshape(B, T, CATH_OUT),
    }


def eigenmechanics_forward(x, temperature, params, *, row_block=256):
    # row_block=256 fills the MXU on v6e/v7x; adapts down for tiny inputs.
    B, T, _ = x.shape
    rb = _choose_row_block(B * T, row_block)
    return _forward_impl(x, temperature, params, rb)


def reference_forward(x, temperature, params):
    """Plain-JAX reference mirroring the kernel's numerics (bf16 matmul operands,
    f32 accumulation; LN/SiLU/tanh in f32) on the unpadded parameters."""
    (w1, b1, g1, be1, w2, b2, g2, be2, w3, b3,
     w4, b4, g4, be4, w5, b5,
     w6, b6, g6, be6, w7, b7, g7, be7, w8, b8,
     w9, b9, g9, be9, w10, b10) = params["flat"]

    def lin(h, w, b):
        return jnp.dot(h.astype(jnp.bfloat16), w.astype(jnp.bfloat16),
                       preferred_element_type=jnp.float32) + b

    B, T, D = x.shape
    h = x.reshape(B * T, D).astype(jnp.float32)
    h = _silu(_ln(lin(h, w1, b1), g1, be1))
    h = _silu(_ln(lin(h, w2, b2), g2, be2))
    latent = lin(h, w3, b3)
    te = params["temp_table"][jnp.clip(temperature, 0, TEMP_VOCAB - 1)]
    te = jnp.broadcast_to(te[:, None, :], (B, T, TEMP_DIM)).reshape(B * T, TEMP_DIM)
    latent = latent * (1.0 + 0.1 * jnp.tanh(te))
    e = _silu(_ln(lin(latent, w4, b4), g4, be4)); e = lin(e, w5, b5)
    m = _silu(_ln(lin(e, w6, b6), g6, be6))
    m = _silu(_ln(lin(m, w7, b7), g7, be7)); m = lin(m, w8, b8)
    c = _silu(_ln(lin(latent, w9, b9), g9, be9)); c = lin(c, w10, b10)
    return {
        "latent": latent.reshape(B, T, LATENT_DIM),
        "eigenmodes": e.reshape(B, T, N_EIGENMODES),
        "mode_classes": m.reshape(B, T, N_EIGENMODES),
        "cath_pred": c.reshape(B, T, CATH_OUT),
    }


if __name__ == "__main__":
    B, T = 2, 8
    key = jax.random.PRNGKey(0)
    kx, kt = jax.random.split(key)
    x = jax.random.normal(kx, (B, T, INPUT_DIM), jnp.float32)
    temperature = jnp.array([300, 450], dtype=jnp.int32)

    params = init_params(seed=0)

    out = eigenmechanics_forward(x, temperature, params)
    out = jax.block_until_ready(out)

    ref = reference_forward(x, temperature, params)
    for k in ("latent", "eigenmodes", "mode_classes", "cath_pred"):
        np.testing.assert_allclose(np.asarray(out[k]), np.asarray(ref[k]),
                                    rtol=5e-3, atol=5e-3)

    assert out["latent"].shape == (B, T, LATENT_DIM)
    assert out["eigenmodes"].shape == (B, T, N_EIGENMODES)
    assert out["mode_classes"].shape == (B, T, N_EIGENMODES)
    assert out["cath_pred"].shape == (B, T, CATH_OUT)

    print("KERNEL_OK")
</pallas_src>

<mosaic_0001>
module attributes {stable_mosaic.version = 11 : i64} {
  func.func @eigen_kernel(%arg0: i32, %arg1: memref<16x64xf32, #tpu.memory_space<vmem>>, %arg2: memref<16x128xf32, #tpu.memory_space<vmem>>, %arg3: memref<64x1024xbf16, #tpu.memory_space<vmem>>, %arg4: memref<1x1024xf32, #tpu.memory_space<vmem>>, %arg5: memref<1x1024xf32, #tpu.memory_space<vmem>>, %arg6: memref<1x1024xf32, #tpu.memory_space<vmem>>, %arg7: memref<1024x512xbf16, #tpu.memory_space<vmem>>, %arg8: memref<1x512xf32, #tpu.memory_space<vmem>>, %arg9: memref<1x512xf32, #tpu.memory_space<vmem>>, %arg10: memref<1x512xf32, #tpu.memory_space<vmem>>, %arg11: memref<512x128xbf16, #tpu.memory_space<vmem>>, %arg12: memref<1x128xf32, #tpu.memory_space<vmem>>, %arg13: memref<128x256xbf16, #tpu.memory_space<vmem>>, %arg14: memref<1x256xf32, #tpu.memory_space<vmem>>, %arg15: memref<1x256xf32, #tpu.memory_space<vmem>>, %arg16: memref<1x256xf32, #tpu.memory_space<vmem>>, %arg17: memref<256x128xbf16, #tpu.memory_space<vmem>>, %arg18: memref<1x128xf32, #tpu.memory_space<vmem>>, %arg19: memref<128x128xbf16, #tpu.memory_space<vmem>>, %arg20: memref<1x128xf32, #tpu.memory_space<vmem>>, %arg21: memref<1x128xf32, #tpu.memory_space<vmem>>, %arg22: memref<1x128xf32, #tpu.memory_space<vmem>>, %arg23: memref<128x64xbf16, #tpu.memory_space<vmem>>, %arg24: memref<1x64xf32, #tpu.memory_space<vmem>>, %arg25: memref<1x64xf32, #tpu.memory_space<vmem>>, %arg26: memref<1x64xf32, #tpu.memory_space<vmem>>, %arg27: memref<64x128xbf16, #tpu.memory_space<vmem>>, %arg28: memref<1x128xf32, #tpu.memory_space<vmem>>, %arg29: memref<128x64xbf16, #tpu.memory_space<vmem>>, %arg30: memref<1x64xf32, #tpu.memory_space<vmem>>, %arg31: memref<1x64xf32, #tpu.memory_space<vmem>>, %arg32: memref<1x64xf32, #tpu.memory_space<vmem>>, %arg33: memref<64x128xbf16, #tpu.memory_space<vmem>>, %arg34: memref<1x128xf32, #tpu.memory_space<vmem>>, %arg35: memref<16x128xf32, #tpu.memory_space<vmem>>, %arg36: memref<16x128xf32, #tpu.memory_space<vmem>>, %arg37: memref<16x128xf32, #tpu.memory_space<vmem>>, %arg38: memref<16x128xf32, #tpu.memory_space<vmem>>) attributes {dimension_semantics = [#tpu.dimension_semantics<parallel>], iteration_bounds = array<i64: 1>, scalar_prefetch = 0 : i64, scratch_operands = 0 : i64, tpu.core_type = #tpu.core_type<tc>, window_params = [{transform_indices = @transform_0, window_bounds = array<i64: 16, 64>}, {transform_indices = @transform_1, window_bounds = array<i64: 16, 128>}, {pipeline_mode = #tpu.pipeline_mode<synchronous>, transform_indices = @transform_2, window_bounds = array<i64: 64, 1024>}, {pipeline_mode = #tpu.pipeline_mode<synchronous>, transform_indices = @transform_3, window_bounds = array<i64: 1, 1024>}, {pipeline_mode = #tpu.pipeline_mode<synchronous>, transform_indices = @transform_4, window_bounds = array<i64: 1, 1024>}, {pipeline_mode = #tpu.pipeline_mode<synchronous>, transform_indices = @transform_5, window_bounds = array<i64: 1, 1024>}, {pipeline_mode = #tpu.pipeline_mode<synchronous>, transform_indices = @transform_6, window_bounds = array<i64: 1024, 512>}, {pipeline_mode = #tpu.pipeline_mode<synchronous>, transform_indices = @transform_7, window_bounds = array<i64: 1, 512>}, {pipeline_mode = #tpu.pipeline_mode<synchronous>, transform_indices = @transform_8, window_bounds = array<i64: 1, 512>}, {pipeline_mode = #tpu.pipeline_mode<synchronous>, transform_indices = @transform_9, window_bounds = array<i64: 1, 512>}, {pipeline_mode = #tpu.pipeline_mode<synchronous>, transform_indices = @transform_10, window_bounds = array<i64: 512, 128>}, {pipeline_mode = #tpu.pipeline_mode<synchronous>, transform_indices = @transform_11, window_bounds = array<i64: 1, 128>}, {pipeline_mode = #tpu.pipeline_mode<synchronous>, transform_indices = @transform_12, window_bounds = array<i64: 128, 256>}, {pipeline_mode = #tpu.pipeline_mode<synchronous>, transform_indices = @transform_13, window_bounds = array<i64: 1, 256>}, {pipeline_mode = #tpu.pipeline_mode<synchronous>, transform_indices = @transform_14, window_bounds = array<i64: 1, 256>}, {pipeline_mode = #tpu.pipeline_mode<synchronous>, transform_indices = @transform_15, window_bounds = array<i64: 1, 256>}, {pipeline_mode = #tpu.pipeline_mode<synchronous>, transform_indices = @transform_16, window_bounds = array<i64: 256, 128>}, {pipeline_mode = #tpu.pipeline_mode<synchronous>, transform_indices = @transform_17, window_bounds = array<i64: 1, 128>}, {pipeline_mode = #tpu.pipeline_mode<synchronous>, transform_indices = @transform_18, window_bounds = array<i64: 128, 128>}, {pipeline_mode = #tpu.pipeline_mode<synchronous>, transform_indices = @transform_19, window_bounds = array<i64: 1, 128>}, {pipeline_mode = #tpu.pipeline_mode<synchronous>, transform_indices = @transform_20, window_bounds = array<i64: 1, 128>}, {pipeline_mode = #tpu.pipeline_mode<synchronous>, transform_indices = @transform_21, window_bounds = array<i64: 1, 128>}, {pipeline_mode = #tpu.pipeline_mode<synchronous>, transform_indices = @transform_22, window_bounds = array<i64: 128, 64>}, {pipeline_mode = #tpu.pipeline_mode<synchronous>, transform_indices = @transform_23, window_bounds = array<i64: 1, 64>}, {pipeline_mode = #tpu.pipeline_mode<synchronous>, transform_indices = @transform_24, window_bounds = array<i64: 1, 64>}, {pipeline_mode = #tpu.pipeline_mode<synchronous>, transform_indices = @transform_25, window_bounds = array<i64: 1, 64>}, {pipeline_mode = #tpu.pipeline_mode<synchronous>, transform_indices = @transform_26, window_bounds = array<i64: 64, 128>}, {pipeline_mode = #tpu.pipeline_mode<synchronous>, transform_indices = @transform_27, window_bounds = array<i64: 1, 128>}, {pipeline_mode = #tpu.pipeline_mode<synchronous>, transform_indices = @transform_28, window_bounds = array<i64: 128, 64>}, {pipeline_mode = #tpu.pipeline_mode<synchronous>, transform_indices = @transform_29, window_bounds = array<i64: 1, 64>}, {pipeline_mode = #tpu.pipeline_mode<synchronous>, transform_indices = @transform_30, window_bounds = array<i64: 1, 64>}, {pipeline_mode = #tpu.pipeline_mode<synchronous>, transform_indices = @transform_31, window_bounds = array<i64: 1, 64>}, {pipeline_mode = #tpu.pipeline_mode<synchronous>, transform_indices = @transform_32, window_bounds = array<i64: 64, 128>}, {pipeline_mode = #tpu.pipeline_mode<synchronous>, transform_indices = @transform_33, window_bounds = array<i64: 1, 128>}, {transform_indices = @transform_34, window_bounds = array<i64: 16, 128>}, {transform_indices = @transform_35, window_bounds = array<i64: 16, 128>}, {transform_indices = @transform_36, window_bounds = array<i64: 16, 128>}, {transform_indices = @transform_37, window_bounds = array<i64: 16, 128>}]} {
    %c0 = arith.constant 0 : index
    %c0_0 = arith.constant 0 : index
    %0 = vector.load %arg1[%c0, %c0_0] : memref<16x64xf32, #tpu.memory_space<vmem>>, vector<16x64xf32>
    %1 = arith.truncf %0 : vector<16x64xf32> to vector<16x64xbf16>
    %c0_1 = arith.constant 0 : index
    %c0_2 = arith.constant 0 : index
    %2 = vector.load %arg3[%c0_1, %c0_2] : memref<64x1024xbf16, #tpu.memory_space<vmem>>, vector<64x1024xbf16>
    %cst = arith.constant dense<0.000000e+00> : vector<16x1024xf32>
    %3 = tpu.matmul %1, %2, %cst {dimension_numbers = #tpu.dot_dimension_numbers<[1], [0], [0], [1], [0, 0, 1, 1], [], []>} : vector<16x64xbf16>, vector<64x1024xbf16>, vector<16x1024xf32> -> vector<16x1024xf32>
    %c0_3 = arith.constant 0 : index
    %c0_4 = arith.constant 0 : index
    %4 = vector.load %arg4[%c0_3, %c0_4] : memref<1x1024xf32, #tpu.memory_space<vmem>>, vector<1x1024xf32>
    %5 = vector.broadcast %4 : vector<1x1024xf32> to vector<16x1024xf32>
    %6 = arith.addf %3, %5 : vector<16x1024xf32>
    %c0_5 = arith.constant 0 : index
    %c0_6 = arith.constant 0 : index
    %7 = vector.load %arg5[%c0_5, %c0_6] : memref<1x1024xf32, #tpu.memory_space<vmem>>, vector<1x1024xf32>
    %c0_7 = arith.constant 0 : index
    %c0_8 = arith.constant 0 : index
    %8 = vector.load %arg6[%c0_7, %c0_8] : memref<1x1024xf32, #tpu.memory_space<vmem>>, vector<1x1024xf32>
    %cst_9 = arith.constant dense<0.000000e+00> : vector<16xf32>
    %9 = vector.multi_reduction <add>, %6, %cst_9 [1] : vector<16x1024xf32> to vector<16xf32>
    %10 = vector.shape_cast %9 : vector<16xf32> to vector<16x1xf32>
    %cst_10 = arith.constant 1.024000e+03 : f32
    %11 = vector.broadcast %cst_10 : f32 to vector<16x1xf32>
    %12 = arith.divf %10, %11 : vector<16x1xf32>
    %13 = vector.broadcast %12 : vector<16x1xf32> to vector<16x1024xf32>
    %14 = arith.subf %6, %13 : vector<16x1024xf32>
    %15 = arith.mulf %14, %14 : vector<16x1024xf32>
    %cst_11 = arith.constant dense<0.000000e+00> : vector<16xf32>
    %16 = vector.multi_reduction <add>, %15, %cst_11 [1] : vector<16x1024xf32> to vector<16xf32>
    %17 = vector.shape_cast %16 : vector<16xf32> to vector<16x1xf32>
    %cst_12 = arith.constant 1.024000e+03 : f32
    %18 = vector.broadcast %cst_12 : f32 to vector<16x1xf32>
    %19 = arith.divf %17, %18 : vector<16x1xf32>
    %20 = vector.broadcast %12 : vector<16x1xf32> to vector<16x1024xf32>
    %21 = arith.subf %6, %20 : vector<16x1024xf32>
    %cst_13 = arith.constant 9.99999974E-6 : f32
    %22 = vector.broadcast %cst_13 : f32 to vector<16x1xf32>
    %23 = arith.addf %19, %22 : vector<16x1xf32>
    %24 = math.rsqrt %23 : vector<16x1xf32>
    %25 = vector.broadcast %24 : vector<16x1xf32> to vector<16x1024xf32>
    %26 = arith.mulf %21, %25 : vector<16x1024xf32>
    %27 = vector.broadcast %7 : vector<1x1024xf32> to vector<16x1024xf32>
    %28 = arith.mulf %26, %27 : vector<16x1024xf32>
    %29 = vector.broadcast %8 : vector<1x1024xf32> to vector<16x1024xf32>
    %30 = arith.addf %28, %29 : vector<16x1024xf32>
    %31 = arith.negf %30 : vector<16x1024xf32>
    %32 = math.exp %31 : vector<16x1024xf32>
    %cst_14 = arith.constant 1.000000e+00 : f32
    %33 = vector.broadcast %cst_14 : f32 to vector<16x1024xf32>
    %34 = arith.addf %33, %32 : vector<16x1024xf32>
    %35 = arith.divf %33, %34 : vector<16x1024xf32>
    %36 = arith.mulf %30, %35 : vector<16x1024xf32>
    %37 = arith.truncf %36 : vector<16x1024xf32> to vector<16x1024xbf16>
    %c0_15 = arith.constant 0 : index
    %c0_16 = arith.constant 0 : index
    %38 = vector.load %arg7[%c0_15, %c0_16] : memref<1024x512xbf16, #tpu.memory_space<vmem>>, vector<1024x512xbf16>
    %cst_17 = arith.constant dense<0.000000e+00> : vector<16x512xf32>
    %39 = tpu.matmul %37, %38, %cst_17 {dimension_numbers = #tpu.dot_dimension_numbers<[1], [0], [0], [1], [0, 0, 1, 1], [], []>} : vector<16x1024xbf16>, vector<1024x512xbf16>, vector<16x512xf32> -> vector<16x512xf32>
    %c0_18 = arith.constant 0 : index
    %c0_19 = arith.constant 0 : index
    %40 = vector.load %arg8[%c0_18, %c0_19] : memref<1x512xf32, #tpu.memory_space<vmem>>, vector<1x512xf32>
    %41 = vector.broadcast %40 : vector<1x512xf32> to vector<16x512xf32>
    %42 = arith.addf %39, %41 : vector<16x512xf32>
    %c0_20 = arith.constant 0 : index
    %c0_21 = arith.constant 0 : index
    %43 = vector.load %arg9[%c0_20, %c0_21] : memref<1x512xf32, #tpu.memory_space<vmem>>, vector<1x512xf32>
    %c0_22 = arith.constant 0 : index
    %c0_23 = arith.constant 0 : index
    %44 = vector.load %arg10[%c0_22, %c0_23] : memref<1x512xf32, #tpu.memory_space<vmem>>, vector<1x512xf32>
    %cst_24 = arith.constant dense<0.000000e+00> : vector<16xf32>
    %45 = vector.multi_reduction <add>, %42, %cst_24 [1] : vector<16x512xf32> to vector<16xf32>
    %46 = vector.shape_cast %45 : vector<16xf32> to vector<16x1xf32>
    %cst_25 = arith.constant 5.120000e+02 : f32
    %47 = vector.broadcast %cst_25 : f32 to vector<16x1xf32>
    %48 = arith.divf %46, %47 : vector<16x1xf32>
    %49 = vector.broadcast %48 : vector<16x1xf32> to vector<16x512xf32>
    %50 = arith.subf %42, %49 : vector<16x512xf32>
    %51 = arith.mulf %50, %50 : vector<16x512xf32>
    %cst_26 = arith.constant dense<0.000000e+00> : vector<16xf32>
    %52 = vector.multi_reduction <add>, %51, %cst_26 [1] : vector<16x512xf32> to vector<16xf32>
    %53 = vector.shape_cast %52 : vector<16xf32> to vector<16x1xf32>
    %cst_27 = arith.constant 5.120000e+02 : f32
    %54 = vector.broadcast %cst_27 : f32 to vector<16x1xf32>
    %55 = arith.divf %53, %54 : vector<16x1xf32>
    %56 = vector.broadcast %48 : vector<16x1xf32> to vector<16x512xf32>
    %57 = arith.subf %42, %56 : vector<16x512xf32>
    %cst_28 = arith.constant 9.99999974E-6 : f32
    %58 = vector.broadcast %cst_28 : f32 to vector<16x1xf32>
    %59 = arith.addf %55, %58 : vector<16x1xf32>
    %60 = math.rsqrt %59 : vector<16x1xf32>
    %61 = vector.broadcast %60 : vector<16x1xf32> to vector<16x512xf32>
    %62 = arith.mulf %57, %61 : vector<16x512xf32>
    %63 = vector.broadcast %43 : vector<1x512xf32> to vector<16x512xf32>
    %64 = arith.mulf %62, %63 : vector<16x512xf32>
    %65 = vector.broadcast %44 : vector<1x512xf32> to vector<16x512xf32>
    %66 = arith.addf %64, %65 : vector<16x512xf32>
    %67 = arith.negf %66 : vector<16x512xf32>
    %68 = math.exp %67 : vector<16x512xf32>
    %cst_29 = arith.constant 1.000000e+00 : f32
    %69 = vector.broadcast %cst_29 : f32 to vector<16x512xf32>
    %70 = arith.addf %69, %68 : vector<16x512xf32>
    %71 = arith.divf %69, %70 : vector<16x512xf32>
    %72 = arith.mulf %66, %71 : vector<16x512xf32>
    %73 = arith.truncf %72 : vector<16x512xf32> to vector<16x512xbf16>
    %c0_30 = arith.constant 0 : index
    %c0_31 = arith.constant 0 : index
    %74 = vector.load %arg11[%c0_30, %c0_31] : memref<512x128xbf16, #tpu.memory_space<vmem>>, vector<512x128xbf16>
    %cst_32 = arith.constant dense<0.000000e+00> : vector<16x128xf32>
    %75 = tpu.matmul %73, %74, %cst_32 {dimension_numbers = #tpu.dot_dimension_numbers<[1], [0], [0], [1], [0, 0, 1, 1], [], []>} : vector<16x512xbf16>, vector<512x128xbf16>, vector<16x128xf32> -> vector<16x128xf32>
    %c0_33 = arith.constant 0 : index
    %c0_34 = arith.constant 0 : index
    %76 = vector.load %arg12[%c0_33, %c0_34] : memref<1x128xf32, #tpu.memory_space<vmem>>, vector<1x128xf32>
    %77 = vector.broadcast %76 : vector<1x128xf32> to vector<16x128xf32>
    %78 = arith.addf %75, %77 : vector<16x128xf32>
    %c0_35 = arith.constant 0 : index
    %c0_36 = arith.constant 0 : index
    %79 = vector.load %arg2[%c0_35, %c0_36] : memref<16x128xf32, #tpu.memory_space<vmem>>, vector<16x128xf32>
    %80 = arith.mulf %78, %79 : vector<16x128xf32>
    %c0_37 = arith.constant 0 : index
    %c0_38 = arith.constant 0 : index
    %81 = vector.load %arg35[%c0_37, %c0_38] : memref<16x128xf32, #tpu.memory_space<vmem>>, vector<16x128xf32>
    tpu.vector_store %arg35[%c0_37, %c0_38], %80 {strides = array<i32>} : memref<16x128xf32, #tpu.memory_space<vmem>>, vector<16x128xf32>,
    %82 = arith.truncf %80 : vector<16x128xf32> to vector<16x128xbf16>
    %c0_39 = arith.constant 0 : index
    %c0_40 = arith.constant 0 : index
    %83 = vector.load %arg13[%c0_39, %c0_40] : memref<128x256xbf16, #tpu.memory_space<vmem>>, vector<128x256xbf16>
    %cst_41 = arith.constant dense<0.000000e+00> : vector<16x256xf32>
    %84 = tpu.matmul %82, %83, %cst_41 {dimension_numbers = #tpu.dot_dimension_numbers<[1], [0], [0], [1], [0, 0, 1, 1], [], []>} : vector<16x128xbf16>, vector<128x256xbf16>, vector<16x256xf32> -> vector<16x256xf32>
    %c0_42 = arith.constant 0 : index
    %c0_43 = arith.constant 0 : index
    %85 = vector.load %arg14[%c0_42, %c0_43] : memref<1x256xf32, #tpu.memory_space<vmem>>, vector<1x256xf32>
    %86 = vector.broadcast %85 : vector<1x256xf32> to vector<16x256xf32>
    %87 = arith.addf %84, %86 : vector<16x256xf32>
    %c0_44 = arith.constant 0 : index
    %c0_45 = arith.constant 0 : index
    %88 = vector.load %arg15[%c0_44, %c0_45] : memref<1x256xf32, #tpu.memory_space<vmem>>, vector<1x256xf32>
    %c0_46 = arith.constant 0 : index
    %c0_47 = arith.constant 0 : index
    %89 = vector.load %arg16[%c0_46, %c0_47] : memref<1x256xf32, #tpu.memory_space<vmem>>, vector<1x256xf32>
    %cst_48 = arith.constant dense<0.000000e+00> : vector<16xf32>
    %90 = vector.multi_reduction <add>, %87, %cst_48 [1] : vector<16x256xf32> to vector<16xf32>
    %91 = vector.shape_cast %90 : vector<16xf32> to vector<16x1xf32>
    %cst_49 = arith.constant 2.560000e+02 : f32
    %92 = vector.broadcast %cst_49 : f32 to vector<16x1xf32>
    %93 = arith.divf %91, %92 : vector<16x1xf32>
    %94 = vector.broadcast %93 : vector<16x1xf32> to vector<16x256xf32>
    %95 = arith.subf %87, %94 : vector<16x256xf32>
    %96 = arith.mulf %95, %95 : vector<16x256xf32>
    %cst_50 = arith.constant dense<0.000000e+00> : vector<16xf32>
    %97 = vector.multi_reduction <add>, %96, %cst_50 [1] : vector<16x256xf32> to vector<16xf32>
    %98 = vector.shape_cast %97 : vector<16xf32> to vector<16x1xf32>
    %cst_51 = arith.constant 2.560000e+02 : f32
    %99 = vector.broadcast %cst_51 : f32 to vector<16x1xf32>
    %100 = arith.divf %98, %99 : vector<16x1xf32>
    %101 = vector.broadcast %93 : vector<16x1xf32> to vector<16x256xf32>
    %102 = arith.subf %87, %101 : vector<16x256xf32>
    %cst_52 = arith.constant 9.99999974E-6 : f32
    %103 = vector.broadcast %cst_52 : f32 to vector<16x1xf32>
    %104 = arith.addf %100, %103 : vector<16x1xf32>
    %105 = math.rsqrt %104 : vector<16x1xf32>
    %106 = vector.broadcast %105 : vector<16x1xf32> to vector<16x256xf32>
    %107 = arith.mulf %102, %106 : vector<16x256xf32>
    %108 = vector.broadcast %88 : vector<1x256xf32> to vector<16x256xf32>
    %109 = arith.mulf %107, %108 : vector<16x256xf32>
    %110 = vector.broadcast %89 : vector<1x256xf32> to vector<16x256xf32>
    %111 = arith.addf %109, %110 : vector<16x256xf32>
    %112 = arith.negf %111 : vector<16x256xf32>
    %113 = math.exp %112 : vector<16x256xf32>
    %cst_53 = arith.constant 1.000000e+00 : f32
    %114 = vector.broadcast %cst_53 : f32 to vector<16x256xf32>
    %115 = arith.addf %114, %113 : vector<16x256xf32>
    %116 = arith.divf %114, %115 : vector<16x256xf32>
    %117 = arith.mulf %111, %116 : vector<16x256xf32>
    %118 = arith.truncf %117 : vector<16x256xf32> to vector<16x256xbf16>
    %c0_54 = arith.constant 0 : index
    %c0_55 = arith.constant 0 : index
    %119 = vector.load %arg17[%c0_54, %c0_55] : memref<256x128xbf16, #tpu.memory_space<vmem>>, vector<256x128xbf16>
    %cst_56 = arith.constant dense<0.000000e+00> : vector<16x128xf32>
    %120 = tpu.matmul %118, %119, %cst_56 {dimension_numbers = #tpu.dot_dimension_numbers<[1], [0], [0], [1], [0, 0, 1, 1], [], []>} : vector<16x256xbf16>, vector<256x128xbf16>, vector<16x128xf32> -> vector<16x128xf32>
    %c0_57 = arith.constant 0 : index
    %c0_58 = arith.constant 0 : index
    %121 = vector.load %arg18[%c0_57, %c0_58] : memref<1x128xf32, #tpu.memory_space<vmem>>, vector<1x128xf32>
    %122 = vector.broadcast %121 : vector<1x128xf32> to vector<16x128xf32>
    %123 = arith.addf %120, %122 : vector<16x128xf32>
    %c0_59 = arith.constant 0 : index
    %c0_60 = arith.constant 0 : index
    %124 = vector.load %arg36[%c0_59, %c0_60] : memref<16x128xf32, #tpu.memory_space<vmem>>, vector<16x128xf32>
    tpu.vector_store %arg36[%c0_59, %c0_60], %123 {strides = array<i32>} : memref<16x128xf32, #tpu.memory_space<vmem>>, vector<16x128xf32>,
    %125 = arith.truncf %123 : vector<16x128xf32> to vector<16x128xbf16>
    %c0_61 = arith.constant 0 : index
    %c0_62 = arith.constant 0 : index
    %126 = vector.load %arg19[%c0_61, %c0_62] : memref<128x128xbf16, #tpu.memory_space<vmem>>, vector<128x128xbf16>
    %cst_63 = arith.constant dense<0.000000e+00> : vector<16x128xf32>
    %127 = tpu.matmul %125, %126, %cst_63 {dimension_numbers = #tpu.dot_dimension_numbers<[1], [0], [0], [1], [0, 0, 1, 1], [], []>} : vector<16x128xbf16>, vector<128x128xbf16>, vector<16x128xf32> -> vector<16x128xf32>
    %c0_64 = arith.constant 0 : index
    %c0_65 = arith.constant 0 : index
    %128 = vector.load %arg20[%c0_64, %c0_65] : memref<1x128xf32, #tpu.memory_space<vmem>>, vector<1x128xf32>
    %129 = vector.broadcast %128 : vector<1x128xf32> to vector<16x128xf32>
    %130 = arith.addf %127, %129 : vector<16x128xf32>
    %c0_66 = arith.constant 0 : index
    %c0_67 = arith.constant 0 : index
    %131 = vector.load %arg21[%c0_66, %c0_67] : memref<1x128xf32, #tpu.memory_space<vmem>>, vector<1x128xf32>
    %c0_68 = arith.constant 0 : index
    %c0_69 = arith.constant 0 : index
    %132 = vector.load %arg22[%c0_68, %c0_69] : memref<1x128xf32, #tpu.memory_space<vmem>>, vector<1x128xf32>
    %cst_70 = arith.constant dense<0.000000e+00> : vector<16xf32>
    %133 = vector.multi_reduction <add>, %130, %cst_70 [1] : vector<16x128xf32> to vector<16xf32>
    %134 = vector.shape_cast %133 : vector<16xf32> to vector<16x1xf32>
    %cst_71 = arith.constant 1.280000e+02 : f32
    %135 = vector.broadcast %cst_71 : f32 to vector<16x1xf32>
    %136 = arith.divf %134, %135 : vector<16x1xf32>
    %137 = vector.broadcast %136 : vector<16x1xf32> to vector<16x128xf32>
    %138 = arith.subf %130, %137 : vector<16x128xf32>
    %139 = arith.mulf %138, %138 : vector<16x128xf32>
    %cst_72 = arith.constant dense<0.000000e+00> : vector<16xf32>
    %140 = vector.multi_reduction <add>, %139, %cst_72 [1] : vector<16x128xf32> to vector<16xf32>
    %141 = vector.shape_cast %140 : vector<16xf32> to vector<16x1xf32>
    %cst_73 = arith.constant 1.280000e+02 : f32
    %142 = vector.broadcast %cst_73 : f32 to vector<16x1xf32>
    %143 = arith.divf %141, %142 : vector<16x1xf32>
    %144 = vector.broadcast %136 : vector<16x1xf32> to vector<16x128xf32>
    %145 = arith.subf %130, %144 : vector<16x128xf32>
    %cst_74 = arith.constant 9.99999974E-6 : f32
    %146 = vector.broadcast %cst_74 : f32 to vector<16x1xf32>
    %147 = arith.addf %143, %146 : vector<16x1xf32>
    %148 = math.rsqrt %147 : vector<16x1xf32>
    %149 = vector.broadcast %148 : vector<16x1xf32> to vector<16x128xf32>
    %150 = arith.mulf %145, %149 : vector<16x128xf32>
    %151 = vector.broadcast %131 : vector<1x128xf32> to vector<16x128xf32>
    %152 = arith.mulf %150, %151 : vector<16x128xf32>
    %153 = vector.broadcast %132 : vector<1x128xf32> to vector<16x128xf32>
    %154 = arith.addf %152, %153 : vector<16x128xf32>
    %155 = arith.negf %154 : vector<16x128xf32>
    %156 = math.exp %155 : vector<16x128xf32>
    %cst_75 = arith.constant 1.000000e+00 : f32
    %157 = vector.broadcast %cst_75 : f32 to vector<16x128xf32>
    %158 = arith.addf %157, %156 : vector<16x128xf32>
    %159 = arith.divf %157, %158 : vector<16x128xf32>
    %160 = arith.mulf %154, %159 : vector<16x128xf32>
    %161 = arith.truncf %160 : vector<16x128xf32> to vector<16x128xbf16>
    %c0_76 = arith.constant 0 : index
    %c0_77 = arith.constant 0 : index
    %162 = vector.load %arg23[%c0_76, %c0_77] : memref<128x64xbf16, #tpu.memory_space<vmem>>, vector<128x64xbf16>
    %cst_78 = arith.constant dense<0.000000e+00> : vector<16x64xf32>
    %163 = tpu.matmul %161, %162, %cst_78 {dimension_numbers = #tpu.dot_dimension_numbers<[1], [0], [0], [1], [0, 0, 1, 1], [], []>} : vector<16x128xbf16>, vector<128x64xbf16>, vector<16x64xf32> -> vector<16x64xf32>
    %c0_79 = arith.constant 0 : index
    %c0_80 = arith.constant 0 : index
    %164 = vector.load %arg24[%c0_79, %c0_80] : memref<1x64xf32, #tpu.memory_space<vmem>>, vector<1x64xf32>
    %165 = vector.broadcast %164 : vector<1x64xf32> to vector<16x64xf32>
    %166 = arith.addf %163, %165 : vector<16x64xf32>
    %c0_81 = arith.constant 0 : index
    %c0_82 = arith.constant 0 : index
    %167 = vector.load %arg25[%c0_81, %c0_82] : memref<1x64xf32, #tpu.memory_space<vmem>>, vector<1x64xf32>
    %c0_83 = arith.constant 0 : index
    %c0_84 = arith.constant 0 : index
    %168 = vector.load %arg26[%c0_83, %c0_84] : memref<1x64xf32, #tpu.memory_space<vmem>>, vector<1x64xf32>
    %cst_85 = arith.constant dense<0.000000e+00> : vector<16xf32>
    %169 = vector.multi_reduction <add>, %166, %cst_85 [1] : vector<16x64xf32> to vector<16xf32>
    %170 = vector.shape_cast %169 : vector<16xf32> to vector<16x1xf32>
    %cst_86 = arith.constant 6.400000e+01 : f32
    %171 = vector.broadcast %cst_86 : f32 to vector<16x1xf32>
    %172 = arith.divf %170, %171 : vector<16x1xf32>
    %173 = vector.broadcast %172 : vector<16x1xf32> to vector<16x64xf32>
    %174 = arith.subf %166, %173 : vector<16x64xf32>
    %175 = arith.mulf %174, %174 : vector<16x64xf32>
    %cst_87 = arith.constant dense<0.000000e+00> : vector<16xf32>
    %176 = vector.multi_reduction <add>, %175, %cst_87 [1] : vector<16x64xf32> to vector<16xf32>
    %177 = vector.shape_cast %176 : vector<16xf32> to vector<16x1xf32>
    %cst_88 = arith.constant 6.400000e+01 : f32
    %178 = vector.broadcast %cst_88 : f32 to vector<16x1xf32>
    %179 = arith.divf %177, %178 : vector<16x1xf32>
    %180 = vector.broadcast %172 : vector<16x1xf32> to vector<16x64xf32>
    %181 = arith.subf %166, %180 : vector<16x64xf32>
    %cst_89 = arith.constant 9.99999974E-6 : f32
    %182 = vector.broadcast %cst_89 : f32 to vector<16x1xf32>
    %183 = arith.addf %179, %182 : vector<16x1xf32>
    %184 = math.rsqrt %183 : vector<16x1xf32>
    %185 = vector.broadcast %184 : vector<16x1xf32> to vector<16x64xf32>
    %186 = arith.mulf %181, %185 : vector<16x64xf32>
    %187 = vector.broadcast %167 : vector<1x64xf32> to vector<16x64xf32>
    %188 = arith.mulf %186, %187 : vector<16x64xf32>
    %189 = vector.broadcast %168 : vector<1x64xf32> to vector<16x64xf32>
    %190 = arith.addf %188, %189 : vector<16x64xf32>
    %191 = arith.negf %190 : vector<16x64xf32>
    %192 = math.exp %191 : vector<16x64xf32>
    %cst_90 = arith.constant 1.000000e+00 : f32
    %193 = vector.broadcast %cst_90 : f32 to vector<16x64xf32>
    %194 = arith.addf %193, %192 : vector<16x64xf32>
    %195 = arith.divf %193, %194 : vector<16x64xf32>
    %196 = arith.mulf %190, %195 : vector<16x64xf32>
    %197 = arith.truncf %196 : vector<16x64xf32> to vector<16x64xbf16>
    %c0_91 = arith.constant 0 : index
    %c0_92 = arith.constant 0 : index
    %198 = vector.load %arg27[%c0_91, %c0_92] : memref<64x128xbf16, #tpu.memory_space<vmem>>, vector<64x128xbf16>
    %cst_93 = arith.constant dense<0.000000e+00> : vector<16x128xf32>
    %199 = tpu.matmul %197, %198, %cst_93 {dimension_numbers = #tpu.dot_dimension_numbers<[1], [0], [0], [1], [0, 0, 1, 1], [], []>} : vector<16x64xbf16>, vector<64x128xbf16>, vector<16x128xf32> -> vector<16x128xf32>
    %c0_94 = arith.constant 0 : index
    %c0_95 = arith.constant 0 : index
    %200 = vector.load %arg28[%c0_94, %c0_95] : memref<1x128xf32, #tpu.memory_space<vmem>>, vector<1x128xf32>
    %201 = vector.broadcast %200 : vector<1x128xf32> to vector<16x128xf32>
    %202 = arith.addf %199, %201 : vector<16x128xf32>
    %c0_96 = arith.constant 0 : index
    %c0_97 = arith.constant 0 : index
    %203 = vector.load %arg37[%c0_96, %c0_97] : memref<16x128xf32, #tpu.memory_space<vmem>>, vector<16x128xf32>
    tpu.vector_store %arg37[%c0_96, %c0_97], %202 {strides = array<i32>} : memref<16x128xf32, #tpu.memory_space<vmem>>, vector<16x128xf32>,
    %204 = arith.truncf %80 : vector<16x128xf32> to vector<16x128xbf16>
    %c0_98 = arith.constant 0 : index
    %c0_99 = arith.constant 0 : index
    %205 = vector.load %arg29[%c0_98, %c0_99] : memref<128x64xbf16, #tpu.memory_space<vmem>>, vector<128x64xbf16>
    %cst_100 = arith.constant dense<0.000000e+00> : vector<16x64xf32>
    %206 = tpu.matmul %204, %205, %cst_100 {dimension_numbers = #tpu.dot_dimension_numbers<[1], [0], [0], [1], [0, 0, 1, 1], [], []>} : vector<16x128xbf16>, vector<128x64xbf16>, vector<16x64xf32> -> vector<16x64xf32>
    %c0_101 = arith.constant 0 : index
    %c0_102 = arith.constant 0 : index
    %207 = vector.load %arg30[%c0_101, %c0_102] : memref<1x64xf32, #tpu.memory_space<vmem>>, vector<1x64xf32>
    %208 = vector.broadcast %207 : vector<1x64xf32> to vector<16x64xf32>
    %209 = arith.addf %206, %208 : vector<16x64xf32>
    %c0_103 = arith.constant 0 : index
    %c0_104 = arith.constant 0 : index
    %210 = vector.load %arg31[%c0_103, %c0_104] : memref<1x64xf32, #tpu.memory_space<vmem>>, vector<1x64xf32>
    %c0_105 = arith.constant 0 : index
    %c0_106 = arith.constant 0 : index
    %211 = vector.load %arg32[%c0_105, %c0_106] : memref<1x64xf32, #tpu.memory_space<vmem>>, vector<1x64xf32>
    %cst_107 = arith.constant dense<0.000000e+00> : vector<16xf32>
    %212 = vector.multi_reduction <add>, %209, %cst_107 [1] : vector<16x64xf32> to vector<16xf32>
    %213 = vector.shape_cast %212 : vector<16xf32> to vector<16x1xf32>
    %cst_108 = arith.constant 6.400000e+01 : f32
    %214 = vector.broadcast %cst_108 : f32 to vector<16x1xf32>
    %215 = arith.divf %213, %214 : vector<16x1xf32>
    %216 = vector.broadcast %215 : vector<16x1xf32> to vector<16x64xf32>
    %217 = arith.subf %209, %216 : vector<16x64xf32>
    %218 = arith.mulf %217, %217 : vector<16x64xf32>
    %cst_109 = arith.constant dense<0.000000e+00> : vector<16xf32>
    %219 = vector.multi_reduction <add>, %218, %cst_109 [1] : vector<16x64xf32> to vector<16xf32>
    %220 = vector.shape_cast %219 : vector<16xf32> to vector<16x1xf32>
    %cst_110 = arith.constant 6.400000e+01 : f32
    %221 = vector.broadcast %cst_110 : f32 to vector<16x1xf32>
    %222 = arith.divf %220, %221 : vector<16x1xf32>
    %223 = vector.broadcast %215 : vector<16x1xf32> to vector<16x64xf32>
    %224 = arith.subf %209, %223 : vector<16x64xf32>
    %cst_111 = arith.constant 9.99999974E-6 : f32
    %225 = vector.broadcast %cst_111 : f32 to vector<16x1xf32>
    %226 = arith.addf %222, %225 : vector<16x1xf32>
    %227 = math.rsqrt %226 : vector<16x1xf32>
    %228 = vector.broadcast %227 : vector<16x1xf32> to vector<16x64xf32>
    %229 = arith.mulf %224, %228 : vector<16x64xf32>
    %230 = vector.broadcast %210 : vector<1x64xf32> to vector<16x64xf32>
    %231 = arith.mulf %229, %230 : vector<16x64xf32>
    %232 = vector.broadcast %211 : vector<1x64xf32> to vector<16x64xf32>
    %233 = arith.addf %231, %232 : vector<16x64xf32>
    %234 = arith.negf %233 : vector<16x64xf32>
    %235 = math.exp %234 : vector<16x64xf32>
    %cst_112 = arith.constant 1.000000e+00 : f32
    %236 = vector.broadcast %cst_112 : f32 to vector<16x64xf32>
    %237 = arith.addf %236, %235 : vector<16x64xf32>
    %238 = arith.divf %236, %237 : vector<16x64xf32>
    %239 = arith.mulf %233, %238 : vector<16x64xf32>
    %240 = arith.truncf %239 : vector<16x64xf32> to vector<16x64xbf16>
    %c0_113 = arith.constant 0 : index
    %c0_114 = arith.constant 0 : index
    %241 = vector.load %arg33[%c0_113, %c0_114] : memref<64x128xbf16, #tpu.memory_space<vmem>>, vector<64x128xbf16>
    %cst_115 = arith.constant dense<0.000000e+00> : vector<16x128xf32>
    %242 = tpu.matmul %240, %241, %cst_115 {dimension_numbers = #tpu.dot_dimension_numbers<[1], [0], [0], [1], [0, 0, 1, 1], [], []>} : vector<16x64xbf16>, vector<64x128xbf16>, vector<16x128xf32> -> vector<16x128xf32>
    %c0_116 = arith.constant 0 : index
    %c0_117 = arith.constant 0 : index
    %243 = vector.load %arg34[%c0_116, %c0_117] : memref<1x128xf32, #tpu.memory_space<vmem>>, vector<1x128xf32>
    %244 = vector.broadcast %243 : vector<1x128xf32> to vector<16x128xf32>
    %245 = arith.addf %242, %244 : vector<16x128xf32>
    %c0_118 = arith.constant 0 : index
    %c0_119 = arith.constant 0 : index
    %246 = vector.load %arg38[%c0_118, %c0_119] : memref<16x128xf32, #tpu.memory_space<vmem>>, vector<16x128xf32>
    tpu.vector_store %arg38[%c0_118, %c0_119], %245 {strides = array<i32>} : memref<16x128xf32, #tpu.memory_space<vmem>>, vector<16x128xf32>,
    return
  }
  func.func @transform_0(%arg0: i32) -> (i32, i32) {
    %c0_i32 = arith.constant 0 : i32
    %c0_i32_0 = arith.constant 0 : i32
    return %arg0, %c0_i32 : i32, i32
  }
  func.func @transform_1(%arg0: i32) -> (i32, i32) {
    %c0_i32 = arith.constant 0 : i32
    %c0_i32_0 = arith.constant 0 : i32
    return %arg0, %c0_i32 : i32, i32
  }
  func.func @transform_2(%arg0: i32) -> (i32, i32) {
    %c0_i32 = arith.constant 0 : i32
    %c0_i32_0 = arith.constant 0 : i32
    %c0_i32_1 = arith.constant 0 : i32
    return %c0_i32, %c0_i32_0 : i32, i32
  }
  func.func @transform_3(%arg0: i32) -> (i32, i32) {
    %c0_i32 = arith.constant 0 : i32
    %c0_i32_0 = arith.constant 0 : i32
    %c0_i32_1 = arith.constant 0 : i32
    return %c0_i32, %c0_i32_0 : i32, i32
  }
  func.func @transform_4(%arg0: i32) -> (i32, i32) {
    %c0_i32 = arith.constant 0 : i32
    %c0_i32_0 = arith.constant 0 : i32
    %c0_i32_1 = arith.constant 0 : i32
    return %c0_i32, %c0_i32_0 : i32, i32
  }
  func.func @transform_5(%arg0: i32) -> (i32, i32) {
    %c0_i32 = arith.constant 0 : i32
    %c0_i32_0 = arith.constant 0 : i32
    %c0_i32_1 = arith.constant 0 : i32
    return %c0_i32, %c0_i32_0 : i32, i32
  }
  func.func @transform_6(%arg0: i32) -> (i32, i32) {
    %c0_i32 = arith.constant 0 : i32
    %c0_i32_0 = arith.constant 0 : i32
    %c0_i32_1 = arith.constant 0 : i32
    return %c0_i32, %c0_i32_0 : i32, i32
  }
  func.func @transform_7(%arg0: i32) -> (i32, i32) {
    %c0_i32 = arith.constant 0 : i32
    %c0_i32_0 = arith.constant 0 : i32
    %c0_i32_1 = arith.constant 0 : i32
    return %c0_i32, %c0_i32_0 : i32, i32
  }
  func.func @transform_8(%arg0: i32) -> (i32, i32) {
    %c0_i32 = arith.constant 0 : i32
    %c0_i32_0 = arith.constant 0 : i32
    %c0_i32_1 = arith.constant 0 : i32
    return %c0_i32, %c0_i32_0 : i32, i32
  }
  func.func @transform_9(%arg0: i32) -> (i32, i32) {
    %c0_i32 = arith.constant 0 : i32
    %c0_i32_0 = arith.constant 0 : i32
    %c0_i32_1 = arith.constant 0 : i32
    return %c0_i32, %c0_i32_0 : i32, i32
  }
  func.func @transform_10(%arg0: i32) -> (i32, i32) {
    %c0_i32 = arith.constant 0 : i32
    %c0_i32_0 = arith.constant 0 : i32
    %c0_i32_1 = arith.constant 0 : i32
    return %c0_i32, %c0_i32_0 : i32, i32
  }
  func.func @transform_11(%arg0: i32) -> (i32, i32) {
    %c0_i32 = arith.constant 0 : i32
    %c0_i32_0 = arith.constant 0 : i32
    %c0_i32_1 = arith.constant 0 : i32
    return %c0_i32, %c0_i32_0 : i32, i32
  }
  func.func @transform_12(%arg0: i32) -> (i32, i32) {
    %c0_i32 = arith.constant 0 : i32
    %c0_i32_0 = arith.constant 0 : i32
    %c0_i32_1 = arith.constant 0 : i32
    return %c0_i32, %c0_i32_0 : i32, i32
  }
  func.func @transform_13(%arg0: i32) -> (i32, i32) {
    %c0_i32 = arith.constant 0 : i32
    %c0_i32_0 = arith.constant 0 : i32
    %c0_i32_1 = arith.constant 0 : i32
    return %c0_i32, %c0_i32_0 : i32, i32
  }
  func.func @transform_14(%arg0: i32) -> (i32, i32) {
    %c0_i32 = arith.constant 0 : i32
    %c0_i32_0 = arith.constant 0 : i32
    %c0_i32_1 = arith.constant 0 : i32
    return %c0_i32, %c0_i32_0 : i32, i32
  }
  func.func @transform_15(%arg0: i32) -> (i32, i32) {
    %c0_i32 = arith.constant 0 : i32
    %c0_i32_0 = arith.constant 0 : i32
    %c0_i32_1 = arith.constant 0 : i32
    return %c0_i32, %c0_i32_0 : i32, i32
  }
  func.func @transform_16(%arg0: i32) -> (i32, i32) {
    %c0_i32 = arith.constant 0 : i32
    %c0_i32_0 = arith.constant 0 : i32
    %c0_i32_1 = arith.constant 0 : i32
    return %c0_i32, %c0_i32_0 : i32, i32
  }
  func.func @transform_17(%arg0: i32) -> (i32, i32) {
    %c0_i32 = arith.constant 0 : i32
    %c0_i32_0 = arith.constant 0 : i32
    %c0_i32_1 = arith.constant 0 : i32
    return %c0_i32, %c0_i32_0 : i32, i32
  }
  func.func @transform_18(%arg0: i32) -> (i32, i32) {
    %c0_i32 = arith.constant 0 : i32
    %c0_i32_0 = arith.constant 0 : i32
    %c0_i32_1 = arith.constant 0 : i32
    return %c0_i32, %c0_i32_0 : i32, i32
  }
  func.func @transform_19(%arg0: i32) -> (i32, i32) {
    %c0_i32 = arith.constant 0 : i32
    %c0_i32_0 = arith.constant 0 : i32
    %c0_i32_1 = arith.constant 0 : i32
    return %c0_i32, %c0_i32_0 : i32, i32
  }
  func.func @transform_20(%arg0: i32) -> (i32, i32) {
    %c0_i32 = arith.constant 0 : i32
    %c0_i32_0 = arith.constant 0 : i32
    %c0_i32_1 = arith.constant 0 : i32
    return %c0_i32, %c0_i32_0 : i32, i32
  }
  func.func @transform_21(%arg0: i32) -> (i32, i32) {
    %c0_i32 = arith.constant 0 : i32
    %c0_i32_0 = arith.constant 0 : i32
    %c0_i32_1 = arith.constant 0 : i32
    return %c0_i32, %c0_i32_0 : i32, i32
  }
  func.func @transform_22(%arg0: i32) -> (i32, i32) {
    %c0_i32 = arith.constant 0 : i32
    %c0_i32_0 = arith.constant 0 : i32
    %c0_i32_1 = arith.constant 0 : i32
    return %c0_i32, %c0_i32_0 : i32, i32
  }
  func.func @transform_23(%arg0: i32) -> (i32, i32) {
    %c0_i32 = arith.constant 0 : i32
    %c0_i32_0 = arith.constant 0 : i32
    %c0_i32_1 = arith.constant 0 : i32
    return %c0_i32, %c0_i32_0 : i32, i32
  }
  func.func @transform_24(%arg0: i32) -> (i32, i32) {
    %c0_i32 = arith.constant 0 : i32
    %c0_i32_0 = arith.constant 0 : i32
    %c0_i32_1 = arith.constant 0 : i32
    return %c0_i32, %c0_i32_0 : i32, i32
  }
  func.func @transform_25(%arg0: i32) -> (i32, i32) {
    %c0_i32 = arith.constant 0 : i32
    %c0_i32_0 = arith.constant 0 : i32
    %c0_i32_1 = arith.constant 0 : i32
    return %c0_i32, %c0_i32_0 : i32, i32
  }
  func.func @transform_26(%arg0: i32) -> (i32, i32) {
    %c0_i32 = arith.constant 0 : i32
    %c0_i32_0 = arith.constant 0 : i32
    %c0_i32_1 = arith.constant 0 : i32
    return %c0_i32, %c0_i32_0 : i32, i32
  }
  func.func @transform_27(%arg0: i32) -> (i32, i32) {
    %c0_i32 = arith.constant 0 : i32
    %c0_i32_0 = arith.constant 0 : i32
    %c0_i32_1 = arith.constant 0 : i32
    return %c0_i32, %c0_i32_0 : i32, i32
  }
  func.func @transform_28(%arg0: i32) -> (i32, i32) {
    %c0_i32 = arith.constant 0 : i32
    %c0_i32_0 = arith.constant 0 : i32
    %c0_i32_1 = arith.constant 0 : i32
    return %c0_i32, %c0_i32_0 : i32, i32
  }
  func.func @transform_29(%arg0: i32) -> (i32, i32) {
    %c0_i32 = arith.constant 0 : i32
    %c0_i32_0 = arith.constant 0 : i32
    %c0_i32_1 = arith.constant 0 : i32
    return %c0_i32, %c0_i32_0 : i32, i32
  }
  func.func @transform_30(%arg0: i32) -> (i32, i32) {
    %c0_i32 = arith.constant 0 : i32
    %c0_i32_0 = arith.constant 0 : i32
    %c0_i32_1 = arith.constant 0 : i32
    return %c0_i32, %c0_i32_0 : i32, i32
  }
  func.func @transform_31(%arg0: i32) -> (i32, i32) {
    %c0_i32 = arith.constant 0 : i32
    %c0_i32_0 = arith.constant 0 : i32
    %c0_i32_1 = arith.constant 0 : i32
    return %c0_i32, %c0_i32_0 : i32, i32
  }
  func.func @transform_32(%arg0: i32) -> (i32, i32) {
    %c0_i32 = arith.constant 0 : i32
    %c0_i32_0 = arith.constant 0 : i32
    %c0_i32_1 = arith.constant 0 : i32
    return %c0_i32, %c0_i32_0 : i32, i32
  }
  func.func @transform_33(%arg0: i32) -> (i32, i32) {
    %c0_i32 = arith.constant 0 : i32
    %c0_i32_0 = arith.constant 0 : i32
    %c0_i32_1 = arith.constant 0 : i32
    return %c0_i32, %c0_i32_0 : i32, i32
  }
  func.func @transform_34(%arg0: i32) -> (i32, i32) {
    %c0_i32 = arith.constant 0 : i32
    %c0_i32_0 = arith.constant 0 : i32
    return %arg0, %c0_i32 : i32, i32
  }
  func.func @transform_35(%arg0: i32) -> (i32, i32) {
    %c0_i32 = arith.constant 0 : i32
    %c0_i32_0 = arith.constant 0 : i32
    return %arg0, %c0_i32 : i32, i32
  }
  func.func @transform_36(%arg0: i32) -> (i32, i32) {
    %c0_i32 = arith.constant 0 : i32
    %c0_i32_0 = arith.constant 0 : i32
    return %arg0, %c0_i32 : i32, i32
  }
  func.func @transform_37(%arg0: i32) -> (i32, i32) {
    %c0_i32 = arith.constant 0 : i32
    %c0_i32_0 = arith.constant 0 : i32
    return %arg0, %c0_i32 : i32, i32
  }
}

</mosaic_0001>

<bundles_post_ra>
// kernel: _forward_impl.1
= control target key start
LH: loop header
LB: loop body
LE: loop exit
PB: predicated region body
PF: predicated region fallthrough
CT: control target
= control target key end

     0   :  { %s5822_s3 = smov 2   ;;  %v5823_v0 = vmov 0   ;;  %vm387_vm0 = vcmask 523264   ;;  %s5824_s10 = smov 3   ;;  %vm5842_vm1 = vmmov 0   ;;  %s6800_s0 = inlined_call_operand.smem [shape: u32[38], index: -1, kind: input, shape index: {}] }
   0x1   :  { %s5870_s6 = sld [smem:[%s6800_s0 + %s5822_s3]]   ;;  %423 = vmatprep.mubr.bf16.mxu0 %v5823_v0  ;;  %466 = vmatprep.mubr.bf16.mxu1 %v5823_v0  ;;  %s5825_s14 = smov 6  }
   0x2   :  { %s1_s9 = sld [smem:[%s6800_s0]]   ;;  %s5826_s18 = smov 4  }
   0x3   :  { %s4443_s13 = sld [smem:[%s6800_s0 + %s5824_s10]]   ;;  %s5827_s22 = smov 5  }
   0x4   :  { %s5993_s17 = sld [smem:[%s6800_s0 + %s5825_s14]]   ;;  %s5828_s26 = smov 7  }
   0x5   :  { %s4444_s21 = sld [smem:[%s6800_s0 + %s5826_s18]]   ;;  %s5829_s30 = smov 10  }
   0x6   :  { %s4445_s25 = sld [smem:[%s6800_s0 + %s5827_s22]]   ;;  %s5830_s4 = smov 12  }
   0x7   :  { %v153_v1 = vld [vmem:[%s5870_s6] sm:$0xff]  ;;  %v154_v3 = vld [vmem:[%s5870_s6 + $0x8] sm:$0xff]  ;;  %v155_v31 = vld [vmem:[%s5870_s6 + $0x10] sm:$0xff]  ;;  %s4447_s29 = sld [smem:[%s6800_s0 + %s5828_s26]]   ;;  %s5831_s8 = smov 8  }
   0x8   :  { %v157_v2 = vld [vmem:[%s5870_s6 + $0x20] sm:$0xff]  ;;  %v158_v6 = vld [vmem:[%s5870_s6 + $0x28] sm:$0xff]  ;;  %v159_v32 = vld [vmem:[%s5870_s6 + $0x30] sm:$0xff]  ;;  %s6519_s3 = sld [smem:[%s6800_s0 + %s5829_s30]]   ;;  %s5832_s12 = smov 9  }
   0x9   :  { %v4479_v4 = vcombine.high %v153_v1, %v157_v2  ;;  %v4478_v5 = vcombine.low %v153_v1, %v157_v2  ;;  %v161_v7 = vld [vmem:[%s5870_s6 + $0x40] sm:$0xff]  ;;  %v4481_v9 = vcombine.high %v154_v3, %v158_v6  ;;  %v4480_v10 = vcombine.low %v154_v3, %v158_v6  ;;  %v162_v12 = vld [vmem:[%s5870_s6 + $0x48] sm:$0xff]  ;;  %v156_v33 = vld [vmem:[%s5870_s6 + $0x18] sm:$0xff]  ;;  %s6556_s7 = sld [smem:[%s6800_s0 + %s5830_s4]]   ;;  %s5833_s16 = smov 11  }
   0xa   :  { %v165_v8 = vld [vmem:[%s5870_s6 + $0x60] sm:$0xff]  ;;  %v166_v13 = vld [vmem:[%s5870_s6 + $0x68] sm:$0xff]  ;;  %v160_v34 = vld [vmem:[%s5870_s6 + $0x38] sm:$0xff]  ;;  %v4483_v39 = vcombine.high %v155_v31, %v159_v32  ;;  %v4482_v46 = vcombine.low %v155_v31, %v159_v32  ;;  %s4448_s11 = sld [smem:[%s6800_s0 + %s5831_s8]]   ;;  %s5834_s20 = smov 1  }
   0xb   :  { %v4487_v11 = vcombine.high %v161_v7, %v165_v8  ;;  %v169_v14 = vld [vmem:[%s5870_s6 + $0x80] sm:$0xff]  ;;  %391 = vmatprep.subr.bf16.mxu0 %v4479_v4  ;;  %v4489_v15 = vcombine.high %v162_v12, %v166_v13  ;;  %v170_v17 = vld [vmem:[%s5870_s6 + $0x88] sm:$0xff]  ;;  %434 = vmatprep.subr.bf16.mxu1 %v4481_v9  ;;  %v4486_v19 = vcombine.low %v161_v7, %v165_v8  ;;  %v163_v41 = vld [vmem:[%s5870_s6 + $0x50] sm:$0xff]  ;;  %s4449_s15 = sld [smem:[%s6800_s0 + %s5832_s12]]   ;;  %s5835_s24 = smov 34  }
   0xc   :  { %v173_v16 = vld [vmem:[%s5870_s6 + $0xa0] sm:$0xff]  ;;  %v174_v18 = vld [vmem:[%s5870_s6 + $0xa8] sm:$0xff]  ;;  %392 = vmatpush1.bf16.msra.mxu0 %v4478_v5  ;;  %435 = vmatpush1.bf16.msra.mxu1 %v4480_v10  ;;  %v4488_v20 = vcombine.low %v162_v12, %v166_v13  ;;  %v4485_v40 = vcombine.high %v156_v33, %v160_v34  ;;  %v167_v42 = vld [vmem:[%s5870_s6 + $0x70] sm:$0xff]  ;;  %v4484_v47 = vcombine.low %v156_v33, %v160_v34  ;;  %v187_v5 = vlaneseq  ;;  %s4451_s19 = sld [smem:[%s6800_s0 + %s5833_s16]]   ;;  %s5836_s28 = smov 13  }
   0xd   :  { %393 = vmatprep.subr.bf16.mxu0 %v4487_v11  ;;  %v4495_v21 = vcombine.high %v169_v14, %v173_v16  ;;  %436 = vmatprep.subr.bf16.mxu1 %v4489_v15  ;;  %v4497_v22 = vcombine.high %v170_v17, %v174_v18  ;;  %v177_v23 = vld [vmem:[%s5870_s6 + $0xc0] sm:$0xff]  ;;  %v178_v25 = vld [vmem:[%s5870_s6 + $0xc8] sm:$0xff]  ;;  %v4494_v27 = vcombine.low %v169_v14, %v173_v16  ;;  %v164_v44 = vld [vmem:[%s5870_s6 + $0x58] sm:$0xff]  ;;  %s4441_s23 = sld [smem:[%s6800_s0 + %s5834_s20]]   ;;  %s5837_s2 = smov 16  }
   0xe   :  { %v181_v24 = vld [vmem:[%s5870_s6 + $0xe0] sm:$0xff]  ;;  %v182_v26 = vld [vmem:[%s5870_s6 + $0xe8] sm:$0xff]  ;;  %v4496_v28 = vcombine.low %v170_v17, %v174_v18  ;;  %v168_v45 = vld [vmem:[%s5870_s6 + $0x78] sm:$0xff]  ;;  %v4491_v48 = vcombine.high %v163_v41, %v167_v42  ;;  %v4490_v54 = vcombine.low %v163_v41, %v167_v42  ;;  %v188_v6 = vshrl.u32 %v187_v5, 7  ;;  %s4474_s27 = sld [smem:[%s6800_s0 + %s5835_s24]]   ;;  %s5840_s10 = smov 14  }
   0xf   :  { %v4503_v29 = vcombine.high %v177_v23, %v181_v24  ;;  %v4505_v30 = vcombine.high %v178_v25, %v182_v26  ;;  %v4502_v35 = vcombine.low %v177_v23, %v181_v24  ;;  %v150_v36 = vld [vmem:[%s1_s9] sm:$0xff]  ;;  %v151_v37 = vld [vmem:[%s1_s9 + $0x8] sm:$0xff]  ;;  %v4504_v38 = vcombine.low %v178_v25, %v182_v26  ;;  %v171_v50 = vld [vmem:[%s5870_s6 + $0x90] sm:$0xff]  ;;  %s4453_s1 = sld [smem:[%s6800_s0 + %s5836_s28]]   ;;  %s5841_s14 = smov 15  }
  0x10   :  { %394 = vmatpush1.bf16.msra.mxu0 %v4486_v19  ;;  %437 = vmatpush1.bf16.msra.mxu1 %v4488_v20  ;;  %v152_v43 = vpack.c.bf16 %v151_v37, %v150_v36  ;;  %v4493_v49 = vcombine.high %v164_v44, %v168_v45  ;;  %v175_v51 = vld [vmem:[%s5870_s6 + $0xb0] sm:$0xff]  ;;  %v172_v52 = vld [vmem:[%s5870_s6 + $0x98] sm:$0xff]  ;;  %v4492_v55 = vcombine.low %v164_v44, %v168_v45  ;;  %v5918_v7 = vsub.s32 0, %v188_v6  ;;  %v185_v9 = vld [vmem:[%s4443_s13] sm:$0xff]  ;;  %s4456_s5 = sld [smem:[%s6800_s0 + %s5837_s2]]   ;;  %s5843_s18 = smov 17  }
  0x11   :  { %395 = vmatprep.subr.bf16.mxu0 %v4495_v21  ;;  %438 = vmatprep.subr.bf16.mxu1 %v4497_v22  ;;  %v176_v53 = vld [vmem:[%s5870_s6 + $0xb8] sm:$0xff]  ;;  %v4499_v56 = vcombine.high %v171_v50, %v175_v51  ;;  %v179_v58 = vld [vmem:[%s5870_s6 + $0xd0] sm:$0xff]  ;;  %v4498_v62 = vcombine.low %v171_v50, %v175_v51  ;;  %v5920_v8 = vsub.s32 1, %v188_v6  ;;  %v5924_v14 = vsub.s32 2, %v188_v6  ;;  %s4454_s13 = sld [smem:[%s6800_s0 + %s5840_s10]]   ;;  %s5844_s22 = smov 35  }
  0x12   :  { %v4501_v57 = vcombine.high %v172_v52, %v176_v53  ;;  %v183_v59 = vld [vmem:[%s5870_s6 + $0xf0] sm:$0xff]  ;;  %v180_v60 = vld [vmem:[%s5870_s6 + $0xd8] sm:$0xff]  ;;  %v4500_v63 = vcombine.low %v172_v52, %v176_v53  ;;  %v190_v11 = vrot.slane %v185_v9, %v5918_v7  ;;  %v5931_v24 = vsub.s32 3, %v188_v6  ;;  %s5845_s26 = smov 19   ;;  %s5846_s30 = smov 22  }
  0x13   :  { %v184_v61 = vld [vmem:[%s5870_s6 + $0xf8] sm:$0xff]  ;;  %v4507_v1 = vcombine.high %v179_v58, %v183_v59  ;;  %v4506_v3 = vcombine.low %v179_v58, %v183_v59  ;;  %v194_v12 = vrot.slane %v185_v9, %v5920_v8  ;;  %v198_v23 = vrot.slane %v185_v9, %v5924_v14  ;;  %s5839_s6 = smov 18   ;;  %s5847_s4 = smov 28  }
  0x14   :  { %396 = vmatpush1.bf16.msra.mxu0 %v4494_v27  ;;  %439 = vmatpush1.bf16.msra.mxu1 %v4496_v28  ;;  %v4509_v2 = vcombine.high %v180_v60, %v184_v61  ;;  %v4508_v4 = vcombine.low %v180_v60, %v184_v61  ;;  %v5944_v31 = vsub.s32 5, %v188_v6  ;;  %v5950_v34 = vsub.s32 6, %v188_v6  ;;  %s6641_s9 = sld [smem:[%s6800_s0 + %s5839_s6]]   ;;  %s5848_s8 = smov 20  }
  0x15   :  { %397 = vmatprep.subr.bf16.mxu0 %v4503_v29  ;;  %440 = vmatprep.subr.bf16.mxu1 %v4505_v30  ;;  %v202_v29 = vrot.slane %v185_v9, %v5931_v24  ;;  %v5942_v30 = vsub.s32 4, %v188_v6  ;;  %s5849_s12 = smov 21   ;;  %s5850_s16 = smov 23  }
  0x16   :  { %v214_v41 = vrot.slane %v185_v9, %v5950_v34  ;;  %s5851_s20 = smov 29   ;;  %s5852_s24 = smov 26  }
  0x17   :  { %v206_v37 = vrot.slane %v185_v9, %v5942_v30  ;;  %s5853_s28 = smov 32   ;;  %s5854_s2 = smov 24  }
  0x18   :  { %398 = vmatpush1.bf16.msra.mxu0 %v4502_v35  ;;  %441 = vmatpush1.bf16.msra.mxu1 %v4504_v38  ;;  %v210_v38 = vrot.slane %v185_v9, %v5944_v31  ;;  %s5855_s6 = smov 25   ;;  %s5856_s10 = smov 30  }
  0x19   :  { %477 = vmatprep.subr.bf16.mxu0 %v4483_v39  ;;  %520 = vmatprep.subr.bf16.mxu1 %v4485_v40  ;;  %v5957_v39 = vsub.s32 7, %v188_v6 }
  0x1b   :  { %4510 = vmatmul.mubr.msk.bf16.vlgmr.msra.gmra.mrb[0].mxu0 %vm387_vm0, %v152_v43  ;;  %4511 = vmatmul.mubr.msk.bf16.vlgmr.msra.gmra.mrb[0].mxu1 %vm387_vm0, %v152_v43  ;;  %v218_v50 = vrot.slane %v185_v9, %v5957_v39  ;;  %v5174_v9 = vld [vmem:[%s5993_s17] ss:$16 sps:$4 sm:$0xff]  }
  0x1c   :  { %478 = vmatpush1.bf16.msra.mxu0 %v4482_v46  ;;  %521 = vmatpush1.bf16.msra.mxu1 %v4484_v47 }
  0x1d   :  { %479 = vmatprep.subr.bf16.mxu0 %v4491_v48  ;;  %522 = vmatprep.subr.bf16.mxu1 %v4493_v49 }
  0x1e   :  { %509 = vmatprep.mubr.bf16.mxu0 %v5823_v0  ;;  %552 = vmatprep.mubr.bf16.mxu1 %v5823_v0 }
  0x20   :  { %480 = vmatpush1.bf16.msra.mxu0 %v4490_v54  ;;  %523 = vmatpush1.bf16.msra.mxu1 %v4492_v55 }
  0x21   :  { %481 = vmatprep.subr.bf16.mxu0 %v4499_v56  ;;  %524 = vmatprep.subr.bf16.mxu1 %v4501_v57 }
  0x24   :  { %482 = vmatpush1.bf16.msra.mxu0 %v4498_v62  ;;  %525 = vmatpush1.bf16.msra.mxu1 %v4500_v63 }
  0x25   :  { %483 = vmatprep.subr.bf16.mxu0 %v4507_v1  ;;  %526 = vmatprep.subr.bf16.mxu1 %v4509_v2 }
  0x28   :  { %484 = vmatpush1.bf16.msra.mxu0 %v4506_v3  ;;  %527 = vmatpush1.bf16.msra.mxu1 %v4508_v4 }
  0x2b   :  { %4512 = vmatmul.mubr.msk.bf16.vlgmr.msra.gmra.mrb[4].mxu0 %vm387_vm0, %v152_v43  ;;  %4513 = vmatmul.mubr.msk.bf16.vlgmr.msra.gmra.mrb[4].mxu1 %vm387_vm0, %v152_v43 }
  0xee   :  { %v425_v10 = vpop.f32.mrb[0].mxu0  ;;  %v468_v15 = vpop.f32.mrb[0].mxu1 }
  0xef   :  { %v427_v13 = vpop.f32.mrb[1].mxu0  ;;  %v470_v17 = vpop.f32.mrb[1].mxu1  ;;  %v5926_v21 = vadd.f32 %v425_v10, %v190_v11  ;;  %v5939_v28 = vadd.f32 %v468_v15, %v198_v23  ;;  %v5176_v10 = vld [vmem:[%s5993_s17 + $0x4] ss:$16 sps:$4 sm:$0xff]  }
  0xf0   :  { %v429_v16 = vpop.f32.mrb[2].mxu0  ;;  %v472_v19 = vpop.f32.mrb[2].mxu1  ;;  %v5928_v22 = vadd.f32 %v427_v13, %v194_v12  ;;  %v5953_v36 = vadd.f32 %v470_v17, %v202_v29  ;;  %2450 = vmatprep.subr.bf16.mxu0 %v5176_v10  ;;  %v5180_v13 = vld [vmem:[%s5993_s17 + $0x20] ss:$16 sps:$4 sm:$0xff]   ;;  %v5182_v15 = vld [vmem:[%s5993_s17 + $0x24] ss:$16 sps:$4 sm:$0xff]  }
  0xf1   :  { %v431_v18 = vpop.f32.mrb[3].mxu0  ;;  %v474_v20 = vpop.f32.mrb[3].mxu1  ;;  %v5933_v25 = vadd.f32 %v429_v16, %v190_v11  ;;  %v5948_v33 = vadd.f32 %v472_v19, %v198_v23  ;;  %v5177_v11 = vld [vmem:[%s5993_s17 + $0x8] ss:$16 sps:$4 sm:$0xff]   ;;  %2451 = vmatpush1.bf16.msra.mxu0 %v5174_v9  ;;  %v5185_v17 = vld [vmem:[%s5993_s17 + $0x2c] ss:$16 sps:$4 sm:$0xff]  }
  0xf2   :  { %v5935_v26 = vadd.f32 %v431_v18, %v194_v12  ;;  %v565_v27 = vadd.f32 %v5928_v22, %v5926_v21  ;;  %v5962_v44 = vadd.f32 %v474_v20, %v202_v29  ;;  %v5179_v12 = vld [vmem:[%s5993_s17 + $0xc] ss:$16 sps:$4 sm:$0xff]   ;;  %v5183_v16 = vld [vmem:[%s5993_s17 + $0x28] ss:$16 sps:$4 sm:$0xff]   ;;  %2452 = vmatprep.subr.bf16.mxu0 %v5182_v15  ;;  %v5186_v18 = vld [vmem:[%s5993_s17 + $0x40] ss:$16 sps:$4 sm:$0xff]  }
  0xf3   :  { %2622 = vmatprep.subr.bf16.mxu1 %v5179_v12  ;;  %v5188_v19 = vld [vmem:[%s5993_s17 + $0x44] ss:$16 sps:$4 sm:$0xff]   ;;  %v5189_v20 = vld [vmem:[%s5993_s17 + $0x48] ss:$16 sps:$4 sm:$0xff]   ;;  %v5191_v23 = vld [vmem:[%s5993_s17 + $0x4c] ss:$16 sps:$4 sm:$0xff]  }
  0xf4   :  { %v574_v32 = vadd.f32 %v5935_v26, %v5933_v25  ;;  %v566_v35 = vadd.f32 %v565_v27, %v5939_v28  ;;  %2623 = vmatpush1.bf16.msra.mxu1 %v5177_v11 }
  0xf5   :  { %2624 = vmatprep.subr.bf16.mxu1 %v5185_v17  ;;  %2453 = vmatpush1.bf16.msra.mxu0 %v5180_v13  ;;  %v5194_v17 = vld [vmem:[%s5993_s17 + $0x64] ss:$16 sps:$4 sm:$0xff]  }
  0xf6   :  { %v575_v40 = vadd.f32 %v574_v32, %v5948_v33  ;;  %v567_v43 = vadd.f32 %v566_v35, %v5953_v36  ;;  %2454 = vmatprep.subr.bf16.mxu0 %v5188_v19  ;;  %v5192_v19 = vld [vmem:[%s5993_s17 + $0x60] ss:$16 sps:$4 sm:$0xff]  }
  0xf8   :  { %v576_v52 = vadd.f32 %v575_v40, %v5962_v44  ;;  %2625 = vmatpush1.bf16.msra.mxu1 %v5183_v16 }
  0xf9   :  { %2626 = vmatprep.subr.bf16.mxu1 %v5191_v23  ;;  %2455 = vmatpush1.bf16.msra.mxu0 %v5186_v18  ;;  %v5197_v18 = vld [vmem:[%s5993_s17 + $0x6c] ss:$16 sps:$4 sm:$0xff]   ;;  %v5200_v23 = vld [vmem:[%s5993_s17 + $0x84] ss:$16 sps:$4 sm:$0xff]  }
  0xfa   :  { %2456 = vmatprep.subr.bf16.mxu0 %v5194_v17  ;;  %v5249_v17 = vld [vmem:[%s5993_s17 + $0x188] ss:$16 sps:$4 sm:$0xff]  }
  0xfc   :  { %2627 = vmatpush1.bf16.msra.mxu1 %v5189_v20  ;;  %v5195_v20 = vld [vmem:[%s5993_s17 + $0x68] ss:$16 sps:$4 sm:$0xff]  }
  0xfd   :  { %2628 = vmatprep.subr.bf16.mxu1 %v5197_v18  ;;  %2457 = vmatpush1.bf16.msra.mxu0 %v5192_v19  ;;  %v5254_v18 = vld [vmem:[%s5993_s17 + $0x1a4] ss:$16 sps:$4 sm:$0xff]   ;;  %v5257_v19 = vld [vmem:[%s5993_s17 + $0x1ac] ss:$16 sps:$4 sm:$0xff]  }
  0xfe   :  { %v511_v42 = vpop.f32.mrb[4].mxu0  ;;  %v554_v47 = vpop.f32.mrb[4].mxu1  ;;  %2458 = vmatprep.subr.bf16.mxu0 %v5200_v23  ;;  %v5255_v23 = vld [vmem:[%s5993_s17 + $0x1a8] ss:$16 sps:$4 sm:$0xff]  }
  0xff   :  { %v5964_v45 = vadd.f32 %v511_v42, %v206_v37  ;;  %v513_v46 = vpop.f32.mrb[5].mxu0  ;;  %v556_v51 = vpop.f32.mrb[5].mxu1  ;;  %v5971_v54 = vadd.f32 %v554_v47, %v214_v41 }
 0x100   :  { %v5966_v48 = vadd.f32 %v513_v46, %v210_v38  ;;  %v515_v49 = vpop.f32.mrb[6].mxu0  ;;  %v558_v57 = vpop.f32.mrb[6].mxu1  ;;  %v5979_v62 = vadd.f32 %v556_v51, %v218_v50  ;;  %2629 = vmatpush1.bf16.msra.mxu1 %v5195_v20  ;;  %v5252_v20 = vld [vmem:[%s5993_s17 + $0x1a0] ss:$16 sps:$4 sm:$0xff]  }
 0x101   :  { %v568_v53 = vadd.f32 %v567_v43, %v5964_v45  ;;  %v5973_v55 = vadd.f32 %v515_v49, %v206_v37  ;;  %v517_v56 = vpop.f32.mrb[7].mxu0  ;;  %v560_v59 = vpop.f32.mrb[7].mxu1  ;;  %v5982_v1 = vadd.f32 %v558_v57, %v214_v41 }
 0x102   :  { %v5975_v58 = vadd.f32 %v517_v56, %v210_v38  ;;  %v5987_v5 = vadd.f32 %v560_v59, %v218_v50 }
 0x103   :  { %v569_v60 = vadd.f32 %v568_v53, %v5966_v48  ;;  %v577_v61 = vadd.f32 %v576_v52, %v5973_v55 }
 0x105   :  { %v578_v63 = vadd.f32 %v577_v61, %v5975_v58  ;;  %v570_v2 = vadd.f32 %v569_v60, %v5971_v54 }
 0x107   :  { %v579_v3 = vadd.f32 %v578_v63, %v5982_v1  ;;  %v571_v4 = vadd.f32 %v570_v2, %v5979_v62 }
 0x109   :  { %572 = vadd.xlane.f32.xlu0 %v571_v4  ;;  %v580_v6 = vadd.f32 %v579_v3, %v5987_v5 }
 0x10d   :  { %581 = vadd.xlane.f32.xlu0 %v580_v6 }
 0x196   :  { %v573_v27 = vpop.xlane.xlu0 %572 }
 0x197   :  { %v584_v29 = vmul.f32 0.0009765625, %v573_v27  ;;  %v5203_v27 = vld [vmem:[%s5993_s17 + $0x8c] ss:$16 sps:$4 sm:$0xff]  }
 0x198   :  { %2630 = vmatprep.subr.bf16.mxu1 %v5203_v27  ;;  %v5260_v27 = vld [vmem:[%s5993_s17 + $0x1c4] ss:$16 sps:$4 sm:$0xff]  }
 0x199   :  { %v6008_v32 = vsub.f32 %v5926_v21, %v584_v29  ;;  %v6011_v35 = vsub.f32 %v5928_v22, %v584_v29  ;;  %v6014_v37 = vsub.f32 %v5939_v28, %v584_v29  ;;  %v6017_v41 = vsub.f32 %v5953_v36, %v584_v29 }
 0x19a   :  { %v582_v38 = vpop.xlane.xlu0 %581  ;;  %v6024_v21 = vsub.f32 %v5964_v45, %v584_v29  ;;  %v6038_v49 = vsub.f32 %v5966_v48, %v584_v29 }
 0x19b   :  { %v585_v40 = vmul.f32 0.0009765625, %v582_v38  ;;  %v602_v42 = vmul.f32 %v6008_v32, %v6008_v32  ;;  %v603_v43 = vmul.f32 %v6011_v35, %v6011_v35  ;;  %v604_v22 = vmul.f32 %v6014_v37, %v6014_v37  ;;  %v5201_v38 = vld [vmem:[%s5993_s17 + $0x88] ss:$16 sps:$4 sm:$0xff]  }
 0x19c   :  { %v605_v45 = vmul.f32 %v6017_v41, %v6017_v41  ;;  %v607_v59 = vmul.f32 %v6038_v49, %v6038_v49  ;;  %2631 = vmatpush1.bf16.msra.mxu1 %v5201_v38  ;;  %v5258_v38 = vld [vmem:[%s5993_s17 + $0x1c0] ss:$16 sps:$4 sm:$0xff]  }
 0x19d   :  { %v618_v46 = vadd.f32 %v603_v43, %v602_v42  ;;  %v6029_v28 = vsub.f32 %v5933_v25, %v585_v40  ;;  %v6032_v47 = vsub.f32 %v5935_v26, %v585_v40  ;;  %v6035_v36 = vsub.f32 %v5948_v33, %v585_v40  ;;  %v5204_v42 = vld [vmem:[%s5993_s17 + $0xa0] ss:$16 sps:$4 sm:$0xff]   ;;  %v5207_v43 = vld [vmem:[%s5993_s17 + $0xa8] ss:$16 sps:$4 sm:$0xff]  }
 0x19e   :  { %v6045_v52 = vsub.f32 %v5962_v44, %v585_v40  ;;  %v6050_v26 = vsub.f32 %v5971_v54, %v584_v29  ;;  %v606_v33 = vmul.f32 %v6024_v21, %v6024_v21  ;;  %v6055_v53 = vsub.f32 %v5973_v55, %v585_v40 }
 0x19f   :  { %v619_v50 = vadd.f32 %v618_v46, %v604_v22  ;;  %v610_v51 = vmul.f32 %v6029_v28, %v6029_v28  ;;  %v611_v25 = vmul.f32 %v6032_v47, %v6032_v47  ;;  %v612_v56 = vmul.f32 %v6035_v36, %v6035_v36  ;;  %v5209_v22 = vld [vmem:[%s5993_s17 + $0xac] ss:$16 sps:$4 sm:$0xff]   ;;  %v5212_v46 = vld [vmem:[%s5993_s17 + $0xc4] ss:$16 sps:$4 sm:$0xff]  }
 0x1a0   :  { %v6060_v44 = vsub.f32 %v5979_v62, %v584_v29  ;;  %v6065_v54 = vsub.f32 %v5975_v58, %v585_v40  ;;  %v613_v61 = vmul.f32 %v6045_v52, %v6045_v52  ;;  %v608_v55 = vmul.f32 %v6050_v26, %v6050_v26  ;;  %v5198_v29 = vld [vmem:[%s5993_s17 + $0x80] ss:$16 sps:$4 sm:$0xff]   ;;  %2632 = vmatprep.subr.bf16.mxu1 %v5209_v22 }
 0x1a1   :  { %v620_v48 = vadd.f32 %v619_v50, %v605_v45  ;;  %v627_v57 = vadd.f32 %v611_v25, %v610_v51  ;;  %v6072_v3 = vsub.f32 %v5982_v1, %v585_v40  ;;  %v614_v62 = vmul.f32 %v6055_v53, %v6055_v53  ;;  %2459 = vmatpush1.bf16.msra.mxu0 %v5198_v29  ;;  %v5215_v45 = vld [vmem:[%s5993_s17 + $0xcc] ss:$16 sps:$4 sm:$0xff]   ;;  %v5210_v50 = vld [vmem:[%s5993_s17 + $0xc0] ss:$16 sps:$4 sm:$0xff]   ;;  %v5213_v51 = vld [vmem:[%s5993_s17 + $0xc8] ss:$16 sps:$4 sm:$0xff]  }
 0x1a2   :  { %v609_v58 = vmul.f32 %v6060_v44, %v6060_v44  ;;  %v6079_v9 = vsub.f32 %v5987_v5, %v585_v40  ;;  %v615_v10 = vmul.f32 %v6065_v54, %v6065_v54  ;;  %v5206_v40 = vld [vmem:[%s5993_s17 + $0xa4] ss:$16 sps:$4 sm:$0xff]   ;;  %2633 = vmatpush1.bf16.msra.mxu1 %v5207_v43  ;;  %v5263_v29 = vld [vmem:[%s5993_s17 + $0x1cc] ss:$16 sps:$4 sm:$0xff]   ;;  %v5264_v22 = vld [vmem:[%s5993_s17 + $0x1e0] ss:$16 sps:$4 sm:$0xff]  }
 0x1a3   :  { %v621_v60 = vadd.f32 %v620_v48, %v606_v33  ;;  %v628_v63 = vadd.f32 %v627_v57, %v612_v56  ;;  %v616_v12 = vmul.f32 %v6072_v3, %v6072_v3  ;;  %2460 = vmatprep.subr.bf16.mxu0 %v5206_v40  ;;  %2634 = vmatprep.subr.bf16.mxu1 %v5215_v45  ;;  %v5218_v25 = vld [vmem:[%s5993_s17 + $0xe4] ss:$16 sps:$4 sm:$0xff]   ;;  %v5221_v33 = vld [vmem:[%s5993_s17 + $0xec] ss:$16 sps:$4 sm:$0xff]   ;;  %v5216_v48 = vld [vmem:[%s5993_s17 + $0xe0] ss:$16 sps:$4 sm:$0xff]  }
 0x1a4   :  { %v617_v15 = vmul.f32 %v6079_v9, %v6079_v9  ;;  %v5219_v56 = vld [vmem:[%s5993_s17 + $0xe8] ss:$16 sps:$4 sm:$0xff]   ;;  %v5224_v57 = vld [vmem:[%s5993_s17 + $0x104] ss:$16 sps:$4 sm:$0xff]   ;;  %v5269_v43 = vld [vmem:[%s5993_s17 + $0x1ec] ss:$16 sps:$4 sm:$0xff]  }
 0x1a5   :  { %v622_v2 = vadd.f32 %v621_v60, %v607_v59  ;;  %v629_v4 = vadd.f32 %v628_v63, %v613_v61  ;;  %2461 = vmatpush1.bf16.msra.mxu0 %v5204_v42  ;;  %v5227_v59 = vld [vmem:[%s5993_s17 + $0x10c] ss:$16 sps:$4 sm:$0xff]   ;;  %v5222_v60 = vld [vmem:[%s5993_s17 + $0x100] ss:$16 sps:$4 sm:$0xff]   ;;  %v5225_v61 = vld [vmem:[%s5993_s17 + $0x108] ss:$16 sps:$4 sm:$0xff]  }
 0x1a6   :  { %2462 = vmatprep.subr.bf16.mxu0 %v5212_v46  ;;  %2635 = vmatpush1.bf16.msra.mxu1 %v5213_v51  ;;  %v5230_v63 = vld [vmem:[%s5993_s17 + $0x124] ss:$16 sps:$4 sm:$0xff]   ;;  %v5261_v40 = vld [vmem:[%s5993_s17 + $0x1c8] ss:$16 sps:$4 sm:$0xff]  }
 0x1a7   :  { %v623_v6 = vadd.f32 %v622_v2, %v608_v55  ;;  %v630_v1 = vadd.f32 %v629_v4, %v614_v62  ;;  %2636 = vmatprep.subr.bf16.mxu1 %v5221_v33  ;;  %v5233_v55 = vld [vmem:[%s5993_s17 + $0x12c] ss:$16 sps:$4 sm:$0xff]   ;;  %v5228_v2 = vld [vmem:[%s5993_s17 + $0x120] ss:$16 sps:$4 sm:$0xff]   ;;  %v5231_v62 = vld [vmem:[%s5993_s17 + $0x128] ss:$16 sps:$4 sm:$0xff]  }
 0x1a8   :  { %v5236_v4 = vld [vmem:[%s5993_s17 + $0x144] ss:$16 sps:$4 sm:$0xff]   ;;  %v5267_v46 = vld [vmem:[%s5993_s17 + $0x1e8] ss:$16 sps:$4 sm:$0xff]  }
 0x1a9   :  { %v624_v11 = vadd.f32 %v623_v6, %v609_v58  ;;  %v631_v13 = vadd.f32 %v630_v1, %v615_v10  ;;  %2463 = vmatpush1.bf16.msra.mxu0 %v5210_v50  ;;  %v5239_v58 = vld [vmem:[%s5993_s17 + $0x14c] ss:$16 sps:$4 sm:$0xff]   ;;  %v5234_v6 = vld [vmem:[%s5993_s17 + $0x140] ss:$16 sps:$4 sm:$0xff]   ;;  %v5237_v10 = vld [vmem:[%s5993_s17 + $0x148] ss:$16 sps:$4 sm:$0xff]  }
 0x1aa   :  { %2464 = vmatprep.subr.bf16.mxu0 %v5218_v25  ;;  %2637 = vmatpush1.bf16.msra.mxu1 %v5219_v56  ;;  %v5242_v1 = vld [vmem:[%s5993_s17 + $0x164] ss:$16 sps:$4 sm:$0xff]   ;;  %v5275_v50 = vld [vmem:[%s5993_s17 + $0x20c] ss:$16 sps:$4 sm:$0xff]  }
 0x1ab   :  { %625 = vadd.xlane.f32.xlu1 %v624_v11  ;;  %v632_v16 = vadd.f32 %v631_v13, %v616_v12  ;;  %2638 = vmatprep.subr.bf16.mxu1 %v5227_v59  ;;  %v5245_v11 = vld [vmem:[%s5993_s17 + $0x16c] ss:$16 sps:$4 sm:$0xff]   ;;  %v5240_v12 = vld [vmem:[%s5993_s17 + $0x160] ss:$16 sps:$4 sm:$0xff]   ;;  %v5243_v13 = vld [vmem:[%s5993_s17 + $0x168] ss:$16 sps:$4 sm:$0xff]  }
 0x1ac   :  { %v5266_v42 = vld [vmem:[%s5993_s17 + $0x1e4] ss:$16 sps:$4 sm:$0xff]  }
 0x1ad   :  { %v633_v5 = vadd.f32 %v632_v16, %v617_v15  ;;  %2465 = vmatpush1.bf16.msra.mxu0 %v5216_v48  ;;  %v5248_v15 = vld [vmem:[%s5993_s17 + $0x184] ss:$16 sps:$4 sm:$0xff]   ;;  %v5251_v16 = vld [vmem:[%s5993_s17 + $0x18c] ss:$16 sps:$4 sm:$0xff]  }
 0x1ae   :  { %2466 = vmatprep.subr.bf16.mxu0 %v5224_v57  ;;  %2639 = vmatpush1.bf16.msra.mxu1 %v5225_v61  ;;  %v5272_v45 = vld [vmem:[%s5993_s17 + $0x204] ss:$16 sps:$4 sm:$0xff]  }
 0x1af   :  { %634 = vadd.xlane.f32.xlu1 %v633_v5  ;;  %2640 = vmatprep.subr.bf16.mxu1 %v5233_v55  ;;  %v5246_v5 = vld [vmem:[%s5993_s17 + $0x180] ss:$16 sps:$4 sm:$0xff]  }
 0x1b0   :  { %v563_v59 = vld [vmem:[%s4444_s21] sm:$0xff]  ;;  %s4457_s21 = sld [smem:[%s6800_s0 + %s5843_s18]]   ;;  %s5858_s18 = smov 27  }
 0x1b1   :  { %2467 = vmatpush1.bf16.msra.mxu0 %v5222_v60  ;;  %v564_v60 = vld [vmem:[%s4445_s25] sm:$0xff]  ;;  %v6148_v61 = vrot.slane %v563_v59, %v5942_v30  ;;  %v682_v55 = vrot.slane %v563_v59, %v5944_v31  ;;  %s4475_s25 = sld [smem:[%s6800_s0 + %s5844_s22]]   ;;  %s5859_s22 = smov 36  }
 0x1b2   :  { %2468 = vmatprep.subr.bf16.mxu0 %v5230_v63  ;;  %2641 = vmatpush1.bf16.msra.mxu1 %v5231_v62  ;;  %v6151_v63 = vrot.slane %v564_v60, %v5942_v30  ;;  %v6158_v62 = vrot.slane %v564_v60, %v5950_v34  ;;  %v719_v30 = vrot.slane %v564_v60, %v5918_v7 }
 0x1b3   :  { %2642 = vmatprep.subr.bf16.mxu1 %v5239_v58  ;;  %v666_v58 = vrot.slane %v563_v59, %v5920_v8 }
 0x1b5   :  { %2469 = vmatpush1.bf16.msra.mxu0 %v5228_v2  ;;  %v6155_v2 = vrot.slane %v563_v59, %v5950_v34  ;;  %v727_v34 = vrot.slane %v564_v60, %v5924_v14 }
 0x1b6   :  { %2470 = vmatprep.subr.bf16.mxu0 %v5236_v4  ;;  %2643 = vmatpush1.bf16.msra.mxu1 %v5237_v10  ;;  %v6161_v4 = vrot.slane %v563_v59, %v5957_v39  ;;  %v723_v10 = vrot.slane %v564_v60, %v5920_v8 }
 0x1b7   :  { %2644 = vmatprep.subr.bf16.mxu1 %v5245_v11  ;;  %v670_v11 = vrot.slane %v563_v59, %v5924_v14 }
 0x1b9   :  { %2471 = vmatpush1.bf16.msra.mxu0 %v5234_v6  ;;  %v662_v6 = vrot.slane %v563_v59, %v5918_v7 }
 0x1ba   :  { %2472 = vmatprep.subr.bf16.mxu0 %v5242_v1  ;;  %2645 = vmatpush1.bf16.msra.mxu1 %v5243_v13  ;;  %v674_v1 = vrot.slane %v563_v59, %v5931_v24  ;;  %v731_v13 = vrot.slane %v564_v60, %v5931_v24 }
 0x1bb   :  { %2646 = vmatprep.subr.bf16.mxu1 %v5251_v16  ;;  %v6173_v16 = vrot.slane %v564_v60, %v5957_v39 }
 0x1bd   :  { %2473 = vmatpush1.bf16.msra.mxu0 %v5240_v12 }
 0x1be   :  { %2474 = vmatprep.subr.bf16.mxu0 %v5248_v15  ;;  %2647 = vmatpush1.bf16.msra.mxu1 %v5249_v17  ;;  %v739_v15 = vrot.slane %v564_v60, %v5944_v31 }
 0x1bf   :  { %2648 = vmatprep.subr.bf16.mxu1 %v5257_v19 }
 0x1c1   :  { %2475 = vmatpush1.bf16.msra.mxu0 %v5246_v5 }
 0x1c2   :  { %2476 = vmatprep.subr.bf16.mxu0 %v5254_v18  ;;  %2649 = vmatpush1.bf16.msra.mxu1 %v5255_v23 }
 0x1c3   :  { %2650 = vmatprep.subr.bf16.mxu1 %v5263_v29 }
 0x1c5   :  { %2477 = vmatpush1.bf16.msra.mxu0 %v5252_v20 }
 0x1c6   :  { %2478 = vmatprep.subr.bf16.mxu0 %v5260_v27  ;;  %2651 = vmatpush1.bf16.msra.mxu1 %v5261_v40 }
 0x1c7   :  { %2652 = vmatprep.subr.bf16.mxu1 %v5269_v43 }
 0x1c9   :  { %2479 = vmatpush1.bf16.msra.mxu0 %v5258_v38 }
 0x1ca   :  { %2480 = vmatprep.subr.bf16.mxu0 %v5266_v42  ;;  %2653 = vmatpush1.bf16.msra.mxu1 %v5267_v46 }
 0x1cb   :  { %2665 = vmatprep.subr.bf16.mxu1 %v5275_v50 }
 0x1cd   :  { %2481 = vmatpush1.bf16.msra.mxu0 %v5264_v22 }
 0x1ce   :  { %2493 = vmatprep.subr.bf16.mxu0 %v5272_v45 }
 0x238   :  { %v626_v51 = vpop.xlane.xlu1 %625 }
 0x239   :  { %v636_v25 = vmul.f32 0.0009765625, %v626_v51 }
 0x23b   :  { %v638_v33 = vadd.f32 1e-05, %v636_v25 }
 0x23c   :  { %v635_v48 = vpop.xlane.xlu1 %634 }
 0x23d   :  { %5662 = vrsqrt.f32 %v638_v33  ;;  %v637_v56 = vmul.f32 0.0009765625, %v635_v48 }
 0x23f   :  { %v639_v57 = vadd.f32 1e-05, %v637_v56 }
 0x241   :  { %5664 = vrsqrt.f32 %v639_v57 }
 0x247   :  { %v5663_v12 = vpop.eup %5662 }
 0x248   :  { %v643_v5 = vmul.f32 %v5663_v12, %v6011_v35  ;;  %v642_v17 = vmul.f32 %v5663_v12, %v6008_v32  ;;  %v645_v18 = vmul.f32 %v5663_v12, %v6017_v41  ;;  %v644_v19 = vmul.f32 %v5663_v12, %v6014_v37 }
 0x249   :  { %v647_v20 = vmul.f32 %v5663_v12, %v6038_v49  ;;  %v646_v23 = vmul.f32 %v5663_v12, %v6024_v21  ;;  %v649_v27 = vmul.f32 %v5663_v12, %v6060_v44  ;;  %v648_v29 = vmul.f32 %v5663_v12, %v6050_v26 }
 0x24a   :  { %v700_v31 = vmul.f32 %v666_v58, %v643_v5  ;;  %v699_v38 = vmul.f32 %v662_v6, %v642_v17  ;;  %v702_v39 = vmul.f32 %v674_v1, %v645_v18  ;;  %v701_v40 = vmul.f32 %v670_v11, %v644_v19 }
 0x24b   :  { %v704_v42 = vmul.f32 %v682_v55, %v647_v20  ;;  %v703_v35 = vmul.f32 %v6148_v61, %v646_v23  ;;  %v706_v32 = vmul.f32 %v6161_v4, %v649_v27  ;;  %v705_v41 = vmul.f32 %v6155_v2, %v648_v29  ;;  %v5665_v37 = vpop.eup %5664 }
 0x24c   :  { %v6186_v43 = vadd.f32 %v723_v10, %v700_v31  ;;  %v6188_v49 = vadd.f32 %v719_v30, %v699_v38  ;;  %v6190_v21 = vadd.f32 %v731_v13, %v702_v39  ;;  %v6192_v44 = vadd.f32 %v727_v34, %v701_v40 }
 0x24d   :  { %v651_v26 = vmul.f32 %v5665_v37, %v6032_v47  ;;  %v650_v22 = vmul.f32 %v5665_v37, %v6029_v28  ;;  %v653_v46 = vmul.f32 %v5665_v37, %v6045_v52  ;;  %v652_v45 = vmul.f32 %v5665_v37, %v6035_v36 }
 0x24e   :  { %v4515_v50 = vmul.f32 -1.442695, %v6186_v43  ;;  %v4514_v51 = vmul.f32 -1.442695, %v6188_v49  ;;  %v4517_v25 = vmul.f32 -1.442695, %v6190_v21  ;;  %v655_v33 = vmul.f32 %v5665_v37, %v6065_v54 }
 0x24f   :  { %v708_v48 = vmul.f32 %v666_v58, %v651_v26  ;;  %v707_v56 = vmul.f32 %v662_v6, %v650_v22  ;;  %v710_v57 = vmul.f32 %v674_v1, %v653_v46  ;;  %v709_v59 = vmul.f32 %v670_v11, %v652_v45 }
 0x250   :  { %5666 = vpow2.f32 %v4515_v50  ;;  %v4516_v47 = vmul.f32 -1.442695, %v6192_v44  ;;  %v712_v28 = vmul.f32 %v682_v55, %v655_v33  ;;  %v6203_v60 = vadd.f32 %v739_v15, %v704_v42 }
 0x251   :  { %v6205_v52 = vadd.f32 %v723_v10, %v708_v48  ;;  %v6207_v36 = vadd.f32 %v719_v30, %v707_v56  ;;  %5668 = vpow2.f32 %v4514_v51  ;;  %v6209_v12 = vadd.f32 %v731_v13, %v710_v57 }
 0x252   :  { %5670 = vpow2.f32 %v4517_v25  ;;  %v6211_v5 = vadd.f32 %v727_v34, %v709_v59  ;;  %v6213_v54 = vadd.f32 %v739_v15, %v712_v28  ;;  %v4519_v58 = vmul.f32 -1.442695, %v6203_v60 }
 0x253   :  { %v4523_v6 = vmul.f32 -1.442695, %v6205_v52  ;;  %v4522_v55 = vmul.f32 -1.442695, %v6207_v36  ;;  %v4525_v1 = vmul.f32 -1.442695, %v6209_v12  ;;  %5672 = vpow2.f32 %v4516_v47 }
 0x254   :  { %v4524_v10 = vmul.f32 -1.442695, %v6211_v5  ;;  %5674 = vpow2.f32 %v4519_v58  ;;  %v654_v30 = vmul.f32 %v5665_v37, %v6055_v53  ;;  %v4527_v11 = vmul.f32 -1.442695, %v6213_v54 }
 0x255   :  { %5676 = vpow2.f32 %v4523_v6  ;;  %v6223_v13 = vadd.f32 %v6151_v63, %v703_v35  ;;  %v6226_v34 = vadd.f32 %v6173_v16, %v706_v32  ;;  %v656_v17 = vmul.f32 %v5665_v37, %v6072_v3 }
 0x256   :  { %5678 = vpow2.f32 %v4522_v55  ;;  %v711_v15 = vmul.f32 %v6148_v61, %v654_v30  ;;  %v6231_v18 = vadd.f32 %v6158_v62, %v705_v41  ;;  %v657_v23 = vmul.f32 %v5665_v37, %v6079_v9 }
 0x257   :  { %5680 = vpow2.f32 %v4525_v1  ;;  %v4518_v53 = vmul.f32 -1.442695, %v6223_v13  ;;  %v4521_v19 = vmul.f32 -1.442695, %v6226_v34  ;;  %v713_v27 = vmul.f32 %v6155_v2, %v656_v17 }
 0x258   :  { %5682 = vpow2.f32 %v4524_v10  ;;  %v6236_v20 = vadd.f32 %v6151_v63, %v711_v15  ;;  %v714_v63 = vmul.f32 %v6161_v4, %v657_v23  ;;  %v4520_v28 = vmul.f32 -1.442695, %v6231_v18 }
 0x259   :  { %5684 = vpow2.f32 %v4527_v11  ;;  %v6242_v29 = vadd.f32 %v6158_v62, %v713_v27 }
 0x25a   :  { %v5667_v61 = vpop.eup %5666  ;;  %5686 = vpow2.f32 %v4518_v53  ;;  %v4526_v3 = vmul.f32 -1.442695, %v6236_v20  ;;  %v6246_v26 = vadd.f32 %v6173_v16, %v714_v63 }
 0x25b   :  { %v5669_v31 = vpop.eup %5668  ;;  %v821_v38 = vadd.f32 1.0, %v5667_v61  ;;  %5688 = vpow2.f32 %v4521_v19  ;;  %v4528_v6 = vmul.f32 -1.442695, %v6242_v29 }
 0x25c   :  { %v5671_v39 = vpop.eup %5670  ;;  %v820_v40 = vadd.f32 1.0, %v5669_v31  ;;  %5690 = vpow2.f32 %v4526_v3  ;;  %v4529_v48 = vmul.f32 -1.442695, %v6246_v26  ;;  %v5270_v3 = vld [vmem:[%s5993_s17 + $0x200] ss:$16 sps:$4 sm:$0xff]  }
 0x25d   :  { %v5673_v42 = vpop.eup %5672  ;;  %5692 = vrcp.f32 %v821_v38  ;;  %v823_v9 = vadd.f32 1.0, %v5671_v39  ;;  %v5273_v31 = vld [vmem:[%s5993_s17 + $0x208] ss:$16 sps:$4 sm:$0xff]  }
 0x25e   :  { %v5675_v2 = vpop.eup %5674  ;;  %5694 = vrcp.f32 %v820_v40  ;;  %v822_v35 = vadd.f32 1.0, %v5673_v42 }
 0x25f   :  { %v5677_v32 = vpop.eup %5676  ;;  %5696 = vrcp.f32 %v823_v9  ;;  %v825_v41 = vadd.f32 1.0, %v5675_v2  ;;  %v5281_v9 = vld [vmem:[%s5993_s17 + $0x22c] ss:$16 sps:$4 sm:$0xff]  }
 0x260   :  { %v5679_v37 = vpop.eup %5678  ;;  %v829_v62 = vadd.f32 1.0, %v5677_v32  ;;  %5698 = vrcp.f32 %v822_v35  ;;  %v5276_v32 = vld [vmem:[%s5993_s17 + $0x220] ss:$16 sps:$4 sm:$0xff]  }
 0x261   :  { %v5681_v22 = vpop.eup %5680  ;;  %v828_v46 = vadd.f32 1.0, %v5679_v37  ;;  %5700 = vrcp.f32 %v825_v41  ;;  %v5279_v41 = vld [vmem:[%s5993_s17 + $0x228] ss:$16 sps:$4 sm:$0xff]  }
 0x262   :  { %v5683_v45 = vpop.eup %5682  ;;  %5702 = vrcp.f32 %v829_v62  ;;  %v831_v4 = vadd.f32 1.0, %v5681_v22 }
 0x263   :  { %v5685_v50 = vpop.eup %5684  ;;  %5704 = vrcp.f32 %v828_v46  ;;  %v830_v51 = vadd.f32 1.0, %v5683_v45 }
 0x264   :  { %v5687_v25 = vpop.eup %5686  ;;  %5706 = vrcp.f32 %v831_v4  ;;  %v833_v33 = vadd.f32 1.0, %v5685_v50 }
 0x265   :  { %v5689_v56 = vpop.eup %5688  ;;  %5708 = vrcp.f32 %v830_v51  ;;  %v824_v57 = vadd.f32 1.0, %v5687_v25  ;;  %v5282_v25 = vld [vmem:[%s5993_s17 + $0x240] ss:$16 sps:$4 sm:$0xff]  }
 0x266   :  { %v5691_v59 = vpop.eup %5690  ;;  %5710 = vrcp.f32 %v833_v33  ;;  %v827_v39 = vadd.f32 1.0, %v5689_v56  ;;  %v5288_v56 = vld [vmem:[%s5993_s17 + $0x260] ss:$16 sps:$4 sm:$0xff]  }
 0x267   :  { %v5693_v16 = vpop.eup %5692  ;;  %v832_v47 = vadd.f32 1.0, %v5691_v59  ;;  %5712 = vrcp.f32 %v824_v57  ;;  %v5291_v57 = vld [vmem:[%s5993_s17 + $0x268] ss:$16 sps:$4 sm:$0xff]   ;;  %v5296_v59 = vld [vmem:[%s5993_s17 + $0x284] ss:$16 sps:$4 sm:$0xff]  }
 0x268   :  { %v5695_v58 = vpop.eup %5694  ;;  %5714 = vpow2.f32 %v4529_v48  ;;  %v869_v15 = vmul.f32 %v5693_v16, %v6186_v43  ;;  %v5293_v48 = vld [vmem:[%s5993_s17 + $0x26c] ss:$16 sps:$4 sm:$0xff]  }
 0x269   :  { %v5697_v55 = vpop.eup %5696  ;;  %5716 = vrcp.f32 %v832_v47  ;;  %v868_v19 = vmul.f32 %v5695_v58, %v6188_v49  ;;  %v5299_v16 = vld [vmem:[%s5993_s17 + $0x28c] ss:$16 sps:$4 sm:$0xff]   ;;  %v5294_v58 = vld [vmem:[%s5993_s17 + $0x280] ss:$16 sps:$4 sm:$0xff]  }
 0x26a   :  { %v5699_v1 = vpop.eup %5698  ;;  %5718 = vpow2.f32 %v4520_v28  ;;  %v871_v43 = vmul.f32 %v5697_v55, %v6190_v21  ;;  %v5302_v55 = vld [vmem:[%s5993_s17 + $0x2a4] ss:$16 sps:$4 sm:$0xff]  }
 0x26b   :  { %v5701_v10 = vpop.eup %5700  ;;  %5720 = vpow2.f32 %v4528_v6  ;;  %v5297_v6 = vld [vmem:[%s5993_s17 + $0x288] ss:$16 sps:$4 sm:$0xff]  }
 0x26c   :  { %v5703_v30 = vpop.eup %5702  ;;  %v873_v2 = vmul.f32 %v5701_v10, %v6203_v60  ;;  %5722 = vrcp.f32 %v827_v39  ;;  %v5284_v60 = vld [vmem:[%s5993_s17 + $0x244] ss:$16 sps:$4 sm:$0xff]   ;;  %v5317_v39 = vld [vmem:[%s5993_s17 + $0x2ec] ss:$16 sps:$4 sm:$0xff]  }
 0x26d   :  { %v5705_v11 = vpop.eup %5704  ;;  %v877_v17 = vmul.f32 %v5703_v30, %v6205_v52  ;;  %v870_v52 = vmul.f32 %v5699_v1, %v6192_v44  ;;  %v5305_v1 = vld [vmem:[%s5993_s17 + $0x2ac] ss:$16 sps:$4 sm:$0xff]  }
 0x26e   :  { %v5707_v53 = vpop.eup %5706  ;;  %v876_v23 = vmul.f32 %v5705_v11, %v6207_v36  ;;  %v5278_v36 = vld [vmem:[%s5993_s17 + $0x224] ss:$16 sps:$4 sm:$0xff]  }
 0x26f   :  { %v5709_v27 = vpop.eup %5708  ;;  %v885_v61 = vpack.c.bf16 %v877_v17, %v869_v15  ;;  %v879_v38 = vmul.f32 %v5707_v53, %v6209_v12  ;;  %v5300_v53 = vld [vmem:[%s5993_s17 + $0x2a0] ss:$16 sps:$4 sm:$0xff]  }
 0x270   :  { %v5711_v40 = vpop.eup %5710  ;;  %v884_v63 = vpack.c.bf16 %v876_v23, %v868_v19  ;;  %v878_v42 = vmul.f32 %v5709_v27, %v6211_v5  ;;  %v5303_v19 = vld [vmem:[%s5993_s17 + $0x2a8] ss:$16 sps:$4 sm:$0xff]   ;;  %v5308_v23 = vld [vmem:[%s5993_s17 + $0x2c4] ss:$16 sps:$4 sm:$0xff]  }
 0x271   :  { %v5713_v49 = vpop.eup %5712  ;;  %2482 = vmatprep.mubr.bf16.mxu0 %v885_v61  ;;  %2654 = vmatprep.mubr.bf16.mxu1 %v885_v61  ;;  %v881_v12 = vmul.f32 %v5711_v40, %v6213_v54  ;;  %v887_v21 = vpack.c.bf16 %v879_v38, %v871_v43  ;;  %v5287_v54 = vld [vmem:[%s5993_s17 + $0x24c] ss:$16 sps:$4 sm:$0xff]   ;;  %v5314_v38 = vld [vmem:[%s5993_s17 + $0x2e4] ss:$16 sps:$4 sm:$0xff]   ;;  %v5318_v43 = vld [vmem:[%s5993_s17 + $0x300] ss:$16 sps:$4 sm:$0xff]  }
 0x272   :  { %v5715_v35 = vpop.eup %5714  ;;  %2483 = vmatmul.mubr.bf16.vlgmr.msra.gmra.mrb[8].mxu0 %v884_v63  ;;  %2655 = vmatmul.mubr.bf16.vlgmr.msra.gmra.mrb[8].mxu1 %v884_v63  ;;  %v6265_v44 = vpack.c.bf16 %v878_v42, %v870_v52  ;;  %v872_v22 = vmul.f32 %v5713_v49, %v6223_v13  ;;  %v5285_v13 = vld [vmem:[%s5993_s17 + $0x248] ss:$16 sps:$4 sm:$0xff]   ;;  %v5320_v40 = vld [vmem:[%s5993_s17 + $0x304] ss:$16 sps:$4 sm:$0xff]   ;;  %v5323_v63 = vld [vmem:[%s5993_s17 + $0x30c] ss:$16 sps:$4 sm:$0xff]  }
 0x273   :  { %v5717_v5 = vpop.eup %5716  ;;  %2494 = vmatpush1.bf16.msra.mxu0 %v5270_v3  ;;  %2666 = vmatpush1.bf16.msra.mxu1 %v5273_v31  ;;  %v6269_v37 = vpack.c.bf16 %v881_v12, %v873_v2  ;;  %v835_v62 = vadd.f32 1.0, %v5715_v35  ;;  %v5306_v3 = vld [vmem:[%s5993_s17 + $0x2c0] ss:$16 sps:$4 sm:$0xff]   ;;  %v5309_v31 = vld [vmem:[%s5993_s17 + $0x2c8] ss:$16 sps:$4 sm:$0xff]  }
 0x274   :  { %2525 = vmatprep.mubr.bf16.mxu0 %v887_v21  ;;  %2697 = vmatprep.mubr.bf16.mxu1 %v887_v21  ;;  %v880_v46 = vmul.f32 %v5717_v5, %v6236_v20  ;;  %v5719_v45 = vpop.eup %5718  ;;  %v5290_v20 = vld [vmem:[%s5993_s17 + $0x264] ss:$16 sps:$4 sm:$0xff]   ;;  %v5321_v52 = vld [vmem:[%s5993_s17 + $0x308] ss:$16 sps:$4 sm:$0xff]   ;;  %v5329_v49 = vld [vmem:[%s5993_s17 + $0x32c] ss:$16 sps:$4 sm:$0xff]  }
 0x275   :  { %2495 = vmatprep.subr.bf16.mxu0 %v5278_v36  ;;  %2667 = vmatprep.subr.bf16.mxu1 %v5281_v9  ;;  %5724 = vrcp.f32 %v835_v62  ;;  %v5721_v4 = vpop.eup %5720  ;;  %v826_v51 = vadd.f32 1.0, %v5719_v45  ;;  %v5326_v42 = vld [vmem:[%s5993_s17 + $0x324] ss:$16 sps:$4 sm:$0xff]   ;;  %v5324_v36 = vld [vmem:[%s5993_s17 + $0x320] ss:$16 sps:$4 sm:$0xff]  }
 0x276   :  { %v6275_v50 = vpack.c.bf16 %v880_v46, %v872_v22  ;;  %v834_v33 = vadd.f32 1.0, %v5721_v4  ;;  %v5723_v47 = vpop.eup %5722  ;;  %v5327_v9 = vld [vmem:[%s5993_s17 + $0x328] ss:$16 sps:$4 sm:$0xff]   ;;  %v5332_v2 = vld [vmem:[%s5993_s17 + $0x344] ss:$16 sps:$4 sm:$0xff]  }
 0x277   :  { %2496 = vmatpush1.bf16.msra.mxu0 %v5276_v32  ;;  %2668 = vmatpush1.bf16.msra.mxu1 %v5279_v41  ;;  %5726 = vrcp.f32 %v826_v51  ;;  %v875_v10 = vmul.f32 %v5723_v47, %v6226_v34  ;;  %v5311_v34 = vld [vmem:[%s5993_s17 + $0x2cc] ss:$16 sps:$4 sm:$0xff]   ;;  %v5330_v35 = vld [vmem:[%s5993_s17 + $0x340] ss:$16 sps:$4 sm:$0xff]   ;;  %v5333_v21 = vld [vmem:[%s5993_s17 + $0x348] ss:$16 sps:$4 sm:$0xff]  }
 0x278   :  { %2497 = vmatprep.subr.bf16.mxu0 %v5284_v60  ;;  %2669 = vmatprep.subr.bf16.mxu1 %v5287_v54  ;;  %5728 = vrcp.f32 %v834_v33  ;;  %v5335_v12 = vld [vmem:[%s5993_s17 + $0x34c] ss:$16 sps:$4 sm:$0xff]   ;;  %v5338_v5 = vld [vmem:[%s5993_s17 + $0x364] ss:$16 sps:$4 sm:$0xff]   ;;  %v5336_v41 = vld [vmem:[%s5993_s17 + $0x360] ss:$16 sps:$4 sm:$0xff]  }
 0x279   :  { %v5341_v32 = vld [vmem:[%s5993_s17 + $0x36c] ss:$16 sps:$4 sm:$0xff]   ;;  %v5339_v62 = vld [vmem:[%s5993_s17 + $0x368] ss:$16 sps:$4 sm:$0xff]   ;;  %v5344_v60 = vld [vmem:[%s5993_s17 + $0x384] ss:$16 sps:$4 sm:$0xff]  }
 0x27a   :  { %v5347_v54 = vld [vmem:[%s5993_s17 + $0x38c] ss:$16 sps:$4 sm:$0xff]   ;;  %v5342_v22 = vld [vmem:[%s5993_s17 + $0x380] ss:$16 sps:$4 sm:$0xff]   ;;  %v5345_v46 = vld [vmem:[%s5993_s17 + $0x388] ss:$16 sps:$4 sm:$0xff]  }
 0x27b   :  { %2498 = vmatpush1.bf16.msra.mxu0 %v5282_v25  ;;  %2670 = vmatpush1.bf16.msra.mxu1 %v5285_v13  ;;  %v5350_v45 = vld [vmem:[%s5993_s17 + $0x3a4] ss:$16 sps:$4 sm:$0xff]   ;;  %v5353_v4 = vld [vmem:[%s5993_s17 + $0x3ac] ss:$16 sps:$4 sm:$0xff]   ;;  %v5348_v51 = vld [vmem:[%s5993_s17 + $0x3a0] ss:$16 sps:$4 sm:$0xff]  }
 0x27c   :  { %2499 = vmatprep.subr.bf16.mxu0 %v5290_v20  ;;  %2671 = vmatprep.subr.bf16.mxu1 %v5293_v48  ;;  %v5351_v25 = vld [vmem:[%s5993_s17 + $0x3a8] ss:$16 sps:$4 sm:$0xff]   ;;  %v5356_v13 = vld [vmem:[%s5993_s17 + $0x3c4] ss:$16 sps:$4 sm:$0xff]   ;;  %v5359_v33 = vld [vmem:[%s5993_s17 + $0x3cc] ss:$16 sps:$4 sm:$0xff]  }
 0x27d   :  { %v5354_v20 = vld [vmem:[%s5993_s17 + $0x3c0] ss:$16 sps:$4 sm:$0xff]   ;;  %v5357_v48 = vld [vmem:[%s5993_s17 + $0x3c8] ss:$16 sps:$4 sm:$0xff]   ;;  %v5368_v47 = vld [vmem:[%s5993_s17 + $0x404] ss:$16 sps:$4 sm:$0xff]  }
 0x27f   :  { %v5725_v28 = vpop.eup %5724  ;;  %2500 = vmatpush1.bf16.msra.mxu0 %v5288_v56  ;;  %2672 = vmatpush1.bf16.msra.mxu1 %v5291_v57  ;;  %v5362_v56 = vld [vmem:[%s5993_s17 + $0x3e4] ss:$16 sps:$4 sm:$0xff]   ;;  %v5365_v57 = vld [vmem:[%s5993_s17 + $0x3ec] ss:$16 sps:$4 sm:$0xff]  }
 0x280   :  { %2501 = vmatprep.subr.bf16.mxu0 %v5296_v59  ;;  %2673 = vmatprep.subr.bf16.mxu1 %v5299_v16  ;;  %v883_v30 = vmul.f32 %v5725_v28, %v6246_v26  ;;  %v5360_v59 = vld [vmem:[%s5993_s17 + $0x3e0] ss:$16 sps:$4 sm:$0xff]   ;;  %v5363_v16 = vld [vmem:[%s5993_s17 + $0x3e8] ss:$16 sps:$4 sm:$0xff]   ;;  %v5371_v28 = vld [vmem:[%s5993_s17 + $0x40c] ss:$16 sps:$4 sm:$0xff]  }
 0x281   :  { %v5727_v11 = vpop.eup %5726 }
 0x282   :  { %v6291_v15 = vpack.c.bf16 %v883_v30, %v875_v10  ;;  %v5729_v17 = vpop.eup %5728  ;;  %v874_v26 = vmul.f32 %v5727_v11, %v6231_v18  ;;  %v5312_v18 = vld [vmem:[%s5993_s17 + $0x2e0] ss:$16 sps:$4 sm:$0xff]   ;;  %v5375_v30 = vld [vmem:[%s5993_s17 + $0x428] ss:$16 sps:$4 sm:$0xff]   ;;  %v5380_v11 = vld [vmem:[%s5993_s17 + $0x444] ss:$16 sps:$4 sm:$0xff]  }
 0x283   :  { %2502 = vmatpush1.bf16.msra.mxu0 %v5294_v58  ;;  %2674 = vmatpush1.bf16.msra.mxu1 %v5297_v6  ;;  %v882_v27 = vmul.f32 %v5729_v17, %v6242_v29  ;;  %v5315_v29 = vld [vmem:[%s5993_s17 + $0x2e8] ss:$16 sps:$4 sm:$0xff]   ;;  %v5366_v58 = vld [vmem:[%s5993_s17 + $0x400] ss:$16 sps:$4 sm:$0xff]   ;;  %v5383_v17 = vld [vmem:[%s5993_s17 + $0x44c] ss:$16 sps:$4 sm:$0xff]  }
 0x284   :  { %2503 = vmatprep.subr.bf16.mxu0 %v5302_v55  ;;  %2675 = vmatprep.subr.bf16.mxu1 %v5305_v1  ;;  %v5369_v6 = vld [vmem:[%s5993_s17 + $0x408] ss:$16 sps:$4 sm:$0xff]   ;;  %v5374_v55 = vld [vmem:[%s5993_s17 + $0x424] ss:$16 sps:$4 sm:$0xff]   ;;  %v5377_v1 = vld [vmem:[%s5993_s17 + $0x42c] ss:$16 sps:$4 sm:$0xff]  }
 0x285   :  { %v6299_v61 = vpack.c.bf16 %v882_v27, %v874_v26  ;;  %v5372_v10 = vld [vmem:[%s5993_s17 + $0x420] ss:$16 sps:$4 sm:$0xff]   ;;  %v5392_v26 = vld [vmem:[%s5993_s17 + $0x484] ss:$16 sps:$4 sm:$0xff]   ;;  %v5395_v27 = vld [vmem:[%s5993_s17 + $0x48c] ss:$16 sps:$4 sm:$0xff]  }
 0x287   :  { %2504 = vmatpush1.bf16.msra.mxu0 %v5300_v53  ;;  %2676 = vmatpush1.bf16.msra.mxu1 %v5303_v19  ;;  %v5381_v53 = vld [vmem:[%s5993_s17 + $0x448] ss:$16 sps:$4 sm:$0xff]   ;;  %v5386_v19 = vld [vmem:[%s5993_s17 + $0x464] ss:$16 sps:$4 sm:$0xff]  }
 0x288   :  { %2505 = vmatprep.subr.bf16.mxu0 %v5308_v23  ;;  %2677 = vmatprep.subr.bf16.mxu1 %v5311_v34  ;;  %v5389_v23 = vld [vmem:[%s5993_s17 + $0x46c] ss:$16 sps:$4 sm:$0xff]   ;;  %v5387_v34 = vld [vmem:[%s5993_s17 + $0x468] ss:$16 sps:$4 sm:$0xff]  }
 0x28b   :  { %2506 = vmatpush1.bf16.msra.mxu0 %v5306_v3  ;;  %2678 = vmatpush1.bf16.msra.mxu1 %v5309_v31  ;;  %v5390_v3 = vld [vmem:[%s5993_s17 + $0x480] ss:$16 sps:$4 sm:$0xff]   ;;  %v5393_v31 = vld [vmem:[%s5993_s17 + $0x488] ss:$16 sps:$4 sm:$0xff]  }
 0x28c   :  { %2507 = vmatprep.subr.bf16.mxu0 %v5314_v38  ;;  %2679 = vmatprep.subr.bf16.mxu1 %v5317_v39  ;;  %v5398_v38 = vld [vmem:[%s5993_s17 + $0x4a4] ss:$16 sps:$4 sm:$0xff]   ;;  %v5401_v39 = vld [vmem:[%s5993_s17 + $0x4ac] ss:$16 sps:$4 sm:$0xff]  }
 0x28f   :  { %2508 = vmatpush1.bf16.msra.mxu0 %v5312_v18  ;;  %2680 = vmatpush1.bf16.msra.mxu1 %v5315_v29  ;;  %v5396_v18 = vld [vmem:[%s5993_s17 + $0x4a0] ss:$16 sps:$4 sm:$0xff]   ;;  %v5399_v29 = vld [vmem:[%s5993_s17 + $0x4a8] ss:$16 sps:$4 sm:$0xff]  }
 0x290   :  { %2509 = vmatprep.subr.bf16.mxu0 %v5320_v40  ;;  %2681 = vmatprep.subr.bf16.mxu1 %v5323_v63  ;;  %v5404_v40 = vld [vmem:[%s5993_s17 + $0x4c4] ss:$16 sps:$4 sm:$0xff]   ;;  %v5407_v63 = vld [vmem:[%s5993_s17 + $0x4cc] ss:$16 sps:$4 sm:$0xff]  }
 0x293   :  { %2510 = vmatpush1.bf16.msra.mxu0 %v5318_v43  ;;  %2682 = vmatpush1.bf16.msra.mxu1 %v5321_v52  ;;  %v5402_v43 = vld [vmem:[%s5993_s17 + $0x4c0] ss:$16 sps:$4 sm:$0xff]   ;;  %v5405_v52 = vld [vmem:[%s5993_s17 + $0x4c8] ss:$16 sps:$4 sm:$0xff]  }
 0x294   :  { %2511 = vmatprep.subr.bf16.mxu0 %v5326_v42  ;;  %2683 = vmatprep.subr.bf16.mxu1 %v5329_v49  ;;  %v5410_v42 = vld [vmem:[%s5993_s17 + $0x4e4] ss:$16 sps:$4 sm:$0xff]   ;;  %v5413_v49 = vld [vmem:[%s5993_s17 + $0x4ec] ss:$16 sps:$4 sm:$0xff]  }
 0x297   :  { %2512 = vmatpush1.bf16.msra.mxu0 %v5324_v36  ;;  %2684 = vmatpush1.bf16.msra.mxu1 %v5327_v9  ;;  %v5408_v36 = vld [vmem:[%s5993_s17 + $0x4e0] ss:$16 sps:$4 sm:$0xff]   ;;  %v5411_v9 = vld [vmem:[%s5993_s17 + $0x4e8] ss:$16 sps:$4 sm:$0xff]  }
 0x298   :  { %2513 = vmatprep.subr.bf16.mxu0 %v5332_v2  ;;  %2685 = vmatprep.subr.bf16.mxu1 %v5335_v12  ;;  %v5416_v2 = vld [vmem:[%s5993_s17 + $0x504] ss:$16 sps:$4 sm:$0xff]   ;;  %v5419_v12 = vld [vmem:[%s5993_s17 + $0x50c] ss:$16 sps:$4 sm:$0xff]  }
 0x29b   :  { %2514 = vmatpush1.bf16.msra.mxu0 %v5330_v35  ;;  %2686 = vmatpush1.bf16.msra.mxu1 %v5333_v21  ;;  %v5414_v35 = vld [vmem:[%s5993_s17 + $0x500] ss:$16 sps:$4 sm:$0xff]   ;;  %v5417_v21 = vld [vmem:[%s5993_s17 + $0x508] ss:$16 sps:$4 sm:$0xff]  }
 0x29c   :  { %2515 = vmatprep.subr.bf16.mxu0 %v5338_v5  ;;  %2687 = vmatprep.subr.bf16.mxu1 %v5341_v32  ;;  %v5422_v5 = vld [vmem:[%s5993_s17 + $0x524] ss:$16 sps:$4 sm:$0xff]   ;;  %v5425_v32 = vld [vmem:[%s5993_s17 + $0x52c] ss:$16 sps:$4 sm:$0xff]  }
 0x29f   :  { %2516 = vmatpush1.bf16.msra.mxu0 %v5336_v41  ;;  %2688 = vmatpush1.bf16.msra.mxu1 %v5339_v62  ;;  %v5420_v41 = vld [vmem:[%s5993_s17 + $0x520] ss:$16 sps:$4 sm:$0xff]   ;;  %v5423_v62 = vld [vmem:[%s5993_s17 + $0x528] ss:$16 sps:$4 sm:$0xff]  }
 0x2a0   :  { %2517 = vmatprep.subr.bf16.mxu0 %v5344_v60  ;;  %2689 = vmatprep.subr.bf16.mxu1 %v5347_v54  ;;  %v5428_v60 = vld [vmem:[%s5993_s17 + $0x544] ss:$16 sps:$4 sm:$0xff]   ;;  %v5431_v54 = vld [vmem:[%s5993_s17 + $0x54c] ss:$16 sps:$4 sm:$0xff]  }
 0x2a3   :  { %2518 = vmatpush1.bf16.msra.mxu0 %v5342_v22  ;;  %2690 = vmatpush1.bf16.msra.mxu1 %v5345_v46  ;;  %v5426_v22 = vld [vmem:[%s5993_s17 + $0x540] ss:$16 sps:$4 sm:$0xff]   ;;  %v5429_v46 = vld [vmem:[%s5993_s17 + $0x548] ss:$16 sps:$4 sm:$0xff]  }
 0x2a4   :  { %2519 = vmatprep.subr.bf16.mxu0 %v5350_v45  ;;  %2691 = vmatprep.subr.bf16.mxu1 %v5353_v4  ;;  %v5434_v45 = vld [vmem:[%s5993_s17 + $0x564] ss:$16 sps:$4 sm:$0xff]   ;;  %v5437_v4 = vld [vmem:[%s5993_s17 + $0x56c] ss:$16 sps:$4 sm:$0xff]  }
 0x2a7   :  { %2520 = vmatpush1.bf16.msra.mxu0 %v5348_v51  ;;  %2692 = vmatpush1.bf16.msra.mxu1 %v5351_v25  ;;  %v5432_v51 = vld [vmem:[%s5993_s17 + $0x560] ss:$16 sps:$4 sm:$0xff]   ;;  %v5435_v25 = vld [vmem:[%s5993_s17 + $0x568] ss:$16 sps:$4 sm:$0xff]  }
 0x2a8   :  { %2521 = vmatprep.subr.bf16.mxu0 %v5356_v13  ;;  %2693 = vmatprep.subr.bf16.mxu1 %v5359_v33  ;;  %v5440_v13 = vld [vmem:[%s5993_s17 + $0x584] ss:$16 sps:$4 sm:$0xff]   ;;  %v5443_v33 = vld [vmem:[%s5993_s17 + $0x58c] ss:$16 sps:$4 sm:$0xff]  }
 0x2ab   :  { %2522 = vmatpush1.bf16.msra.mxu0 %v5354_v20  ;;  %2694 = vmatpush1.bf16.msra.mxu1 %v5357_v48  ;;  %v5438_v20 = vld [vmem:[%s5993_s17 + $0x580] ss:$16 sps:$4 sm:$0xff]   ;;  %v5441_v48 = vld [vmem:[%s5993_s17 + $0x588] ss:$16 sps:$4 sm:$0xff]  }
 0x2ac   :  { %2523 = vmatprep.subr.bf16.mxu0 %v5362_v56  ;;  %2695 = vmatprep.subr.bf16.mxu1 %v5365_v57  ;;  %v5446_v56 = vld [vmem:[%s5993_s17 + $0x5a4] ss:$16 sps:$4 sm:$0xff]   ;;  %v5449_v57 = vld [vmem:[%s5993_s17 + $0x5ac] ss:$16 sps:$4 sm:$0xff]  }
 0x2af   :  { %2524 = vmatpush1.bf16.msra.mxu0 %v5360_v59  ;;  %2696 = vmatpush1.bf16.msra.mxu1 %v5363_v16  ;;  %v5444_v59 = vld [vmem:[%s5993_s17 + $0x5a0] ss:$16 sps:$4 sm:$0xff]   ;;  %v5447_v16 = vld [vmem:[%s5993_s17 + $0x5a8] ss:$16 sps:$4 sm:$0xff]  }
 0x2b0   :  { %2536 = vmatprep.subr.bf16.mxu0 %v5368_v47  ;;  %2708 = vmatprep.subr.bf16.mxu1 %v5371_v28  ;;  %v5452_v47 = vld [vmem:[%s5993_s17 + $0x5c4] ss:$16 sps:$4 sm:$0xff]   ;;  %v5455_v28 = vld [vmem:[%s5993_s17 + $0x5cc] ss:$16 sps:$4 sm:$0xff]  }
 0x2b2   :  { %2526 = vmatmul.mubr.bf16.vlgmr.msra.gmra.mrb[8].mxu0 %v6265_v44  ;;  %2698 = vmatmul.mubr.bf16.vlgmr.msra.gmra.mrb[8].mxu1 %v6265_v44  ;;  %v5378_v44 = vld [vmem:[%s5993_s17 + $0x440] ss:$16 sps:$4 sm:$0xff]  }
 0x2b3   :  { %2537 = vmatpush1.bf16.msra.mxu0 %v5366_v58  ;;  %2568 = vmatprep.mubr.bf16.mxu0 %v6269_v37  ;;  %v5450_v58 = vld [vmem:[%s5993_s17 + $0x5c0] ss:$16 sps:$4 sm:$0xff]  }
 0x2b4   :  { %2709 = vmatpush1.bf16.msra.mxu1 %v5369_v6  ;;  %2740 = vmatprep.mubr.bf16.mxu1 %v6269_v37  ;;  %v5384_v37 = vld [vmem:[%s5993_s17 + $0x460] ss:$16 sps:$4 sm:$0xff]   ;;  %v5453_v6 = vld [vmem:[%s5993_s17 + $0x5c8] ss:$16 sps:$4 sm:$0xff]  }
 0x2b5   :  { %2538 = vmatprep.subr.bf16.mxu0 %v5374_v55  ;;  %2710 = vmatprep.subr.bf16.mxu1 %v5377_v1  ;;  %v5458_v55 = vld [vmem:[%s5993_s17 + $0x5e4] ss:$16 sps:$4 sm:$0xff]   ;;  %v5461_v1 = vld [vmem:[%s5993_s17 + $0x5ec] ss:$16 sps:$4 sm:$0xff]  }
 0x2b7   :  { %2539 = vmatpush1.bf16.msra.mxu0 %v5372_v10  ;;  %v5456_v10 = vld [vmem:[%s5993_s17 + $0x5e0] ss:$16 sps:$4 sm:$0xff]  }
 0x2b8   :  { %2711 = vmatpush1.bf16.msra.mxu1 %v5375_v30  ;;  %2540 = vmatprep.subr.bf16.mxu0 %v5380_v11  ;;  %v5459_v30 = vld [vmem:[%s5993_s17 + $0x5e8] ss:$16 sps:$4 sm:$0xff]   ;;  %v5464_v11 = vld [vmem:[%s5993_s17 + $0x604] ss:$16 sps:$4 sm:$0xff]  }
 0x2b9   :  { %2712 = vmatprep.subr.bf16.mxu1 %v5383_v17  ;;  %v5467_v17 = vld [vmem:[%s5993_s17 + $0x60c] ss:$16 sps:$4 sm:$0xff]  }
 0x2bb   :  { %2541 = vmatpush1.bf16.msra.mxu0 %v5378_v44  ;;  %v5462_v44 = vld [vmem:[%s5993_s17 + $0x600] ss:$16 sps:$4 sm:$0xff]  }
 0x2bc   :  { %2713 = vmatpush1.bf16.msra.mxu1 %v5381_v53  ;;  %2542 = vmatprep.subr.bf16.mxu0 %v5386_v19  ;;  %v5465_v53 = vld [vmem:[%s5993_s17 + $0x608] ss:$16 sps:$4 sm:$0xff]   ;;  %v5470_v19 = vld [vmem:[%s5993_s17 + $0x624] ss:$16 sps:$4 sm:$0xff]  }
 0x2bd   :  { %2714 = vmatprep.subr.bf16.mxu1 %v5389_v23  ;;  %v5473_v23 = vld [vmem:[%s5993_s17 + $0x62c] ss:$16 sps:$4 sm:$0xff]  }
 0x2bf   :  { %2543 = vmatpush1.bf16.msra.mxu0 %v5384_v37  ;;  %v5468_v37 = vld [vmem:[%s5993_s17 + $0x620] ss:$16 sps:$4 sm:$0xff]  }
 0x2c0   :  { %2715 = vmatpush1.bf16.msra.mxu1 %v5387_v34  ;;  %2544 = vmatprep.subr.bf16.mxu0 %v5392_v26  ;;  %v5471_v34 = vld [vmem:[%s5993_s17 + $0x628] ss:$16 sps:$4 sm:$0xff]   ;;  %v5476_v26 = vld [vmem:[%s5993_s17 + $0x644] ss:$16 sps:$4 sm:$0xff]  }
 0x2c1   :  { %2716 = vmatprep.subr.bf16.mxu1 %v5395_v27  ;;  %v5479_v27 = vld [vmem:[%s5993_s17 + $0x64c] ss:$16 sps:$4 sm:$0xff]  }
 0x2c3   :  { %2545 = vmatpush1.bf16.msra.mxu0 %v5390_v3  ;;  %v5477_v3 = vld [vmem:[%s5993_s17 + $0x648] ss:$16 sps:$4 sm:$0xff]  }
 0x2c4   :  { %2717 = vmatpush1.bf16.msra.mxu1 %v5393_v31  ;;  %2546 = vmatprep.subr.bf16.mxu0 %v5398_v38  ;;  %v5482_v31 = vld [vmem:[%s5993_s17 + $0x664] ss:$16 sps:$4 sm:$0xff]   ;;  %v5485_v38 = vld [vmem:[%s5993_s17 + $0x66c] ss:$16 sps:$4 sm:$0xff]  }
 0x2c5   :  { %2718 = vmatprep.subr.bf16.mxu1 %v5401_v39  ;;  %v5483_v39 = vld [vmem:[%s5993_s17 + $0x668] ss:$16 sps:$4 sm:$0xff]  }
 0x2c7   :  { %2547 = vmatpush1.bf16.msra.mxu0 %v5396_v18  ;;  %v5488_v18 = vld [vmem:[%s5993_s17 + $0x684] ss:$16 sps:$4 sm:$0xff]  }
 0x2c8   :  { %2719 = vmatpush1.bf16.msra.mxu1 %v5399_v29  ;;  %2548 = vmatprep.subr.bf16.mxu0 %v5404_v40  ;;  %v5491_v29 = vld [vmem:[%s5993_s17 + $0x68c] ss:$16 sps:$4 sm:$0xff]   ;;  %v5486_v40 = vld [vmem:[%s5993_s17 + $0x680] ss:$16 sps:$4 sm:$0xff]  }
 0x2c9   :  { %2720 = vmatprep.subr.bf16.mxu1 %v5407_v63  ;;  %v5489_v63 = vld [vmem:[%s5993_s17 + $0x688] ss:$16 sps:$4 sm:$0xff]  }
 0x2cb   :  { %2549 = vmatpush1.bf16.msra.mxu0 %v5402_v43  ;;  %v5494_v43 = vld [vmem:[%s5993_s17 + $0x6a4] ss:$16 sps:$4 sm:$0xff]  }
 0x2cc   :  { %2721 = vmatpush1.bf16.msra.mxu1 %v5405_v52  ;;  %2550 = vmatprep.subr.bf16.mxu0 %v5410_v42  ;;  %v5497_v52 = vld [vmem:[%s5993_s17 + $0x6ac] ss:$16 sps:$4 sm:$0xff]   ;;  %v5492_v42 = vld [vmem:[%s5993_s17 + $0x6a0] ss:$16 sps:$4 sm:$0xff]  }
 0x2cd   :  { %2722 = vmatprep.subr.bf16.mxu1 %v5413_v49  ;;  %v5495_v49 = vld [vmem:[%s5993_s17 + $0x6a8] ss:$16 sps:$4 sm:$0xff]  }
 0x2cf   :  { %2551 = vmatpush1.bf16.msra.mxu0 %v5408_v36  ;;  %v5500_v36 = vld [vmem:[%s5993_s17 + $0x6c4] ss:$16 sps:$4 sm:$0xff]  }
 0x2d0   :  { %2723 = vmatpush1.bf16.msra.mxu1 %v5411_v9  ;;  %2552 = vmatprep.subr.bf16.mxu0 %v5416_v2  ;;  %v5503_v9 = vld [vmem:[%s5993_s17 + $0x6cc] ss:$16 sps:$4 sm:$0xff]   ;;  %v5498_v2 = vld [vmem:[%s5993_s17 + $0x6c0] ss:$16 sps:$4 sm:$0xff]  }
 0x2d1   :  { %2724 = vmatprep.subr.bf16.mxu1 %v5419_v12  ;;  %v5501_v12 = vld [vmem:[%s5993_s17 + $0x6c8] ss:$16 sps:$4 sm:$0xff]  }
 0x2d3   :  { %2553 = vmatpush1.bf16.msra.mxu0 %v5414_v35  ;;  %v5506_v35 = vld [vmem:[%s5993_s17 + $0x6e4] ss:$16 sps:$4 sm:$0xff]  }
 0x2d4   :  { %2725 = vmatpush1.bf16.msra.mxu1 %v5417_v21  ;;  %2554 = vmatprep.subr.bf16.mxu0 %v5422_v5  ;;  %v5509_v21 = vld [vmem:[%s5993_s17 + $0x6ec] ss:$16 sps:$4 sm:$0xff]   ;;  %v5504_v5 = vld [vmem:[%s5993_s17 + $0x6e0] ss:$16 sps:$4 sm:$0xff]  }
 0x2d5   :  { %2726 = vmatprep.subr.bf16.mxu1 %v5425_v32  ;;  %v5507_v32 = vld [vmem:[%s5993_s17 + $0x6e8] ss:$16 sps:$4 sm:$0xff]  }
 0x2d7   :  { %2555 = vmatpush1.bf16.msra.mxu0 %v5420_v41  ;;  %v5512_v41 = vld [vmem:[%s5993_s17 + $0x704] ss:$16 sps:$4 sm:$0xff]  }
 0x2d8   :  { %2727 = vmatpush1.bf16.msra.mxu1 %v5423_v62  ;;  %2556 = vmatprep.subr.bf16.mxu0 %v5428_v60  ;;  %v5515_v62 = vld [vmem:[%s5993_s17 + $0x70c] ss:$16 sps:$4 sm:$0xff]   ;;  %v5510_v60 = vld [vmem:[%s5993_s17 + $0x700] ss:$16 sps:$4 sm:$0xff]  }
 0x2d9   :  { %2728 = vmatprep.subr.bf16.mxu1 %v5431_v54  ;;  %v5513_v54 = vld [vmem:[%s5993_s17 + $0x708] ss:$16 sps:$4 sm:$0xff]  }
 0x2db   :  { %2557 = vmatpush1.bf16.msra.mxu0 %v5426_v22  ;;  %v5518_v22 = vld [vmem:[%s5993_s17 + $0x724] ss:$16 sps:$4 sm:$0xff]  }
 0x2dc   :  { %2729 = vmatpush1.bf16.msra.mxu1 %v5429_v46  ;;  %2558 = vmatprep.subr.bf16.mxu0 %v5434_v45  ;;  %v5521_v46 = vld [vmem:[%s5993_s17 + $0x72c] ss:$16 sps:$4 sm:$0xff]   ;;  %v5516_v45 = vld [vmem:[%s5993_s17 + $0x720] ss:$16 sps:$4 sm:$0xff]  }
 0x2dd   :  { %2730 = vmatprep.subr.bf16.mxu1 %v5437_v4  ;;  %v5519_v4 = vld [vmem:[%s5993_s17 + $0x728] ss:$16 sps:$4 sm:$0xff]  }
 0x2df   :  { %2559 = vmatpush1.bf16.msra.mxu0 %v5432_v51  ;;  %v5524_v51 = vld [vmem:[%s5993_s17 + $0x744] ss:$16 sps:$4 sm:$0xff]  }
 0x2e0   :  { %2731 = vmatpush1.bf16.msra.mxu1 %v5435_v25  ;;  %2560 = vmatprep.subr.bf16.mxu0 %v5440_v13  ;;  %v5527_v25 = vld [vmem:[%s5993_s17 + $0x74c] ss:$16 sps:$4 sm:$0xff]   ;;  %v5522_v13 = vld [vmem:[%s5993_s17 + $0x740] ss:$16 sps:$4 sm:$0xff]  }
 0x2e1   :  { %2732 = vmatprep.subr.bf16.mxu1 %v5443_v33  ;;  %v5525_v33 = vld [vmem:[%s5993_s17 + $0x748] ss:$16 sps:$4 sm:$0xff]  }
 0x2e3   :  { %2561 = vmatpush1.bf16.msra.mxu0 %v5438_v20  ;;  %v5530_v20 = vld [vmem:[%s5993_s17 + $0x764] ss:$16 sps:$4 sm:$0xff]  }
 0x2e4   :  { %2733 = vmatpush1.bf16.msra.mxu1 %v5441_v48  ;;  %2562 = vmatprep.subr.bf16.mxu0 %v5446_v56  ;;  %v5533_v48 = vld [vmem:[%s5993_s17 + $0x76c] ss:$16 sps:$4 sm:$0xff]   ;;  %v5528_v56 = vld [vmem:[%s5993_s17 + $0x760] ss:$16 sps:$4 sm:$0xff]  }
 0x2e5   :  { %2734 = vmatprep.subr.bf16.mxu1 %v5449_v57  ;;  %v5531_v57 = vld [vmem:[%s5993_s17 + $0x768] ss:$16 sps:$4 sm:$0xff]  }
 0x2e7   :  { %2563 = vmatpush1.bf16.msra.mxu0 %v5444_v59  ;;  %v5536_v59 = vld [vmem:[%s5993_s17 + $0x784] ss:$16 sps:$4 sm:$0xff]  }
 0x2e8   :  { %2735 = vmatpush1.bf16.msra.mxu1 %v5447_v16  ;;  %2564 = vmatprep.subr.bf16.mxu0 %v5452_v47  ;;  %v5539_v16 = vld [vmem:[%s5993_s17 + $0x78c] ss:$16 sps:$4 sm:$0xff]   ;;  %v5534_v47 = vld [vmem:[%s5993_s17 + $0x780] ss:$16 sps:$4 sm:$0xff]  }
 0x2e9   :  { %2736 = vmatprep.subr.bf16.mxu1 %v5455_v28  ;;  %v5537_v28 = vld [vmem:[%s5993_s17 + $0x788] ss:$16 sps:$4 sm:$0xff]  }
 0x2eb   :  { %2565 = vmatpush1.bf16.msra.mxu0 %v5450_v58  ;;  %v5542_v58 = vld [vmem:[%s5993_s17 + $0x7a4] ss:$16 sps:$4 sm:$0xff]  }
 0x2ec   :  { %2737 = vmatpush1.bf16.msra.mxu1 %v5453_v6  ;;  %2566 = vmatprep.subr.bf16.mxu0 %v5458_v55  ;;  %v5545_v6 = vld [vmem:[%s5993_s17 + $0x7ac] ss:$16 sps:$4 sm:$0xff]   ;;  %v5540_v55 = vld [vmem:[%s5993_s17 + $0x7a0] ss:$16 sps:$4 sm:$0xff]  }
 0x2ed   :  { %2738 = vmatprep.subr.bf16.mxu1 %v5461_v1  ;;  %v5543_v1 = vld [vmem:[%s5993_s17 + $0x7a8] ss:$16 sps:$4 sm:$0xff]  }
 0x2ef   :  { %2567 = vmatpush1.bf16.msra.mxu0 %v5456_v10  ;;  %v5548_v10 = vld [vmem:[%s5993_s17 + $0x7c4] ss:$16 sps:$4 sm:$0xff]  }
 0x2f0   :  { %2739 = vmatpush1.bf16.msra.mxu1 %v5459_v30  ;;  %2579 = vmatprep.subr.bf16.mxu0 %v5464_v11  ;;  %v5551_v30 = vld [vmem:[%s5993_s17 + $0x7cc] ss:$16 sps:$4 sm:$0xff]   ;;  %v5546_v11 = vld [vmem:[%s5993_s17 + $0x7c0] ss:$16 sps:$4 sm:$0xff]  }
 0x2f1   :  { %2751 = vmatprep.subr.bf16.mxu1 %v5467_v17  ;;  %v5549_v17 = vld [vmem:[%s5993_s17 + $0x7c8] ss:$16 sps:$4 sm:$0xff]  }
 0x2f2   :  { %2569 = vmatmul.mubr.bf16.vlgmr.msra.gmra.mrb[8].mxu0 %v6275_v50 }
 0x2f3   :  { %2741 = vmatmul.mubr.bf16.vlgmr.msra.gmra.mrb[8].mxu1 %v6275_v50  ;;  %2580 = vmatpush1.bf16.msra.mxu0 %v5462_v44  ;;  %v5474_v50 = vld [vmem:[%s5993_s17 + $0x640] ss:$16 sps:$4 sm:$0xff]   ;;  %v5554_v44 = vld [vmem:[%s5993_s17 + $0x7e4] ss:$16 sps:$4 sm:$0xff]  }
 0x2f4   :  { %2611 = vmatprep.mubr.bf16.mxu0 %v6291_v15  ;;  %2752 = vmatpush1.bf16.msra.mxu1 %v5465_v53  ;;  %v5557_v53 = vld [vmem:[%s5993_s17 + $0x7ec] ss:$16 sps:$4 sm:$0xff]  }
 0x2f5   :  { %2783 = vmatprep.mubr.bf16.mxu1 %v6291_v15  ;;  %2581 = vmatprep.subr.bf16.mxu0 %v5470_v19  ;;  %v5480_v15 = vld [vmem:[%s5993_s17 + $0x660] ss:$16 sps:$4 sm:$0xff]  }
 0x2f6   :  { %2753 = vmatprep.subr.bf16.mxu1 %v5473_v23  ;;  %v5552_v19 = vld [vmem:[%s5993_s17 + $0x7e0] ss:$16 sps:$4 sm:$0xff]   ;;  %v5555_v23 = vld [vmem:[%s5993_s17 + $0x7e8] ss:$16 sps:$4 sm:$0xff]   ;;  %s4455_s17 = sld [smem:[%s6800_s0 + %s5841_s14]]   ;;  %s5857_s14 = smov 31  }
 0x2f7   :  { %2582 = vmatpush1.bf16.msra.mxu0 %v5468_v37  ;;  %v1148_v37 = vld [vmem:[%s4447_s29] sm:$0xf]  ;;  %s4459_s29 = sld [smem:[%s6800_s0 + %s5845_s26]]   ;;  %s5860_s26 = smov 33  }
 0x2f8   :  { %2754 = vmatpush1.bf16.msra.mxu1 %v5471_v34  ;;  %2583 = vmatprep.subr.bf16.mxu0 %v5476_v26  ;;  %v1153_v34 = vrot.slane %v1148_v37, %v5918_v7  ;;  %v1157_v26 = vrot.slane %v1148_v37, %v5920_v8 }
 0x2f9   :  { %2755 = vmatprep.subr.bf16.mxu1 %v5479_v27 }
 0x2fb   :  { %2584 = vmatpush1.bf16.msra.mxu0 %v5474_v50  ;;  %v1161_v50 = vrot.slane %v1148_v37, %v5924_v14 }
 0x2fc   :  { %2756 = vmatpush1.bf16.msra.mxu1 %v5477_v3  ;;  %2585 = vmatprep.subr.bf16.mxu0 %v5482_v31 }
 0x2fd   :  { %2757 = vmatprep.subr.bf16.mxu1 %v5485_v38 }
 0x2ff   :  { %2586 = vmatpush1.bf16.msra.mxu0 %v5480_v15 }
 0x300   :  { %2758 = vmatpush1.bf16.msra.mxu1 %v5483_v39  ;;  %2587 = vmatprep.subr.bf16.mxu0 %v5488_v18  ;;  %v1165_v39 = vrot.slane %v1148_v37, %v5931_v24  ;;  %v5564_v37 = vld [vmem:[%s6519_s3 + $0x8] sm:$0xff]  }
 0x301   :  { %2759 = vmatprep.subr.bf16.mxu1 %v5491_v29 }
 0x303   :  { %2588 = vmatpush1.bf16.msra.mxu0 %v5486_v40 }
 0x304   :  { %2760 = vmatpush1.bf16.msra.mxu1 %v5489_v63  ;;  %2589 = vmatprep.subr.bf16.mxu0 %v5494_v43 }
 0x305   :  { %2761 = vmatprep.subr.bf16.mxu1 %v5497_v52 }
 0x307   :  { %2590 = vmatpush1.bf16.msra.mxu0 %v5492_v42 }
 0x308   :  { %2762 = vmatpush1.bf16.msra.mxu1 %v5495_v49  ;;  %2591 = vmatprep.subr.bf16.mxu0 %v5500_v36 }
 0x309   :  { %2763 = vmatprep.subr.bf16.mxu1 %v5503_v9 }
 0x30b   :  { %2592 = vmatpush1.bf16.msra.mxu0 %v5498_v2 }
 0x30c   :  { %2764 = vmatpush1.bf16.msra.mxu1 %v5501_v12  ;;  %2593 = vmatprep.subr.bf16.mxu0 %v5506_v35 }
 0x30d   :  { %2765 = vmatprep.subr.bf16.mxu1 %v5509_v21 }
 0x30f   :  { %2594 = vmatpush1.bf16.msra.mxu0 %v5504_v5 }
 0x310   :  { %2766 = vmatpush1.bf16.msra.mxu1 %v5507_v32  ;;  %2595 = vmatprep.subr.bf16.mxu0 %v5512_v41 }
 0x311   :  { %2767 = vmatprep.subr.bf16.mxu1 %v5515_v62 }
 0x313   :  { %2596 = vmatpush1.bf16.msra.mxu0 %v5510_v60 }
 0x314   :  { %2768 = vmatpush1.bf16.msra.mxu1 %v5513_v54  ;;  %2597 = vmatprep.subr.bf16.mxu0 %v5518_v22 }
 0x315   :  { %2769 = vmatprep.subr.bf16.mxu1 %v5521_v46 }
 0x317   :  { %2598 = vmatpush1.bf16.msra.mxu0 %v5516_v45 }
 0x318   :  { %2770 = vmatpush1.bf16.msra.mxu1 %v5519_v4  ;;  %2599 = vmatprep.subr.bf16.mxu0 %v5524_v51 }
 0x319   :  { %2771 = vmatprep.subr.bf16.mxu1 %v5527_v25 }
 0x31b   :  { %2600 = vmatpush1.bf16.msra.mxu0 %v5522_v13 }
 0x31c   :  { %2772 = vmatpush1.bf16.msra.mxu1 %v5525_v33  ;;  %2601 = vmatprep.subr.bf16.mxu0 %v5530_v20 }
 0x31d   :  { %2773 = vmatprep.subr.bf16.mxu1 %v5533_v48 }
 0x31f   :  { %2602 = vmatpush1.bf16.msra.mxu0 %v5528_v56 }
 0x320   :  { %2774 = vmatpush1.bf16.msra.mxu1 %v5531_v57  ;;  %2603 = vmatprep.subr.bf16.mxu0 %v5536_v59 }
 0x321   :  { %2775 = vmatprep.subr.bf16.mxu1 %v5539_v16 }
 0x323   :  { %2604 = vmatpush1.bf16.msra.mxu0 %v5534_v47 }
 0x324   :  { %2776 = vmatpush1.bf16.msra.mxu1 %v5537_v28  ;;  %2605 = vmatprep.subr.bf16.mxu0 %v5542_v58 }
 0x325   :  { %2777 = vmatprep.subr.bf16.mxu1 %v5545_v6 }
 0x327   :  { %2606 = vmatpush1.bf16.msra.mxu0 %v5540_v55 }
 0x328   :  { %2778 = vmatpush1.bf16.msra.mxu1 %v5543_v1  ;;  %2607 = vmatprep.subr.bf16.mxu0 %v5548_v10 }
 0x329   :  { %2779 = vmatprep.subr.bf16.mxu1 %v5551_v30 }
 0x32b   :  { %2608 = vmatpush1.bf16.msra.mxu0 %v5546_v11  ;;  %v5558_v11 = vld [vmem:[%s6519_s3 + $0x40] sm:$0xff]  }
 0x32c   :  { %2780 = vmatpush1.bf16.msra.mxu1 %v5549_v17  ;;  %2609 = vmatprep.subr.bf16.mxu0 %v5554_v44  ;;  %v5559_v17 = vld [vmem:[%s6519_s3 + $0xc0] sm:$0xff]  }
 0x32d   :  { %2781 = vmatprep.subr.bf16.mxu1 %v5557_v53  ;;  %v5560_v44 = vld [vmem:[%s6519_s3] sm:$0xff]  }
 0x32e   :  { %v5561_v53 = vld [vmem:[%s6519_s3 + $0x80] sm:$0xff]  }
 0x32f   :  { %2610 = vmatpush1.bf16.msra.mxu0 %v5552_v19  ;;  %v5562_v19 = vld [vmem:[%s6519_s3 + $0x48] sm:$0xff]  }
 0x330   :  { %2782 = vmatpush1.bf16.msra.mxu1 %v5555_v23  ;;  %4915 = vmatprep.subr.bf16.mxu0 %v5558_v11  ;;  %v5563_v23 = vld [vmem:[%s6519_s3 + $0xc8] sm:$0xff]  }
 0x331   :  { %4937 = vmatprep.subr.bf16.mxu1 %v5559_v17 }
 0x332   :  { %2612 = vmatmul.mubr.bf16.vlgmr.msra.gmra.mrb[8].mxu0 %v6299_v61 }
 0x333   :  { %2784 = vmatmul.mubr.bf16.vlgmr.msra.gmra.mrb[8].mxu1 %v6299_v61  ;;  %4916 = vmatpush3.bf16.msra.mxu0 %v5560_v44 }
 0x334   :  { %4938 = vmatpush3.bf16.msra.mxu1 %v5561_v53  ;;  %4917 = vmatprep.subr.bf16.mxu0 %v5562_v19 }
 0x335   :  { %4939 = vmatprep.subr.bf16.mxu1 %v5563_v23 }
 0x337   :  { %4918 = vmatpush3.bf16.msra.mxu0 %v5564_v37 }
 0x405   :  { %v2613_v27 = vpop.f32.mrb[8].mxu0 }
 0x406   :  { %v5102_v3 = vadd.f32 %v2613_v27, %v1153_v34  ;;  %v2785_v31 = vpop.f32.mrb[8].mxu1  ;;  %v2615_v38 = vpop.f32.mrb[9].mxu0  ;;  %v5567_v27 = vld [vmem:[%s6519_s3 + $0xd0] sm:$0xff]  }
 0x407   :  { %v5103_v15 = vadd.f32 %v2615_v38, %v1157_v26  ;;  %v2787_v61 = vpop.f32.mrb[9].mxu1  ;;  %v2617_v18 = vpop.f32.mrb[10].mxu0  ;;  %v5106_v43 = vadd.f32 %v2785_v31, %v1161_v50  ;;  %v5570_v31 = vld [vmem:[%s6519_s3 + $0x58] sm:$0xff]  }
 0x408   :  { %v5104_v29 = vadd.f32 %v2617_v18, %v1153_v34  ;;  %v2789_v40 = vpop.f32.mrb[10].mxu1  ;;  %v2619_v63 = vpop.f32.mrb[11].mxu0  ;;  %v5107_v36 = vadd.f32 %v2787_v61, %v1165_v39  ;;  %v5565_v34 = vld [vmem:[%s6519_s3 + $0x88] sm:$0xff]   ;;  %v5571_v38 = vld [vmem:[%s6519_s3 + $0xd8] sm:$0xff]   ;;  %v5574_v61 = vld [vmem:[%s6519_s3 + $0x60] sm:$0xff]  }
 0x409   :  { %v2796_v52 = vadd.f32 %v5103_v15, %v5102_v3  ;;  %v5105_v42 = vadd.f32 %v2619_v63, %v1157_v26  ;;  %v2791_v49 = vpop.f32.mrb[11].mxu1  ;;  %v5108_v9 = vadd.f32 %v2789_v40, %v1161_v50  ;;  %v5566_v26 = vld [vmem:[%s6519_s3 + $0x50] sm:$0xff]   ;;  %4940 = vmatpush3.bf16.msra.mxu1 %v5565_v34  ;;  %v5575_v18 = vld [vmem:[%s6519_s3 + $0xe0] sm:$0xff]   ;;  %v5578_v63 = vld [vmem:[%s6519_s3 + $0x68] sm:$0xff]  }
 0x40a   :  { %v5109_v35 = vadd.f32 %v2791_v49, %v1165_v39  ;;  %4919 = vmatprep.subr.bf16.mxu0 %v5566_v26  ;;  %v5568_v50 = vld [vmem:[%s6519_s3 + $0x10] sm:$0xff]   ;;  %4941 = vmatprep.subr.bf16.mxu1 %v5567_v27  ;;  %v5573_v39 = vld [vmem:[%s6519_s3 + $0x98] sm:$0xff]   ;;  %v5577_v40 = vld [vmem:[%s6519_s3 + $0xa0] sm:$0xff]  }
 0x40b   :  { %v2801_v2 = vadd.f32 %v5105_v42, %v5104_v29  ;;  %v2797_v12 = vadd.f32 %v5106_v43, %v2796_v52  ;;  %4920 = vmatpush3.bf16.msra.mxu0 %v5568_v50  ;;  %v5580_v52 = vld [vmem:[%s6519_s3 + $0x28] sm:$0xff]   ;;  %v5582_v49 = vld [vmem:[%s6519_s3 + $0x70] sm:$0xff]  }
 0x40c   :  { %4921 = vmatprep.subr.bf16.mxu0 %v5570_v31 }
 0x40d   :  { %v2798_v21 = vadd.f32 %v5107_v36, %v2797_v12  ;;  %v2802_v5 = vadd.f32 %v5108_v9, %v2801_v2  ;;  %v5585_v2 = vld [vmem:[%s6519_s3 + $0xb0] sm:$0xff]   ;;  %v5586_v12 = vld [vmem:[%s6519_s3 + $0x78] sm:$0xff]  }
 0x40f   :  { %2799 = vadd.xlane.f32.xlu0 %v2798_v21  ;;  %v2803_v32 = vadd.f32 %v5109_v35, %v2802_v5  ;;  %v5588_v21 = vld [vmem:[%s6519_s3 + $0x38] sm:$0xff]  }
 0x410   :  { %v5589_v5 = vld [vmem:[%s6519_s3 + $0xb8] sm:$0xff]  }
 0x411   :  { %2804 = vadd.xlane.f32.xlu1 %v2803_v32  ;;  %v5592_v32 = vld [vmem:[%s6556_s7 + $0x4] ss:$8 sps:$4 sm:$0xff]  }
 0x49c   :  { %v2800_v41 = vpop.xlane.xlu0 %2799 }
 0x49d   :  { %v2807_v62 = vmul.f32 0.001953125, %v2800_v41 }
 0x49e   :  { %v2805_v60 = vpop.xlane.xlu1 %2804 }
 0x49f   :  { %v6484_v54 = vsub.f32 %v5102_v3, %v2807_v62  ;;  %v6486_v22 = vsub.f32 %v5103_v15, %v2807_v62  ;;  %v2808_v46 = vmul.f32 0.001953125, %v2805_v60  ;;  %v6488_v45 = vsub.f32 %v5106_v43, %v2807_v62  ;;  %v5569_v3 = vld [vmem:[%s6519_s3 + $0x90] sm:$0xff]   ;;  %v5572_v15 = vld [vmem:[%s6519_s3 + $0x18] sm:$0xff]   ;;  %v5579_v43 = vld [vmem:[%s6519_s3 + $0xe8] sm:$0xff]  }
 0x4a0   :  { %v6490_v4 = vsub.f32 %v5107_v36, %v2807_v62  ;;  %4942 = vmatpush3.bf16.msra.mxu1 %v5569_v3  ;;  %4922 = vmatpush3.bf16.msra.mxu0 %v5572_v15  ;;  %v5583_v36 = vld [vmem:[%s6519_s3 + $0xf0] sm:$0xff]  }
 0x4a1   :  { %v6492_v51 = vsub.f32 %v5104_v29, %v2808_v46  ;;  %v6494_v25 = vsub.f32 %v5105_v42, %v2808_v46  ;;  %v2817_v13 = vmul.f32 %v6484_v54, %v6484_v54  ;;  %v2818_v33 = vmul.f32 %v6486_v22, %v6486_v22  ;;  %4943 = vmatprep.subr.bf16.mxu1 %v5571_v38  ;;  %v5576_v29 = vld [vmem:[%s6519_s3 + $0x20] sm:$0xff]   ;;  %v5581_v42 = vld [vmem:[%s6519_s3 + $0xa8] sm:$0xff]  }
 0x4a2   :  { %v2819_v20 = vmul.f32 %v6488_v45, %v6488_v45  ;;  %v6502_v48 = vsub.f32 %v5108_v9, %v2808_v46  ;;  %v6504_v57 = vsub.f32 %v5109_v35, %v2808_v46  ;;  %v2820_v47 = vmul.f32 %v6490_v4, %v6490_v4  ;;  %4923 = vmatprep.subr.bf16.mxu0 %v5574_v61  ;;  %v5584_v9 = vld [vmem:[%s6519_s3 + $0x30] sm:$0xff]   ;;  %v5587_v35 = vld [vmem:[%s6519_s3 + $0xf8] sm:$0xff]   ;;  %s4462_s3 = sld [smem:[%s6800_s0 + %s5846_s30]]   ;;  %s5861_s30 = smov 37  }
 0x4a3   :  { %v2825_v56 = vadd.f32 %v2818_v33, %v2817_v13  ;;  %v2821_v59 = vmul.f32 %v6492_v51, %v6492_v51  ;;  %v2822_v16 = vmul.f32 %v6494_v25, %v6494_v25 }
 0x4a4   :  { %v2823_v58 = vmul.f32 %v6502_v48, %v6502_v48  ;;  %v2824_v1 = vmul.f32 %v6504_v57, %v6504_v57  ;;  %4944 = vmatpush3.bf16.msra.mxu1 %v5573_v39  ;;  %4924 = vmatpush3.bf16.msra.mxu0 %v5576_v29 }
 0x4a5   :  { %v2826_v28 = vadd.f32 %v2825_v56, %v2819_v20  ;;  %v2830_v6 = vadd.f32 %v2822_v16, %v2821_v59  ;;  %4945 = vmatprep.subr.bf16.mxu1 %v5575_v18  ;;  %4925 = vmatprep.subr.bf16.mxu0 %v5578_v63  ;;  %v2794_v20 = vld [vmem:[%s4448_s11] sm:$0xf]  ;;  %s4460_s11 = sld [smem:[%s6800_s0 + %s5848_s8]]  }
 0x4a6   :  { %v2795_v56 = vld [vmem:[%s4449_s15] sm:$0xf]  ;;  %v2857_v59 = vrot.slane %v2794_v20, %v5920_v8  ;;  %v2865_v16 = vrot.slane %v2794_v20, %v5931_v24  ;;  %s4461_s15 = sld [smem:[%s6800_s0 + %s5849_s12]]  }
 0x4a7   :  { %v2827_v55 = vadd.f32 %v2826_v28, %v2820_v47  ;;  %v2831_v10 = vadd.f32 %v2830_v6, %v2823_v58  ;;  %v2886_v28 = vrot.slane %v2795_v56, %v5920_v8  ;;  %v2894_v58 = vrot.slane %v2795_v56, %v5931_v24 }
 0x4a8   :  { %4946 = vmatpush3.bf16.msra.mxu1 %v5577_v40  ;;  %4926 = vmatpush3.bf16.msra.mxu0 %v5580_v52  ;;  %v2853_v6 = vrot.slane %v2794_v20, %v5918_v7  ;;  %v2882_v44 = vrot.slane %v2795_v56, %v5918_v7  ;;  %v2890_v53 = vrot.slane %v2795_v56, %v5924_v14 }
 0x4a9   :  { %2828 = vadd.xlane.f32.xlu0 %v2827_v55  ;;  %v2832_v30 = vadd.f32 %v2831_v10, %v2824_v1  ;;  %4947 = vmatprep.subr.bf16.mxu1 %v5579_v43  ;;  %v2861_v55 = vrot.slane %v2794_v20, %v5924_v14 }
 0x4aa   :  { %4927 = vmatprep.subr.bf16.mxu0 %v5582_v49 }
 0x4ab   :  { %2833 = vadd.xlane.f32.xlu1 %v2832_v30 }
 0x4ac   :  { %4948 = vmatpush3.bf16.msra.mxu1 %v5581_v42  ;;  %4928 = vmatpush3.bf16.msra.mxu0 %v5584_v9 }
 0x4ad   :  { %4949 = vmatprep.subr.bf16.mxu1 %v5583_v36  ;;  %4929 = vmatprep.subr.bf16.mxu0 %v5586_v12 }
 0x4b0   :  { %4950 = vmatpush3.bf16.msra.mxu1 %v5585_v2  ;;  %4930 = vmatpush3.bf16.msra.mxu0 %v5588_v21 }
 0x4b1   :  { %4951 = vmatprep.subr.bf16.mxu1 %v5587_v35  ;;  %3427 = vmatprep.subr.bf16.mxu0 %v5592_v32 }
 0x4b4   :  { %4952 = vmatpush3.bf16.msra.mxu1 %v5589_v5 }
 0x536   :  { %v2829_v41 = vpop.xlane.xlu0 %2828 }
 0x537   :  { %v2835_v62 = vmul.f32 0.001953125, %v2829_v41 }
 0x538   :  { %v2834_v60 = vpop.xlane.xlu1 %2833 }
 0x539   :  { %v2837_v46 = vadd.f32 1e-05, %v2835_v62  ;;  %v2836_v13 = vmul.f32 0.001953125, %v2834_v60 }
 0x53b   :  { %5730 = vrsqrt.f32 %v2837_v46  ;;  %v2838_v33 = vadd.f32 1e-05, %v2836_v13 }
 0x53d   :  { %5732 = vrsqrt.f32 %v2838_v33 }
 0x545   :  { %v5731_v47 = vpop.eup %5730 }
 0x546   :  { %v2842_v1 = vmul.f32 %v5731_v47, %v6486_v22  ;;  %v2844_v10 = vmul.f32 %v5731_v47, %v6490_v4  ;;  %v2841_v30 = vmul.f32 %v5731_v47, %v6484_v54  ;;  %v2843_v11 = vmul.f32 %v5731_v47, %v6488_v45 }
 0x547   :  { %v5733_v17 = vpop.eup %5732 }
 0x548   :  { %v2846_v19 = vmul.f32 %v5733_v17, %v6494_v25  ;;  %v2871_v24 = vmul.f32 %v2857_v59, %v2842_v1  ;;  %v2848_v23 = vmul.f32 %v5733_v17, %v6504_v57  ;;  %v2873_v37 = vmul.f32 %v2865_v16, %v2844_v10 }
 0x549   :  { %v2845_v34 = vmul.f32 %v5733_v17, %v6492_v51  ;;  %v2870_v22 = vmul.f32 %v2853_v6, %v2841_v30  ;;  %v2847_v4 = vmul.f32 %v5733_v17, %v6502_v48  ;;  %v2872_v26 = vmul.f32 %v2861_v55, %v2843_v11 }
 0x54a   :  { %v2875_v54 = vmul.f32 %v2857_v59, %v2846_v19  ;;  %v2900_v27 = vadd.f32 %v2886_v28, %v2871_v24  ;;  %v2877_v45 = vmul.f32 %v2865_v16, %v2848_v23  ;;  %v2902_v50 = vadd.f32 %v2894_v58, %v2873_v37  ;;  %v5595_v37 = vld [vmem:[%s6556_s7 + $0x14] ss:$8 sps:$4 sm:$0xff]  }
 0x54b   :  { %v2874_v3 = vmul.f32 %v2853_v6, %v2845_v34  ;;  %v2899_v31 = vadd.f32 %v2882_v44, %v2870_v22  ;;  %v2876_v38 = vmul.f32 %v2861_v55, %v2847_v4  ;;  %v6581_v14 = vadd.f32 %v2890_v53, %v2872_v26  ;;  %v5593_v22 = vld [vmem:[%s6556_s7 + $0x10] ss:$8 sps:$4 sm:$0xff]   ;;  %v5598_v4 = vld [vmem:[%s6556_s7 + $0x24] ss:$8 sps:$4 sm:$0xff]   ;;  %v5596_v26 = vld [vmem:[%s6556_s7 + $0x20] ss:$8 sps:$4 sm:$0xff]  }
 0x54c   :  { %v2904_v25 = vadd.f32 %v2886_v28, %v2875_v54  ;;  %v4787_v15 = vmul.f32 -1.442695, %v2900_v27  ;;  %v2906_v39 = vadd.f32 %v2894_v58, %v2877_v45  ;;  %v4789_v57 = vmul.f32 -1.442695, %v2902_v50  ;;  %v5601_v54 = vld [vmem:[%s6556_s7 + $0x34] ss:$8 sps:$4 sm:$0xff]  }
 0x54d   :  { %v2903_v61 = vadd.f32 %v2882_v44, %v2874_v3  ;;  %v2905_v18 = vadd.f32 %v2890_v53, %v2876_v38  ;;  %v4786_v48 = vmul.f32 -1.442695, %v2899_v31  ;;  %v4788_v63 = vmul.f32 -1.442695, %v6581_v14  ;;  %v5590_v53 = vld [vmem:[%s6556_s7] ss:$8 sps:$4 sm:$0xff]  }
 0x54e   :  { %5734 = vpow2.f32 %v4787_v15  ;;  %v4791_v51 = vmul.f32 -1.442695, %v2904_v25  ;;  %v4793_v29 = vmul.f32 -1.442695, %v2906_v39  ;;  %v5604_v45 = vld [vmem:[%s6556_s7 + $0x44] ss:$8 sps:$4 sm:$0xff]  }
 0x54f   :  { %5736 = vpow2.f32 %v4789_v57  ;;  %v4790_v40 = vmul.f32 -1.442695, %v2903_v61  ;;  %v4792_v43 = vmul.f32 -1.442695, %v2905_v18  ;;  %v5607_v3 = vld [vmem:[%s6556_s7 + $0x54] ss:$8 sps:$4 sm:$0xff]  }
 0x550   :  { %5738 = vpow2.f32 %v4791_v51  ;;  %v5608_v38 = vld [vmem:[%s6556_s7 + $0x60] ss:$8 sps:$4 sm:$0xff]  }
 0x551   :  { %5740 = vpow2.f32 %v4793_v29 }
 0x552   :  { %5742 = vpow2.f32 %v4786_v48 }
 0x553   :  { %5744 = vpow2.f32 %v4790_v40 }
 0x554   :  { %5746 = vpow2.f32 %v4788_v63 }
 0x555   :  { %5748 = vpow2.f32 %v4792_v43 }
 0x558   :  { %v5735_v52 = vpop.eup %5734 }
 0x559   :  { %v5737_v42 = vpop.eup %5736  ;;  %v2932_v49 = vadd.f32 1.0, %v5735_v52 }
 0x55a   :  { %v5739_v36 = vpop.eup %5738  ;;  %v2934_v9 = vadd.f32 1.0, %v5737_v42  ;;  %v3312_v42 = vld [vmem:[%s4441_s23] sm:$0xff] }
 0x55b   :  { %v5741_v2 = vpop.eup %5740  ;;  %v2936_v12 = vadd.f32 1.0, %v5739_v36  ;;  %5750 = vrcp.f32 %v2932_v49 }
 0x55c   :  { %v5743_v35 = vpop.eup %5742  ;;  %v2938_v21 = vadd.f32 1.0, %v5741_v2  ;;  %5752 = vrcp.f32 %v2934_v9 }
 0x55d   :  { %v5745_v5 = vpop.eup %5744  ;;  %5754 = vrcp.f32 %v2936_v12  ;;  %v2931_v32 = vadd.f32 1.0, %v5743_v35  ;;  %v3313_v12 = vld [vmem:[%s4441_s23 + $0x8] sm:$0xff]  ;;  %s4469_s23 = sld [smem:[%s6800_s0 + %s5851_s20]]  }
 0x55e   :  { %v5747_v41 = vpop.eup %5746  ;;  %5756 = vrcp.f32 %v2938_v21  ;;  %v2935_v62 = vadd.f32 1.0, %v5745_v5 }
 0x55f   :  { %v5749_v60 = vpop.eup %5748  ;;  %5758 = vrcp.f32 %v2931_v32  ;;  %v2933_v46 = vadd.f32 1.0, %v5747_v41  ;;  %v3335_v41 = vld [vmem:[%s4453_s1] sm:$0x3]  ;;  %s6760_s1 = sld [smem:[%s6800_s0 + %s5853_s28]]  }
 0x560   :  { %5760 = vrcp.f32 %v2935_v62  ;;  %v2937_v13 = vadd.f32 1.0, %v5749_v60  ;;  %v3340_v62 = vrot.slane %v3335_v41, %v5918_v7  ;;  %v3344_v60 = vrot.slane %v3335_v41, %v5920_v8 }
 0x561   :  { %5762 = vrcp.f32 %v2933_v46 }
 0x562   :  { %5764 = vrcp.f32 %v2937_v13 }
 0x565   :  { %v5751_v33 = vpop.eup %5750 }
 0x566   :  { %v5753_v20 = vpop.eup %5752  ;;  %v2956_v16 = vmul.f32 %v5751_v33, %v2900_v27  ;;  %v5599_v27 = vld [vmem:[%s6556_s7 + $0x30] ss:$8 sps:$4 sm:$0xff]  }
 0x567   :  { %v5755_v56 = vpop.eup %5754  ;;  %v2958_v58 = vmul.f32 %v5753_v20, %v2902_v50  ;;  %v5602_v50 = vld [vmem:[%s6556_s7 + $0x40] ss:$8 sps:$4 sm:$0xff]  }
 0x568   :  { %v5757_v59 = vpop.eup %5756  ;;  %v2960_v47 = vmul.f32 %v5755_v56, %v2904_v25  ;;  %v5611_v25 = vld [vmem:[%s6556_s7 + $0x70] ss:$8 sps:$4 sm:$0xff]  }
 0x569   :  { %v5759_v28 = vpop.eup %5758  ;;  %v2962_v6 = vmul.f32 %v5757_v59, %v2906_v39  ;;  %v4794_v39 = vld [vmem:[%s4451_s19] ss:$0 sm:$0xff]  ;;  %s4463_s19 = sld [smem:[%s6800_s0 + %s5850_s16]]  }
 0x56a   :  { %v5761_v55 = vpop.eup %5760  ;;  %v2964_v1 = vpack.c.bf16 %v2960_v47, %v2956_v16  ;;  %v2955_v11 = vmul.f32 %v5759_v28, %v2899_v31  ;;  %v5610_v31 = vld [vmem:[%s6556_s7 + $0x64] ss:$8 sps:$4 sm:$0xff]  }
 0x56b   :  { %v5763_v10 = vpop.eup %5762  ;;  %v2966_v30 = vpack.c.bf16 %v2962_v6, %v2958_v58  ;;  %v2959_v17 = vmul.f32 %v5761_v55, %v2903_v61 }
 0x56c   :  { %v5765_v44 = vpop.eup %5764  ;;  %3262 = vmatprep.mubr.bf16.mxu0 %v2964_v1  ;;  %v2957_v24 = vmul.f32 %v5763_v10, %v6581_v14  ;;  %v5613_v14 = vld [vmem:[%s6556_s7 + $0x74] ss:$8 sps:$4 sm:$0xff]  }
 0x56d   :  { %3303 = vmatprep.mubr.bf16.mxu1 %v2966_v30  ;;  %v2963_v19 = vpack.c.bf16 %v2959_v17, %v2955_v11  ;;  %v2961_v23 = vmul.f32 %v5765_v44, %v2905_v18 }
 0x56f   :  { %3263 = vmatmul.mubr.bf16.vlgmr.msra.gmra.mrb[12].mxu0 %v2963_v19  ;;  %v2965_v34 = vpack.c.bf16 %v2961_v23, %v2957_v24 }
 0x570   :  { %3428 = vmatpush1.bf16.msra.mxu0 %v5590_v53  ;;  %3459 = vmatprep.mubr.bf16.mxu0 %v5823_v0  ;;  %v5605_v0 = vld [vmem:[%s6556_s7 + $0x50] ss:$8 sps:$4 sm:$0xff]   ;;  %s6702_s7 = sld [smem:[%s6800_s0 + %s5847_s4]]  }
 0x571   :  { %3304 = vmatmul.mubr.bf16.vlgmr.msra.gmra.mrb[12].mxu1 %v2965_v34  ;;  %3429 = vmatprep.subr.bf16.mxu0 %v5595_v37 }
 0x574   :  { %3430 = vmatpush1.bf16.msra.mxu0 %v5593_v22  ;;  %v5614_v22 = vld [vmem:[%s4456_s5 + $0x40] sm:$0xff]  }
 0x575   :  { %3431 = vmatprep.subr.bf16.mxu0 %v5598_v4  ;;  %v5615_v4 = vld [vmem:[%s4456_s5] sm:$0xff]   ;;  %4959 = vmatprep.subr.bf16.mxu1 %v5614_v22 }
 0x576   :  { %4960 = vmatpush3.bf16.msra.mxu1 %v5615_v4 }
 0x578   :  { %3432 = vmatpush1.bf16.msra.mxu0 %v5596_v26  ;;  %v5616_v26 = vld [vmem:[%s4456_s5 + $0x48] sm:$0xff]  }
 0x579   :  { %3433 = vmatprep.subr.bf16.mxu0 %v5601_v54  ;;  %v5617_v54 = vld [vmem:[%s4456_s5 + $0x8] sm:$0xff]   ;;  %4961 = vmatprep.subr.bf16.mxu1 %v5616_v26 }
 0x57a   :  { %4962 = vmatpush3.bf16.msra.mxu1 %v5617_v54 }
 0x57c   :  { %3434 = vmatpush1.bf16.msra.mxu0 %v5599_v27  ;;  %v5618_v27 = vld [vmem:[%s4456_s5 + $0x50] sm:$0xff]  }
 0x57d   :  { %3435 = vmatprep.subr.bf16.mxu0 %v5604_v45  ;;  %v5619_v45 = vld [vmem:[%s4456_s5 + $0x10] sm:$0xff]   ;;  %4963 = vmatprep.subr.bf16.mxu1 %v5618_v27 }
 0x57e   :  { %4964 = vmatpush3.bf16.msra.mxu1 %v5619_v45 }
 0x580   :  { %3436 = vmatpush1.bf16.msra.mxu0 %v5602_v50  ;;  %v5620_v50 = vld [vmem:[%s4456_s5 + $0x58] sm:$0xff]  }
 0x581   :  { %3437 = vmatprep.subr.bf16.mxu0 %v5607_v3  ;;  %4965 = vmatprep.subr.bf16.mxu1 %v5620_v50  ;;  %v5622_v3 = vld [vmem:[%s4456_s5 + $0x60] sm:$0xff]  }
 0x584   :  { %3438 = vmatpush1.bf16.msra.mxu0 %v5605_v0  ;;  %v5621_v0 = vld [vmem:[%s4456_s5 + $0x18] sm:$0xff]  }
 0x585   :  { %3439 = vmatprep.subr.bf16.mxu0 %v5610_v31  ;;  %4966 = vmatpush3.bf16.msra.mxu1 %v5621_v0  ;;  %v5623_v31 = vld [vmem:[%s4456_s5 + $0x20] sm:$0xff]  }
 0x586   :  { %4967 = vmatprep.subr.bf16.mxu1 %v5622_v3  ;;  %v5636_v3 = vld [vmem:[%s6641_s9 + $0x30] sm:$0xff]  }
 0x588   :  { %3440 = vmatpush1.bf16.msra.mxu0 %v5608_v38  ;;  %v5624_v38 = vld [vmem:[%s4456_s5 + $0x68] sm:$0xff]  }
 0x589   :  { %3441 = vmatprep.subr.bf16.mxu0 %v5613_v14  ;;  %4968 = vmatpush3.bf16.msra.mxu1 %v5623_v31  ;;  %v5625_v14 = vld [vmem:[%s4456_s5 + $0x28] sm:$0xff]   ;;  %v5637_v31 = vld [vmem:[%s6641_s9 + $0x38] sm:$0xff]  }
 0x58a   :  { %4969 = vmatprep.subr.bf16.mxu1 %v5624_v38 }
 0x58c   :  { %3442 = vmatpush1.bf16.msra.mxu0 %v5611_v25  ;;  %v5626_v25 = vld [vmem:[%s4456_s5 + $0x70] sm:$0xff]  }
 0x58d   :  { %4970 = vmatpush3.bf16.msra.mxu1 %v5625_v14  ;;  %v4847_v14 = vld [vmem:[%s4457_s21] ss:$0 sm:$0xff]  ;;  %s4467_s21 = sld [smem:[%s6800_s0 + %s5858_s18]]  }
 0x58e   :  { %4971 = vmatprep.subr.bf16.mxu1 %v5626_v25 }
 0x642   :  { %v4931_v15 = vpop.f32.mrb[12].mxu0 }
 0x643   :  { %v4932_v57 = vpop.f32.mrb[13].mxu0 }
 0x644   :  { %v4953_v61 = vpop.f32.mrb[12].mxu1  ;;  %v4933_v18 = vadd.f32 %v4932_v57, %v4931_v15  ;;  %v4934_v51 = vpop.f32.mrb[14].mxu0  ;;  %v5627_v15 = vld [vmem:[%s4456_s5 + $0x30] sm:$0xff]   ;;  %v5629_v57 = vld [vmem:[%s4456_s5 + $0x38] sm:$0xff]  }
 0x645   :  { %v4954_v29 = vpop.f32.mrb[13].mxu1  ;;  %v4935_v48 = vpop.f32.mrb[15].mxu0  ;;  %4972 = vmatpush3.bf16.msra.mxu1 %v5627_v15 }
 0x646   :  { %v3265_v40 = vadd.f32 %v4933_v18, %v4794_v39  ;;  %v4955_v63 = vadd.f32 %v4954_v29, %v4953_v61  ;;  %v4956_v43 = vpop.f32.mrb[14].mxu1  ;;  %v4936_v52 = vadd.f32 %v4935_v48, %v4934_v51  ;;  %v5838_v61 = vmov 0.0   ;;  %v5630_v18 = vld [vmem:[%s6641_s9] sm:$0xff]   ;;  %v5631_v51 = vld [vmem:[%s6641_s9 + $0x8] sm:$0xff]   ;;  %v5632_v29 = vld [vmem:[%s6641_s9 + $0x10] sm:$0xff]  }
 0x647   :  { %v4957_v49 = vpop.f32.mrb[15].mxu1  ;;  %5018 = vmatprep.subr.bf16.mxu0 %v5838_v61  ;;  %v5633_v48 = vld [vmem:[%s6641_s9 + $0x18] sm:$0xff]  }
 0x648   :  { %v3306_v36 = vadd.f32 %v4955_v63, %v3265_v40  ;;  %v3268_v9 = vadd.f32 %v4936_v52, %v4794_v39  ;;  %v4958_v2 = vadd.f32 %v4957_v49, %v4956_v43  ;;  %v5628_v39 = vld [vmem:[%s4456_s5 + $0x78] sm:$0xff]   ;;  %v5634_v40 = vld [vmem:[%s6641_s9 + $0x20] sm:$0xff]   ;;  %v5635_v63 = vld [vmem:[%s6641_s9 + $0x28] sm:$0xff]   ;;  %s4464_s5 = sld [smem:[%s6800_s0 + %s5854_s2]]  }
 0x649   :  { %4973 = vmatprep.subr.bf16.mxu1 %v5628_v39  ;;  %s4465_s9 = sld [smem:[%s6800_s0 + %s5855_s6]]  }
 0x64a   :  { %v3314_v35 = vmul.f32 %v3312_v42, %v3306_v36  ;;  %v3309_v21 = vadd.f32 %v4958_v2, %v3268_v9  ;;  %4974 = vmatpush3.bf16.msra.mxu1 %v5629_v57  ;;  %v3470_v2 = vld [vmem:[%s4454_s13] sm:$0x3]  ;;  %s4470_s13 = sld [smem:[%s6800_s0 + %s5856_s10]]  }
 0x64b   :  { %5038 = vmatprep.subr.bf16.mxu1 %v5838_v61 }
 0x64c   :  { %3316 = vst [vmem:[%s4474_s27] sm:$0xff] %v3314_v35  ;;  %v3315_v5 = vmul.f32 %v3313_v12, %v3309_v21  ;;  %v3471_v12 = vld [vmem:[%s4455_s17] sm:$0x3]  ;;  %v3513_v21 = vrot.slane %v3470_v2, %v5920_v8  ;;  %s4471_s17 = sld [smem:[%s6800_s0 + %s5857_s14]]  }
 0x64e   :  { %3317 = vst [vmem:[%s4474_s27 + $0x8] sm:$0xff] %v3315_v5  ;;  %v6610_v32 = vpack.c.bf16 %v3315_v5, %v3314_v35  ;;  %v3509_v35 = vrot.slane %v3470_v2, %v5918_v7  ;;  %s4466_s27 = sld [smem:[%s6800_s0 + %s5852_s24]]  }
 0x650   :  { %3460 = vmatmul.mubr.bf16.vlgmr.msra.gmra.mrb[16].mxu0 %v6610_v32 }
 0x651   :  { %5019 = vmatpush3.bf16.msra.mxu0 %v5630_v18  ;;  %5034 = vmatprep.mubr.msk.bf16.mxu0 %vm5842_vm1, %v5838_v61 }
 0x652   :  { %5020 = vmatprep.subr.bf16.mxu0 %v5838_v61 }
 0x655   :  { %5021 = vmatpush3.bf16.msra.mxu0 %v5631_v51 }
 0x656   :  { %5022 = vmatprep.subr.bf16.mxu0 %v5838_v61 }
 0x659   :  { %5023 = vmatpush3.bf16.msra.mxu0 %v5632_v29 }
 0x65a   :  { %5024 = vmatprep.subr.bf16.mxu0 %v5838_v61 }
 0x65d   :  { %5025 = vmatpush3.bf16.msra.mxu0 %v5633_v48 }
 0x65e   :  { %5026 = vmatprep.subr.bf16.mxu0 %v5838_v61 }
 0x661   :  { %5027 = vmatpush3.bf16.msra.mxu0 %v5634_v40  ;;  %v4864_v40 = vld [vmem:[%s4459_s29] ss:$0 sm:$0xff]  ;;  %s4473_s29 = sld [smem:[%s6800_s0 + %s5860_s26]]  }
 0x662   :  { %5028 = vmatprep.subr.bf16.mxu0 %v5838_v61 }
 0x665   :  { %5029 = vmatpush3.bf16.msra.mxu0 %v5635_v63 }
 0x666   :  { %5030 = vmatprep.subr.bf16.mxu0 %v5838_v61 }
 0x669   :  { %5031 = vmatpush3.bf16.msra.mxu0 %v5636_v3 }
 0x66a   :  { %5032 = vmatprep.subr.bf16.mxu0 %v5838_v61 }
 0x66d   :  { %5033 = vmatpush3.bf16.msra.mxu0 %v5637_v31  ;;  %v5647_v31 = vld [vmem:[%s6702_s7 + $0x8] sm:$0xff]  }
 0x66e   :  { %5058 = vmatprep.subr.bf16.mxu0 %v5838_v61 }
 0x723   :  { %v3461_v46 = vpop.f32.mrb[16].mxu0 }
 0x724   :  { %v3462_v13 = vadd.f32 %v3461_v46, %v3340_v62  ;;  %v3463_v33 = vpop.f32.mrb[17].mxu0  ;;  %v3528_v46 = vrot.slane %v3471_v12, %v5920_v8 }
 0x725   :  { %v3464_v20 = vadd.f32 %v3463_v33, %v3344_v60  ;;  %v3465_v56 = vpop.f32.mrb[18].mxu0 }
 0x726   :  { %v3466_v59 = vadd.f32 %v3465_v56, %v3340_v62  ;;  %v3467_v16 = vpop.f32.mrb[19].mxu0 }
 0x727   :  { %v3468_v47 = vadd.f32 %v3467_v16, %v3344_v60  ;;  %v3472_v28 = vadd.f32 %v3464_v20, %v3462_v13  ;;  %v3524_v60 = vrot.slane %v3471_v12, %v5918_v7 }
 0x729   :  { %3473 = vadd.xlane.f32.xlu0 %v3472_v28  ;;  %v3475_v58 = vadd.f32 %v3468_v47, %v3466_v59 }
 0x72b   :  { %3476 = vadd.xlane.f32.xlu1 %v3475_v58 }
 0x7b6   :  { %v3474_v6 = vpop.xlane.xlu0 %3473 }
 0x7b7   :  { %v3479_v55 = vmul.f32 0.00390625, %v3474_v6 }
 0x7b8   :  { %v3477_v1 = vpop.xlane.xlu1 %3476 }
 0x7b9   :  { %v6618_v10 = vsub.f32 %v3462_v13, %v3479_v55  ;;  %v6620_v30 = vsub.f32 %v3464_v20, %v3479_v55  ;;  %v3480_v11 = vmul.f32 0.00390625, %v3477_v1 }
 0x7bb   :  { %v6622_v17 = vsub.f32 %v3466_v59, %v3480_v11  ;;  %v6624_v44 = vsub.f32 %v3468_v47, %v3480_v11  ;;  %v3485_v53 = vmul.f32 %v6618_v10, %v6618_v10  ;;  %v3486_v19 = vmul.f32 %v6620_v30, %v6620_v30 }
 0x7bd   :  { %v3489_v24 = vadd.f32 %v3486_v19, %v3485_v53  ;;  %v3487_v23 = vmul.f32 %v6622_v17, %v6622_v17  ;;  %v3488_v37 = vmul.f32 %v6624_v44, %v6624_v44 }
 0x7bf   :  { %3490 = vadd.xlane.f32.xlu0 %v3489_v24  ;;  %v3492_v34 = vadd.f32 %v3488_v37, %v3487_v23 }
 0x7c1   :  { %3493 = vadd.xlane.f32.xlu1 %v3492_v34 }
 0x84c   :  { %v3491_v43 = vpop.xlane.xlu0 %3490 }
 0x84d   :  { %v3495_v52 = vmul.f32 0.00390625, %v3491_v43 }
 0x84e   :  { %v3494_v42 = vpop.xlane.xlu1 %3493 }
 0x84f   :  { %v3497_v49 = vadd.f32 1e-05, %v3495_v52  ;;  %v3496_v36 = vmul.f32 0.00390625, %v3494_v42 }
 0x851   :  { %5766 = vrsqrt.f32 %v3497_v49  ;;  %v3498_v9 = vadd.f32 1e-05, %v3496_v36 }
 0x853   :  { %5768 = vrsqrt.f32 %v3498_v9 }
 0x85b   :  { %v5767_v5 = vpop.eup %5766 }
 0x85c   :  { %v3501_v41 = vmul.f32 %v5767_v5, %v6618_v10  ;;  %v3502_v62 = vmul.f32 %v5767_v5, %v6620_v30 }
 0x85d   :  { %v5769_v13 = vpop.eup %5768 }
 0x85e   :  { %v3503_v33 = vmul.f32 %v5769_v13, %v6622_v17  ;;  %v3504_v20 = vmul.f32 %v5769_v13, %v6624_v44  ;;  %v3517_v56 = vmul.f32 %v3513_v21, %v3502_v62  ;;  %v3516_v59 = vmul.f32 %v3509_v35, %v3501_v41  ;;  %v5640_v13 = vld [vmem:[%s4462_s3 + $0x10] sm:$0xff]  }
 0x860   :  { %v3519_v16 = vmul.f32 %v3513_v21, %v3504_v20  ;;  %v3532_v47 = vadd.f32 %v3528_v46, %v3517_v56  ;;  %v3518_v28 = vmul.f32 %v3509_v35, %v3503_v33  ;;  %v3531_v58 = vadd.f32 %v3524_v60, %v3516_v59  ;;  %v5641_v33 = vld [vmem:[%s4462_s3 + $0x18] sm:$0xff]   ;;  %v5642_v20 = vld [vmem:[%s4462_s3 + $0x20] sm:$0xff]   ;;  %v5643_v56 = vld [vmem:[%s4462_s3 + $0x28] sm:$0xff]  }
 0x861   :  { %v5644_v59 = vld [vmem:[%s4462_s3 + $0x30] sm:$0xff]  }
 0x862   :  { %v3534_v6 = vadd.f32 %v3528_v46, %v3519_v16  ;;  %v4844_v55 = vmul.f32 -1.442695, %v3532_v47  ;;  %v3533_v1 = vadd.f32 %v3524_v60, %v3518_v28  ;;  %v4843_v10 = vmul.f32 -1.442695, %v3531_v58  ;;  %v5638_v60 = vld [vmem:[%s4462_s3] sm:$0xff]   ;;  %v5639_v46 = vld [vmem:[%s4462_s3 + $0x8] sm:$0xff]  }
 0x863   :  { %v5645_v16 = vld [vmem:[%s4462_s3 + $0x38] sm:$0xff]   ;;  %s4477_s3 = sld [smem:[%s6800_s0 + %s5861_s30]]  }
 0x864   :  { %5770 = vpow2.f32 %v4844_v55  ;;  %v4846_v30 = vmul.f32 -1.442695, %v3534_v6  ;;  %v4845_v7 = vmul.f32 -1.442695, %v3533_v1 }
 0x865   :  { %5772 = vpow2.f32 %v4843_v10 }
 0x866   :  { %5774 = vpow2.f32 %v4846_v30  ;;  %v4873_v30 = vld [vmem:[%s4460_s11] ss:$0 sm:$0xff] }
 0x867   :  { %5776 = vpow2.f32 %v4845_v7 }
 0x86e   :  { %v5771_v8 = vpop.eup %5770 }
 0x86f   :  { %v5773_v11 = vpop.eup %5772  ;;  %v3548_v17 = vadd.f32 1.0, %v5771_v8 }
 0x870   :  { %v5775_v44 = vpop.eup %5774  ;;  %v3547_v53 = vadd.f32 1.0, %v5773_v11  ;;  %v4874_v11 = vld [vmem:[%s4461_s15] ss:$0 sm:$0xff] }
 0x871   :  { %v5777_v19 = vpop.eup %5776  ;;  %v3550_v24 = vadd.f32 1.0, %v5775_v44  ;;  %5778 = vrcp.f32 %v3548_v17 }
 0x872   :  { %v3549_v23 = vadd.f32 1.0, %v5777_v19  ;;  %5780 = vrcp.f32 %v3547_v53 }
 0x873   :  { %5782 = vrcp.f32 %v3550_v24 }
 0x874   :  { %5784 = vrcp.f32 %v3549_v23 }
 0x87b   :  { %v5779_v37 = vpop.eup %5778 }
 0x87c   :  { %v5781_v34 = vpop.eup %5780  ;;  %v3560_v26 = vmul.f32 %v5779_v37, %v3532_v47 }
 0x87d   :  { %v5783_v22 = vpop.eup %5782  ;;  %v3559_v27 = vmul.f32 %v5781_v34, %v3531_v58 }
 0x87e   :  { %v5785_v4 = vpop.eup %5784  ;;  %v3562_v54 = vmul.f32 %v5783_v22, %v3534_v6 }
 0x87f   :  { %v3561_v45 = vmul.f32 %v5785_v4, %v3533_v1 }
 0x880   :  { %v3564_v50 = vpack.c.bf16 %v3562_v54, %v3560_v26 }
 0x881   :  { %v3563_v0 = vpack.c.bf16 %v3561_v45, %v3559_v27 }
 0x882   :  { %3732 = vmatprep.mubr.bf16.mxu1 %v3564_v50 }
 0x883   :  { %3733 = vmatmul.mubr.bf16.vlgmr.msra.gmra.mrb[16].mxu1 %v3563_v0  ;;  %v5646_v0 = vld [vmem:[%s6702_s7] sm:$0xff]  }
 0x884   :  { %5054 = vmatprep.mubr.msk.bf16.mxu1 %vm5842_vm1, %v5838_v61  ;;  %5039 = vmatpush3.bf16.msra.mxu1 %v5638_v60 }
 0x885   :  { %5040 = vmatprep.subr.bf16.mxu1 %v5838_v61 }
 0x888   :  { %5041 = vmatpush3.bf16.msra.mxu1 %v5639_v46 }
 0x889   :  { %5042 = vmatprep.subr.bf16.mxu1 %v5838_v61 }
 0x88c   :  { %5043 = vmatpush3.bf16.msra.mxu1 %v5640_v13 }
 0x88d   :  { %5044 = vmatprep.subr.bf16.mxu1 %v5838_v61 }
 0x890   :  { %5045 = vmatpush3.bf16.msra.mxu1 %v5641_v33 }
 0x891   :  { %5046 = vmatprep.subr.bf16.mxu1 %v5838_v61 }
 0x894   :  { %5047 = vmatpush3.bf16.msra.mxu1 %v5642_v20 }
 0x895   :  { %5048 = vmatprep.subr.bf16.mxu1 %v5838_v61 }
 0x898   :  { %5049 = vmatpush3.bf16.msra.mxu1 %v5643_v56 }
 0x899   :  { %5050 = vmatprep.subr.bf16.mxu1 %v5838_v61 }
 0x89c   :  { %5051 = vmatpush3.bf16.msra.mxu1 %v5644_v59 }
 0x89d   :  { %5052 = vmatprep.subr.bf16.mxu1 %v5838_v61 }
 0x8a0   :  { %5053 = vmatpush3.bf16.msra.mxu1 %v5645_v16 }
 0x8a1   :  { %5070 = vmatprep.subr.bf16.mxu1 %v5838_v61 }
 0x956   :  { %v4975_v38 = vpop.f32.mrb[16].mxu1 }
 0x957   :  { %v4976_v25 = vpop.f32.mrb[17].mxu1 }
 0x958   :  { %v4977_v15 = vadd.f32 %v4976_v25, %v4975_v38  ;;  %v4978_v39 = vpop.f32.mrb[18].mxu1  ;;  %v5648_v38 = vld [vmem:[%s6702_s7 + $0x10] sm:$0xff]   ;;  %v5650_v25 = vld [vmem:[%s6702_s7 + $0x20] sm:$0xff]  }
 0x959   :  { %v4979_v57 = vpop.f32.mrb[19].mxu1 }
 0x95a   :  { %v3735_v18 = vadd.f32 %v4977_v15, %v4847_v14  ;;  %v4980_v51 = vadd.f32 %v4979_v57, %v4978_v39  ;;  %v5651_v15 = vld [vmem:[%s6702_s7 + $0x28] sm:$0xff]   ;;  %v5652_v39 = vld [vmem:[%s6702_s7 + $0x30] sm:$0xff]   ;;  %v5653_v57 = vld [vmem:[%s6702_s7 + $0x38] sm:$0xff]  }
 0x95c   :  { %3741 = vst [vmem:[%s4475_s25] sm:$0xff] %v3735_v18  ;;  %v3738_v29 = vadd.f32 %v4980_v51, %v4847_v14  ;;  %v5649_v14 = vld [vmem:[%s6702_s7 + $0x18] sm:$0xff]  }
 0x95e   :  { %3742 = vst [vmem:[%s4475_s25 + $0x8] sm:$0xff] %v3738_v29  ;;  %v3743_v48 = vpack.c.bf16 %v3738_v29, %v3735_v18  ;;  %v4877_v18 = vld [vmem:[%s4463_s19] ss:$0 sm:$0xff]  ;;  %s4476_s25 = sld [smem:[%s6800_s0 + %s5859_s22]]  }
 0x960   :  { %5035 = vmatmul.mubr.bf16.vlgmr.msra.gmra.mrb[20].mxu0 %v3743_v48 }
 0x961   :  { %5066 = vmatprep.mubr.msk.bf16.mxu0 %vm5842_vm1, %v5838_v61 }
 0xa33   :  { %v3849_v63 = vpop.f32.mrb[20].mxu0 }
 0xa34   :  { %v3850_v43 = vadd.f32 %v4864_v40, %v3849_v63  ;;  %v5036_v52 = vpop.f32.mrb[21].mxu0 }
 0xa35   :  { %v3852_v42 = vpop.f32.mrb[22].mxu0 }
 0xa36   :  { %v3853_v49 = vadd.f32 %v4864_v40, %v3852_v42  ;;  %3858 = vadd.xlane.f32.xlu0 %v3850_v43  ;;  %v5037_v36 = vpop.f32.mrb[23].mxu0 }
 0xa38   :  { %3860 = vadd.xlane.f32.xlu1 %v3853_v49 }
 0xac3   :  { %v3859_v9 = vpop.xlane.xlu0 %3858 }
 0xac4   :  { %v3863_v2 = vmul.f32 0.0078125, %v3859_v9 }
 0xac5   :  { %v3861_v12 = vpop.xlane.xlu1 %3860 }
 0xac6   :  { %v3865_v35 = vsub.f32 %v3850_v43, %v3863_v2  ;;  %v3864_v21 = vmul.f32 0.0078125, %v3861_v12 }
 0xac8   :  { %v3866_v5 = vsub.f32 %v3853_v49, %v3864_v21  ;;  %v3867_v41 = vmul.f32 %v3865_v35, %v3865_v35 }
 0xaca   :  { %3869 = vadd.xlane.f32.xlu0 %v3867_v41  ;;  %v3868_v62 = vmul.f32 %v3866_v5, %v3866_v5 }
 0xacc   :  { %3871 = vadd.xlane.f32.xlu1 %v3868_v62 }
 0xb57   :  { %v3870_v47 = vpop.xlane.xlu0 %3869 }
 0xb58   :  { %v3873_v28 = vmul.f32 0.0078125, %v3870_v47 }
 0xb59   :  { %v3872_v58 = vpop.xlane.xlu1 %3871 }
 0xb5a   :  { %v3875_v6 = vadd.f32 1e-05, %v3873_v28  ;;  %v3874_v55 = vmul.f32 0.0078125, %v3872_v58 }
 0xb5c   :  { %5786 = vrsqrt.f32 %v3875_v6  ;;  %v3876_v1 = vadd.f32 1e-05, %v3874_v55 }
 0xb5e   :  { %5788 = vrsqrt.f32 %v3876_v1 }
 0xb66   :  { %v5787_v10 = vpop.eup %5786 }
 0xb67   :  { %v3879_v7 = vmul.f32 %v5787_v10, %v3865_v35 }
 0xb68   :  { %v5789_v8 = vpop.eup %5788 }
 0xb69   :  { %v3880_v17 = vmul.f32 %v5789_v8, %v3866_v5  ;;  %v3887_v44 = vmul.f32 %v4873_v30, %v3879_v7 }
 0xb6b   :  { %v3888_v53 = vmul.f32 %v4873_v30, %v3880_v17  ;;  %v3895_v19 = vadd.f32 %v4874_v11, %v3887_v44  ;;  %v5655_v17 = vld [vmem:[%s4466_s27 + $0x8] sm:$0xff]   ;;  %v5656_v44 = vld [vmem:[%s4466_s27 + $0x10] sm:$0xff]  }
 0xb6d   :  { %v3896_v24 = vadd.f32 %v4874_v11, %v3888_v53  ;;  %v4875_v23 = vmul.f32 -1.442695, %v3895_v19  ;;  %v5654_v11 = vld [vmem:[%s4466_s27] sm:$0xff]   ;;  %v5657_v53 = vld [vmem:[%s4466_s27 + $0x18] sm:$0xff]  }
 0xb6e   :  { %5059 = vmatpush3.bf16.msra.mxu0 %v5654_v11 }
 0xb6f   :  { %5790 = vpow2.f32 %v4875_v23  ;;  %v4876_v37 = vmul.f32 -1.442695, %v3896_v24  ;;  %5060 = vmatprep.subr.bf16.mxu0 %v5838_v61 }
 0xb71   :  { %5792 = vpow2.f32 %v4876_v37 }
 0xb72   :  { %5061 = vmatpush3.bf16.msra.mxu0 %v5655_v17 }
 0xb73   :  { %5062 = vmatprep.subr.bf16.mxu0 %v5838_v61 }
 0xb76   :  { %5063 = vmatpush3.bf16.msra.mxu0 %v5656_v44 }
 0xb77   :  { %5064 = vmatprep.subr.bf16.mxu0 %v5838_v61 }
 0xb79   :  { %v5791_v34 = vpop.eup %5790 }
 0xb7a   :  { %v3903_v22 = vadd.f32 1.0, %v5791_v34  ;;  %5065 = vmatpush3.bf16.msra.mxu0 %v5657_v53 }
 0xb7b   :  { %v5793_v4 = vpop.eup %5792  ;;  %5090 = vmatprep.subr.bf16.mxu0 %v5838_v61 }
 0xb7c   :  { %v3904_v26 = vadd.f32 1.0, %v5793_v4  ;;  %5794 = vrcp.f32 %v3903_v22 }
 0xb7e   :  { %5796 = vrcp.f32 %v3904_v26  ;;  %v4886_v26 = vld [vmem:[%s4464_s5] ss:$0 sm:$0xff] }
 0xb86   :  { %v5795_v54 = vpop.eup %5794 }
 0xb87   :  { %v3909_v45 = vmul.f32 %v5795_v54, %v3895_v19 }
 0xb88   :  { %v5797_v27 = vpop.eup %5796 }
 0xb89   :  { %v3910_v50 = vmul.f32 %v5797_v27, %v3896_v24 }
 0xb8b   :  { %v3911_v3 = vpack.c.bf16 %v3910_v50, %v3909_v45  ;;  %v4887_v45 = vld [vmem:[%s4465_s9] ss:$0 sm:$0xff] }
 0xb8d   :  { %5055 = vmatmul.mubr.bf16.vlgmr.msra.gmra.mrb[20].mxu1 %v3911_v3 }
 0xb8e   :  { %5071 = vmatpush3.bf16.msra.mxu1 %v5646_v0  ;;  %5086 = vmatprep.mubr.msk.bf16.mxu1 %vm5842_vm1, %v5838_v61 }
 0xb8f   :  { %5072 = vmatprep.subr.bf16.mxu1 %v5838_v61 }
 0xb92   :  { %5073 = vmatpush3.bf16.msra.mxu1 %v5647_v31 }
 0xb93   :  { %5074 = vmatprep.subr.bf16.mxu1 %v5838_v61 }
 0xb96   :  { %5075 = vmatpush3.bf16.msra.mxu1 %v5648_v38 }
 0xb97   :  { %5076 = vmatprep.subr.bf16.mxu1 %v5838_v61 }
 0xb9a   :  { %5077 = vmatpush3.bf16.msra.mxu1 %v5649_v14 }
 0xb9b   :  { %5078 = vmatprep.subr.bf16.mxu1 %v5838_v61 }
 0xb9e   :  { %5079 = vmatpush3.bf16.msra.mxu1 %v5650_v25 }
 0xb9f   :  { %5080 = vmatprep.subr.bf16.mxu1 %v5838_v61 }
 0xba2   :  { %5081 = vmatpush3.bf16.msra.mxu1 %v5651_v15 }
 0xba3   :  { %5082 = vmatprep.subr.bf16.mxu1 %v5838_v61 }
 0xba6   :  { %5083 = vmatpush3.bf16.msra.mxu1 %v5652_v39 }
 0xba7   :  { %5084 = vmatprep.subr.bf16.mxu1 %v5838_v61 }
 0xbaa   :  { %5085 = vmatpush3.bf16.msra.mxu1 %v5653_v57 }
 0xbad   :  { %5087 = vmatmul.mubr.bf16.vlgmr.msra.gmra.mrb[24].mxu1 %v6610_v32  ;;  %v4896_v32 = vld [vmem:[%s4469_s23] ss:$0 sm:$0xff] }
 0xc60   :  { %v4017_v51 = vpop.f32.mrb[20].mxu1 }
 0xc61   :  { %v4018_v29 = vadd.f32 %v4877_v18, %v4017_v51  ;;  %v5056_v48 = vpop.f32.mrb[21].mxu1 }
 0xc62   :  { %v4020_v40 = vpop.f32.mrb[22].mxu1 }
 0xc63   :  { %v4021_v63 = vadd.f32 %v4877_v18, %v4020_v40  ;;  %v5057_v43 = vpop.f32.mrb[23].mxu1  ;;  %v4026_v52 = vsel %vm387_vm0, %v4018_v29, 0.0 }
 0xc64   :  { %4027 = vadd.xlane.f32.xlu0 %v4026_v52 }
 0xc65   :  { %v4029_v42 = vsel %vm387_vm0, %v4021_v63, 0.0 }
 0xc66   :  { %4030 = vadd.xlane.f32.xlu1 %v4029_v42  ;;  %v4905_v42 = vld [vmem:[%s4470_s13] ss:$0 sm:$0xff] }
 0xc80   :  { %v4274_v49 = vpop.f32.mrb[24].mxu1 }
 0xc81   :  { %v4275_v36 = vadd.f32 %v4896_v32, %v4274_v49  ;;  %v5088_v9 = vpop.f32.mrb[25].mxu1 }
 0xc82   :  { %v4277_v2 = vpop.f32.mrb[26].mxu1  ;;  %v4906_v9 = vld [vmem:[%s4471_s17] ss:$0 sm:$0xff] }
 0xc83   :  { %v4278_v12 = vadd.f32 %v4896_v32, %v4277_v2  ;;  %v5089_v35 = vpop.f32.mrb[27].mxu1  ;;  %v4283_v21 = vsel %vm387_vm0, %v4275_v36, 0.0 }
 0xc84   :  { %4284 = vadd.xlane.f32.xlu0 %v4283_v21 }
 0xc85   :  { %v4286_v5 = vsel %vm387_vm0, %v4278_v12, 0.0 }
 0xc86   :  { %4287 = vadd.xlane.f32.xlu1 %v4286_v5 }
 0xcf1   :  { %v4028_v41 = vpop.xlane.xlu0 %4027 }
 0xcf2   :  { %v4033_v62 = vmul.f32 0.015625, %v4028_v41 }
 0xcf3   :  { %v4031_v60 = vpop.xlane.xlu1 %4030 }
 0xcf4   :  { %v4035_v46 = vsub.f32 %v4018_v29, %v4033_v62  ;;  %v4034_v13 = vmul.f32 0.015625, %v4031_v60  ;;  %v5658_v60 = vld [vmem:[%s6760_s1] sm:$0xff]  }
 0xcf6   :  { %v4036_v33 = vsub.f32 %v4021_v63, %v4034_v13  ;;  %v4037_v20 = vmul.f32 %v4035_v46, %v4035_v46 }
 0xcf8   :  { %v4039_v56 = vsel %vm387_vm0, %v4037_v20, 0.0  ;;  %v4038_v59 = vmul.f32 %v4036_v33, %v4036_v33 }
 0xcf9   :  { %4040 = vadd.xlane.f32.xlu0 %v4039_v56  ;;  %v5659_v56 = vld [vmem:[%s6760_s1 + $0x8] sm:$0xff]  }
 0xcfa   :  { %v4042_v16 = vsel %vm387_vm0, %v4038_v59, 0.0  ;;  %v5660_v59 = vld [vmem:[%s6760_s1 + $0x10] sm:$0xff]  }
 0xcfb   :  { %4043 = vadd.xlane.f32.xlu1 %v4042_v16  ;;  %v5661_v16 = vld [vmem:[%s6760_s1 + $0x18] sm:$0xff]  }
 0xd11   :  { %v4285_v47 = vpop.xlane.xlu0 %4284 }
 0xd12   :  { %v4289_v28 = vmul.f32 0.015625, %v4285_v47 }
 0xd13   :  { %v4288_v58 = vpop.xlane.xlu1 %4287 }
 0xd14   :  { %v6741_v6 = vsub.f32 %v4275_v36, %v4289_v28  ;;  %v4290_v55 = vmul.f32 0.015625, %v4288_v58 }
 0xd16   :  { %v6743_v1 = vsub.f32 %v4278_v12, %v4290_v55  ;;  %v4293_v10 = vmul.f32 %v6741_v6, %v6741_v6 }
 0xd18   :  { %v4295_v30 = vsel %vm387_vm0, %v4293_v10, 0.0  ;;  %v4294_v7 = vmul.f32 %v6743_v1, %v6743_v1 }
 0xd19   :  { %4296 = vadd.xlane.f32.xlu0 %v4295_v30 }
 0xd1a   :  { %v4298_v8 = vsel %vm387_vm0, %v4294_v7, 0.0 }
 0xd1b   :  { %4299 = vadd.xlane.f32.xlu1 %v4298_v8 }
 0xd86   :  { %v4041_v19 = vpop.xlane.xlu0 %4040 }
 0xd87   :  { %v4045_v24 = vmul.f32 0.015625, %v4041_v19 }
 0xd88   :  { %v4044_v23 = vpop.xlane.xlu1 %4043 }
 0xd89   :  { %v4047_v37 = vadd.f32 1e-05, %v4045_v24  ;;  %v4046_v34 = vmul.f32 0.015625, %v4044_v23  ;;  %v4909_v24 = vld [vmem:[%s4473_s29] ss:$0 sm:$0xff] }
 0xd8b   :  { %5798 = vrsqrt.f32 %v4047_v37  ;;  %v4048_v22 = vadd.f32 1e-05, %v4046_v34 }
 0xd8d   :  { %5800 = vrsqrt.f32 %v4048_v22 }
 0xd95   :  { %v5799_v4 = vpop.eup %5798 }
 0xd96   :  { %v4051_v54 = vmul.f32 %v5799_v4, %v4035_v46 }
 0xd97   :  { %v5801_v27 = vpop.eup %5800 }
 0xd98   :  { %v4059_v50 = vmul.f32 %v4886_v26, %v4051_v54  ;;  %v4052_v0 = vmul.f32 %v5801_v27, %v4036_v33 }
 0xd9a   :  { %v4060_v3 = vmul.f32 %v4886_v26, %v4052_v0  ;;  %v4067_v31 = vadd.f32 %v4887_v45, %v4059_v50 }
 0xd9c   :  { %v4068_v38 = vadd.f32 %v4887_v45, %v4060_v3  ;;  %v4888_v14 = vmul.f32 -1.442695, %v4067_v31 }
 0xd9e   :  { %5802 = vpow2.f32 %v4888_v14  ;;  %v4889_v25 = vmul.f32 -1.442695, %v4068_v38 }
 0xda0   :  { %5804 = vpow2.f32 %v4889_v25 }
 0xda6   :  { %v4297_v15 = vpop.xlane.xlu0 %4296 }
 0xda7   :  { %v4301_v39 = vmul.f32 0.015625, %v4297_v15 }
 0xda8   :  { %v5803_v57 = vpop.eup %5802  ;;  %v4300_v18 = vpop.xlane.xlu1 %4299 }
 0xda9   :  { %v4303_v51 = vadd.f32 1e-05, %v4301_v39  ;;  %v4302_v29 = vmul.f32 0.015625, %v4300_v18  ;;  %v4075_v48 = vadd.f32 1.0, %v5803_v57 }
 0xdaa   :  { %v5805_v40 = vpop.eup %5804 }
 0xdab   :  { %5806 = vrsqrt.f32 %v4303_v51  ;;  %v4304_v63 = vadd.f32 1e-05, %v4302_v29  ;;  %v4076_v43 = vadd.f32 1.0, %v5805_v40 }
 0xdac   :  { %5808 = vrcp.f32 %v4075_v48 }
 0xdad   :  { %5810 = vrsqrt.f32 %v4304_v63 }
 0xdae   :  { %5812 = vrcp.f32 %v4076_v43 }
 0xdb5   :  { %v5807_v52 = vpop.eup %5806 }
 0xdb6   :  { %v5809_v32 = vpop.eup %5808  ;;  %v4307_v49 = vmul.f32 %v5807_v52, %v6741_v6 }
 0xdb7   :  { %v5811_v36 = vpop.eup %5810  ;;  %v4081_v21 = vmul.f32 %v5809_v32, %v4067_v31 }
 0xdb8   :  { %v5813_v2 = vpop.eup %5812  ;;  %v4315_v12 = vmul.f32 %v4905_v42, %v4307_v49  ;;  %v4308_v35 = vmul.f32 %v5811_v36, %v6743_v1 }
 0xdb9   :  { %v4082_v5 = vmul.f32 %v5813_v2, %v4068_v38 }
 0xdba   :  { %v4323_v41 = vadd.f32 %v4906_v9, %v4315_v12  ;;  %v4316_v62 = vmul.f32 %v4905_v42, %v4308_v35 }
 0xdbb   :  { %v4083_v46 = vpack.c.bf16 %v4082_v5, %v4081_v21 }
 0xdbc   :  { %v4907_v13 = vmul.f32 -1.442695, %v4323_v41  ;;  %v4324_v33 = vadd.f32 %v4906_v9, %v4316_v62 }
 0xdbd   :  { %5067 = vmatmul.mubr.msk.bf16.vlgmr.msra.gmra.mrb[24].mxu0 %vm387_vm0, %v4083_v46 }
 0xdbe   :  { %5814 = vpow2.f32 %v4907_v13  ;;  %v4908_v20 = vmul.f32 -1.442695, %v4324_v33  ;;  %5091 = vmatpush3.bf16.msra.mxu0 %v5658_v60  ;;  %5098 = vmatprep.mubr.msk.bf16.mxu0 %vm5842_vm1, %v5838_v61 }
 0xdbf   :  { %5092 = vmatprep.subr.bf16.mxu0 %v5838_v61 }
 0xdc0   :  { %5816 = vpow2.f32 %v4908_v20 }
 0xdc2   :  { %5093 = vmatpush3.bf16.msra.mxu0 %v5659_v56 }
 0xdc3   :  { %5094 = vmatprep.subr.bf16.mxu0 %v5838_v61 }
 0xdc6   :  { %5095 = vmatpush3.bf16.msra.mxu0 %v5660_v59 }
 0xdc7   :  { %5096 = vmatprep.subr.bf16.mxu0 %v5838_v61  ;;  %v4890_v61 = vld [vmem:[%s4467_s21] ss:$0 sm:$0xff] }
 0xdc8   :  { %v5815_v47 = vpop.eup %5814 }
 0xdc9   :  { %v4331_v28 = vadd.f32 1.0, %v5815_v47 }
 0xdca   :  { %v5817_v58 = vpop.eup %5816  ;;  %5097 = vmatpush3.bf16.msra.mxu0 %v5661_v16 }
 0xdcb   :  { %5818 = vrcp.f32 %v4331_v28  ;;  %v4332_v6 = vadd.f32 1.0, %v5817_v58 }
 0xdcd   :  { %5820 = vrcp.f32 %v4332_v6 }
 0xdd5   :  { %v5819_v55 = vpop.eup %5818 }
 0xdd6   :  { %v4337_v10 = vmul.f32 %v5819_v55, %v4323_v41 }
 0xdd7   :  { %v5821_v1 = vpop.eup %5820 }
 0xdd8   :  { %v4338_v30 = vmul.f32 %v5821_v1, %v4324_v33 }
 0xdda   :  { %v4339_v7 = vpack.c.bf16 %v4338_v30, %v4337_v10 }
 0xddc   :  { %5099 = vmatmul.mubr.msk.bf16.vlgmr.msra.gmra.mrb[28].mxu0 %vm387_vm0, %v4339_v7 }
 0xe90   :  { %v4160_v8 = vpop.f32.mrb[24].mxu0 }
 0xe91   :  { %v4161_v11 = vadd.f32 %v4890_v61, %v4160_v8  ;;  %v5068_v17 = vpop.f32.mrb[25].mxu0 }
 0xe92   :  { %v4163_v44 = vpop.f32.mrb[26].mxu0 }
 0xe93   :  { %4167 = vst [vmem:[%s4476_s25] sm:$0xff] %v4161_v11  ;;  %v4164_v53 = vadd.f32 %v4890_v61, %v4163_v44  ;;  %v5069_v19 = vpop.f32.mrb[27].mxu0 }
 0xe95   :  { %4168 = vst [vmem:[%s4476_s25 + $0x8] sm:$0xff] %v4164_v53 }
 0xeaf   :  { %v4416_v23 = vpop.f32.mrb[28].mxu0 }
 0xeb0   :  { %v4417_v37 = vadd.f32 %v4909_v24, %v4416_v23  ;;  %v5100_v34 = vpop.f32.mrb[29].mxu0 }
 0xeb1   :  { %v4419_v22 = vpop.f32.mrb[30].mxu0 }
 0xeb2   :  { %4423 = vst [vmem:[%s4477_s3] sm:$0xff] %v4417_v37  ;;  %v4420_v4 = vadd.f32 %v4909_v24, %v4419_v22  ;;  %v5101_v26 = vpop.f32.mrb[31].mxu0 }
 0xeb4   :  { %4424 = vst [vmem:[%s4477_s3 + $0x8] sm:$0xff] %v4420_v4 }

</bundles_post_ra>
